<compile_context>
chip_gen: v6e
topology: v6e:2x2x1
jax: 0.10.0
libtpu: 0.0.40
codegen_flags: <defaults>
</compile_context>

<pallas_src>
import functools

import jax
import jax.numpy as jnp
from jax.experimental import pallas as pl
from jax.experimental.pallas import tpu as pltpu


def _round_up(x, m):
    return (x + m - 1) // m * m


# ---------------------------------------------------------------------------
# Fused kernel: one grid step = (one batch split) x (K timesteps).
#   grid = (n_split, nb); axis 0 "parallel", axis 1 "arbitrary" (carry).
# Per grid step:
#   1. block-batched carry-independent projections over all K*Bh rows:
#        x   = [skill_e | diff_e] @ fc_w + fc_b
#        x2a = x @ fc2_w_x + fc2_b
#        v2  = hints_e @ Wv2 ,  v3 = answer_e @ Wv3
#   2. K-step unrolled recurrence with 3 fused matmuls per step
#   3. predictions accumulated in a (Bh, T_pad) VMEM scratch; single HBM
#      store at the last time block (lane-dense, one store per split).
# ---------------------------------------------------------------------------
def _kt_fused_kernel(sd_ref, an_ref, hn_ref,
                     wfc_ref, bfc_ref, wx2_ref, bx2_ref,
                     wv2_ref, wv3_ref,
                     whck_ref, wqc_ref, wff_ref, bf1_ref, bf2_ref,
                     out_ref,
                     h_sc, c_sc, y_sc, x_sc, x2a_sc, v2_sc, v3_sc,
                     *, emb_dim, steps_per_block, batch_rows):
    D = emb_dim
    K = steps_per_block
    Bh = batch_rows
    f32 = jnp.float32

    t_blk = pl.program_id(1)

    @pl.when(t_blk == 0)
    def _init():
        h_sc[...] = jnp.zeros_like(h_sc)
        c_sc[...] = jnp.zeros_like(c_sc)
        y_sc[...] = jnp.zeros_like(y_sc)

    # ---- carry-independent projections, batched over the whole K-step block
    x_all = (jnp.dot(sd_ref[0], wfc_ref[...], preferred_element_type=f32)
             + bfc_ref[...])
    x_sc[...] = x_all
    x2a_sc[...] = (jnp.dot(x_all, wx2_ref[...], preferred_element_type=f32)
                   + bx2_ref[...])
    v2_sc[...] = jnp.dot(hn_ref[0], wv2_ref[...], preferred_element_type=f32)
    v3_sc[...] = jnp.dot(an_ref[0], wv3_ref[...], preferred_element_type=f32)

    # ---- resident fused weights / hoisted bias broadcasts (small at D=32)
    whck = whck_ref[...]                      # (D, 3D)  [fc2_h | Wq3 | Wk2]
    wqc = wqc_ref[...]                        # (D, 2D)  [Wq2 | Wk3]
    wff = wff_ref[...]                        # (D, 4D)  [Wf11|Wf12|Wf21|Wf22]
    bf1b = jnp.broadcast_to(bf1_ref[...], (Bh, 2 * D))
    bf2b = jnp.broadcast_to(bf2_ref[...], (Bh, 2 * D))
    inv = jnp.float32(1.0 / (float(D) ** 0.5))

    h = h_sc[...]
    c = c_sc[...]
    y_acc = y_sc[...]                         # (Bh, T_pad), persists via scratch
    col_ids = jax.lax.broadcasted_iota(jnp.int32, y_acc.shape, 1)
    col0 = t_blk * K

    for j in range(K):                        # static unroll, concrete indices
        r = pl.ds(j * Bh, Bh)
        x_t = x_sc[r, :]

        # shifted prediction (uses h carried from the previous step):
        #   y_shift[t] = sigmoid(<x[t], h_{t-1}>)
        pred = jax.nn.sigmoid(jnp.sum(x_t * h, axis=-1, keepdims=True))
        y_acc = jnp.where(col_ids == col0 + j, pred, y_acc)

        # MXU 1/3: [h; c] @ [fc2_h | Wq3 | Wk2]
        hc = jnp.concatenate([h, c], axis=0)                     # (2Bh, D)
        r1 = jnp.dot(hc, whck, preferred_element_type=f32)       # (2Bh, 3D)
        hq = r1[:Bh, :2 * D]                                     # h@[fc2_h|Wq3]
        k2 = r1[Bh:, 2 * D:]                                     # c@Wk2
        x_t2 = x2a_sc[r, :] + hq[:, :D]                          # fc2(cat(x, h))
        k3 = hq[:, D:]                                           # h@Wq3

        # MXU 2/3: x_t2 @ [Wq2 | Wk3]
        qq = jnp.dot(x_t2, wqc, preferred_element_type=f32)      # (Bh, 2D)
        out2 = v2_sc[r, :] * jax.nn.sigmoid(qq[:, :D] * k2 * inv)
        out3 = v3_sc[r, :] * jax.nn.sigmoid(qq[:, D:] * k3 * inv)

        # MXU 3/3: [out2; out3] @ [Wf11 | Wf12 | Wf21 | Wf22]
        oo = jnp.concatenate([out2, out3], axis=0)               # (2Bh, D)
        ff = jnp.dot(oo, wff, preferred_element_type=f32)        # (2Bh, 4D)
        f1 = ff[:Bh, :2 * D] + bf1b
        f2 = ff[Bh:, 2 * D:] + bf2b
        c = jnp.tanh(f1[:, :D]) * jax.nn.sigmoid(f1[:, D:]) + c
        h = jnp.tanh(f2[:, :D]) * jax.nn.sigmoid(f2[:, D:]) + c

    h_sc[...] = h
    c_sc[...] = c
    y_sc[...] = y_acc

    # single, lane-dense HBM store per batch split
    @pl.when(t_blk == pl.num_programs(1) - 1)
    def _store():
        out_ref[...] = y_acc


# ---------------------------------------------------------------------------
# Wrapper
# ---------------------------------------------------------------------------
def kt_forward_pallas(params, skill, answer, diff, hints, time_used,
                      max_len, emb_dim, *, steps_per_block=16, batch_split=1):
    del time_used  # only feeds the dead branch-1 of the reference model
    D = emb_dim
    B, T = skill.shape
    assert T == max_len

    K = max(1, min(steps_per_block, T))     # timesteps per grid step
    nb = -(-T // K)                         # ceil(T / K)
    T_pad = nb * K

    # batch_split=2 uses both TensorCores on multi-TC chips (v7x); it is a
    # near no-op on single-TC chips, so only enable it for larger batches.
    n_split = max(1, int(batch_split))
    Bh = max(8, _round_up(-(-B // n_split), 8))     # rows per split, >=8 sublanes
    B_pad = n_split * Bh

    def gather_idx(a):
        a = jnp.asarray(a, jnp.int32)
        # pad value 0 is always a valid embedding row; padded rows/steps are
        # computed with garbage but sliced off below.
        a = jnp.pad(a, ((0, B_pad - B), (0, T_pad - T)))       # (B_pad, T_pad)
        a = a.reshape(n_split, Bh, T_pad)
        a = jnp.transpose(a, (0, 2, 1))                        # time-major per split
        return a.reshape(n_split, T_pad * Bh)

    # gathered, time-major embedding streams (glue, plain JAX)
    sd = jnp.concatenate(
        [params["skill_emb"][gather_idx(skill)],
         params["diff_emb"][gather_idx(diff)]], axis=-1).astype(jnp.float32)
    an = params["answer_emb"][gather_idx(answer)].astype(jnp.float32)
    hn = params["hints_emb"][gather_idx(hints)].astype(jnp.float32)

    # host-side weight fusions (shared-LHS lane concatenation)
    w_fc = params["fc_w"]                         # (2D, D)
    b_fc = params["fc_b"][None, :]                # (1, D)
    w_x2 = params["fc2_w"][:D]                    # x-half of fc2
    b_x2 = params["fc2_b"][None, :]
    w_hck = jnp.concatenate([params["fc2_w"][D:], params["wq3"],
                             params["wk2"]], axis=1)            # (D, 3D)
    w_qc = jnp.concatenate([params["wq2"], params["wk3"]], axis=1)   # (D, 2D)
    w_ff = jnp.concatenate([params["wf11"], params["wf12"],
                            params["wf21"], params["wf22"]], axis=1)  # (D, 4D)
    b_f1 = jnp.concatenate([params["bf11"], params["bf12"]])[None, :]
    b_f2 = jnp.concatenate([params["bf21"], params["bf22"]])[None, :]

    seq = lambda cols: pl.BlockSpec((1, K * Bh, cols), lambda s, t: (s, t, 0))
    res = lambda shape: pl.BlockSpec(shape, lambda s, t: (0, 0))

    kernel = functools.partial(_kt_fused_kernel, emb_dim=D,
                               steps_per_block=K, batch_rows=Bh)

    y_full = pl.pallas_call(
        kernel,
        grid_spec=pltpu.PrefetchScalarGridSpec(
            num_scalar_prefetch=0,
            grid=(n_split, nb),
            in_specs=[seq(2 * D), seq(D), seq(D),
                      res((2 * D, D)), res((1, D)), res((D, D)), res((1, D)),
                      res((D, D)), res((D, D)),
                      res((D, 3 * D)), res((D, 2 * D)), res((D, 4 * D)),
                      res((1, 2 * D)), res((1, 2 * D))],
            out_specs=pl.BlockSpec((Bh, T_pad), lambda s, t: (s, 0)),
            scratch_shapes=[pltpu.VMEM((Bh, D), jnp.float32),       # h
                            pltpu.VMEM((Bh, D), jnp.float32),       # c
                            pltpu.VMEM((Bh, T_pad), jnp.float32),   # y accumulator
                            pltpu.VMEM((K * Bh, D), jnp.float32),   # x
                            pltpu.VMEM((K * Bh, D), jnp.float32),   # x@fc2_x + b
                            pltpu.VMEM((K * Bh, D), jnp.float32),   # v2
                            pltpu.VMEM((K * Bh, D), jnp.float32)],  # v3
        ),
        out_shape=jax.ShapeDtypeStruct((B_pad, T_pad), jnp.float32),
        compiler_params=pltpu.CompilerParams(
            dimension_semantics=("parallel", "arbitrary")),
    )(sd, an, hn, w_fc, b_fc, w_x2, b_x2, params["wv2"], params["wv3"],
      w_hck, w_qc, w_ff, b_f1, b_f2)

    # re-align the shifted predictions: y[t] = y_shift[t+1], y[T-1] = 0
    y_shift = y_full[:B, :]
    return jnp.concatenate(
        [y_shift[:, 1:T], jnp.zeros((B, 1), jnp.float32)], axis=1)


# ---------------------------------------------------------------------------
# Pure-JAX reference (mirrors the PyTorch forward) for correctness checking.
# ---------------------------------------------------------------------------
def kt_forward_reference(params, skill, answer, diff, hints, time_used,
                         max_len, emb_dim):
    D = emb_dim
    bs = skill.shape[0]
    e_skill = params["skill_emb"][skill]
    e_diff = params["diff_emb"][diff]
    e_a = params["answer_emb"][answer]
    e_hints = params["hints_emb"][hints]

    x = jnp.concatenate([e_skill, e_diff], axis=2) @ params["fc_w"] + params["fc_b"]
    h = jnp.zeros((bs, D), jnp.float32)
    c = jnp.zeros((bs, D), jnp.float32)
    inv = jnp.float32(1.0 / (float(D) ** 0.5))
    preds = []
    for t in range(max_len - 1):
        x_t, x_next = x[:, t], x[:, t + 1]
        hints_t, a_t = e_hints[:, t], e_a[:, t]
        x_t = jnp.concatenate([x_t, h], axis=1) @ params["fc2_w"] + params["fc2_b"]
        # branch 1 is dead code in the original model
        q2 = x_t @ params["wq2"]; k2 = c @ params["wk2"]; v2 = hints_t @ params["wv2"]
        out = v2 * jax.nn.sigmoid(q2 * k2 * inv)
        c = (jnp.tanh(out @ params["wf11"] + params["bf11"])
             * jax.nn.sigmoid(out @ params["wf12"] + params["bf12"]) + c)
        q3 = x_t @ params["wk3"]; k3 = h @ params["wq3"]; v3 = a_t @ params["wv3"]
        out3 = v3 * jax.nn.sigmoid(q3 * k3 * inv)
        h = (jnp.tanh(out3 @ params["wf21"] + params["bf21"])
             * jax.nn.sigmoid(out3 @ params["wf22"] + params["bf22"]) + c)
        preds.append(jax.nn.sigmoid(jnp.sum(x_next * h, axis=1)))
    preds.append(jnp.zeros(bs, jnp.float32))
    return jnp.stack(preds, axis=1)


# ---------------------------------------------------------------------------
# Deterministic synthetic parameters (shapes from KTModel.__init__).
# Linear weights stored as (in_features, out_features) (PyTorch W.T).
# ---------------------------------------------------------------------------
def init_params(key, n_skill, n_diff, n_hints, n_time_used, emb_dim):
    D = emb_dim
    keys = iter(jax.random.split(key, 64))

    def nxt():
        return next(keys)

    def emb(rows, pad_idx):
        w = jax.random.normal(nxt(), (rows, D), jnp.float32) * 0.1
        return w.at[pad_idx].set(0.0)  # padding_idx row is zero

    def lin_w(fan_in, fan_out):
        return jax.random.normal(nxt(), (fan_in, fan_out), jnp.float32) * (1.0 / (fan_in ** 0.5))

    def lin_b(fan_out):
        return jax.random.normal(nxt(), (fan_out,), jnp.float32) * 0.05

    p = {
        "skill_emb": emb(n_skill + 2, n_skill + 1),
        "answer_emb": emb(3, 2),
        "diff_emb": emb(n_diff + 2, n_diff + 1),
        "hints_emb": emb(n_hints + 2, n_hints + 1),
        "time_used_emb": emb(n_time_used + 2, n_time_used + 1),
    }
    for name in ["wq1", "wk1", "wv1", "wq2", "wk2", "wv2", "wq3", "wk3", "wv3",
                 "wf11", "wf12", "wf21", "wf22"]:
        p[name] = lin_w(D, D)
    p["fc_w"], p["fc_b"] = lin_w(2 * D, D), lin_b(D)
    p["fc2_w"], p["fc2_b"] = lin_w(2 * D, D), lin_b(D)
    for name in ["bf11", "bf12", "bf21", "bf22"]:
        p[name] = lin_b(D)
    return p


def _make_inputs(key, bs, max_len, n_skill, n_diff, n_hints, n_time_used):
    ks = jax.random.split(key, 5)
    skill = jax.random.randint(ks[0], (bs, max_len), 0, n_skill, jnp.int32)
    answer = jax.random.randint(ks[1], (bs, max_len), 0, 2, jnp.int32)
    diff = jax.random.randint(ks[2], (bs, max_len), 0, n_diff, jnp.int32)
    hints = jax.random.randint(ks[3], (bs, max_len), 0, n_hints, jnp.int32)
    tu = jax.random.randint(ks[4], (bs, max_len), 0, n_time_used, jnp.int32)
    return skill, answer, diff, hints, tu


if __name__ == "__main__":
    n_skill, n_diff, n_hints, n_time_used = 10, 5, 4, 6
    emb_dim = 32

    root = jax.random.PRNGKey(0)
    kp, k1, k2 = jax.random.split(root, 3)
    params = init_params(kp, n_skill, n_diff, n_hints, n_time_used, emb_dim)

    # --- case 1: small shapes (B=2, T=8) -------------------------------------
    bs, max_len = 2, 8
    inputs = _make_inputs(k1, bs, max_len, n_skill, n_diff, n_hints, n_time_used)
    y = kt_forward_pallas(params, *inputs, max_len, emb_dim)
    y = jax.block_until_ready(y)
    assert y.shape == (bs, max_len), y.shape
    y_ref = kt_forward_reference(params, *inputs, max_len, emb_dim)
    if not bool(jnp.allclose(y, y_ref, atol=2e-2, rtol=2e-2)):
        raise AssertionError(
            f"case1 mismatch vs reference, max abs diff = "
            f"{float(jnp.max(jnp.abs(y - y_ref)))}")

    # --- case 2: block boundaries (T=37 -> nb=3 with padding, B=11 -> B_pad=16,
    #             batch_split=2 exercises the parallel batch axis) -------------
    bs2, max_len2 = 11, 37
    inputs2 = _make_inputs(k2, bs2, max_len2, n_skill, n_diff, n_hints, n_time_used)
    y2 = kt_forward_pallas(params, *inputs2, max_len2, emb_dim, batch_split=2)
    y2 = jax.block_until_ready(y2)
    assert y2.shape == (bs2, max_len2), y2.shape
    y2_ref = kt_forward_reference(params, *inputs2, max_len2, emb_dim)
    # relaxed tolerance: default bf16-MXU precision compounds through the carry
    if not bool(jnp.allclose(y2, y2_ref, atol=5e-2, rtol=5e-2)):
        raise AssertionError(
            f"case2 mismatch vs reference, max abs diff = "
            f"{float(jnp.max(jnp.abs(y2 - y2_ref)))}")

    print("KERNEL_OK")
</pallas_src>

<mosaic_0001>
module attributes {stable_mosaic.version = 11 : i64} {
  func.func @_kt_fused_kernel(%arg0: i32, %arg1: i32, %arg2: memref<1x64x64xf32, #tpu.memory_space<vmem>>, %arg3: memref<1x64x32xf32, #tpu.memory_space<vmem>>, %arg4: memref<1x64x32xf32, #tpu.memory_space<vmem>>, %arg5: memref<64x32xf32, #tpu.memory_space<vmem>>, %arg6: memref<1x32xf32, #tpu.memory_space<vmem>>, %arg7: memref<32x32xf32, #tpu.memory_space<vmem>>, %arg8: memref<1x32xf32, #tpu.memory_space<vmem>>, %arg9: memref<32x32xf32, #tpu.memory_space<vmem>>, %arg10: memref<32x32xf32, #tpu.memory_space<vmem>>, %arg11: memref<32x96xf32, #tpu.memory_space<vmem>>, %arg12: memref<32x64xf32, #tpu.memory_space<vmem>>, %arg13: memref<32x128xf32, #tpu.memory_space<vmem>>, %arg14: memref<1x64xf32, #tpu.memory_space<vmem>>, %arg15: memref<1x64xf32, #tpu.memory_space<vmem>>, %arg16: memref<8x8xf32, #tpu.memory_space<vmem>>, %arg17: memref<8x32xf32, #tpu.memory_space<vmem>>, %arg18: memref<8x32xf32, #tpu.memory_space<vmem>>, %arg19: memref<8x8xf32, #tpu.memory_space<vmem>>, %arg20: memref<64x32xf32, #tpu.memory_space<vmem>>, %arg21: memref<64x32xf32, #tpu.memory_space<vmem>>, %arg22: memref<64x32xf32, #tpu.memory_space<vmem>>, %arg23: memref<64x32xf32, #tpu.memory_space<vmem>>) attributes {dimension_semantics = [#tpu.dimension_semantics<parallel>, #tpu.dimension_semantics<arbitrary>], iteration_bounds = array<i64: 1, 1>, scalar_prefetch = 0 : i64, scratch_operands = 7 : i64, tpu.core_type = #tpu.core_type<tc>, window_params = [{transform_indices = @transform_0, window_bounds = array<i64: 1, 64, 64>}, {transform_indices = @transform_1, window_bounds = array<i64: 1, 64, 32>}, {transform_indices = @transform_2, window_bounds = array<i64: 1, 64, 32>}, {pipeline_mode = #tpu.pipeline_mode<synchronous>, transform_indices = @transform_3, window_bounds = array<i64: 64, 32>}, {pipeline_mode = #tpu.pipeline_mode<synchronous>, transform_indices = @transform_4, window_bounds = array<i64: 1, 32>}, {pipeline_mode = #tpu.pipeline_mode<synchronous>, transform_indices = @transform_5, window_bounds = array<i64: 32, 32>}, {pipeline_mode = #tpu.pipeline_mode<synchronous>, transform_indices = @transform_6, window_bounds = array<i64: 1, 32>}, {pipeline_mode = #tpu.pipeline_mode<synchronous>, transform_indices = @transform_7, window_bounds = array<i64: 32, 32>}, {pipeline_mode = #tpu.pipeline_mode<synchronous>, transform_indices = @transform_8, window_bounds = array<i64: 32, 32>}, {pipeline_mode = #tpu.pipeline_mode<synchronous>, transform_indices = @transform_9, window_bounds = array<i64: 32, 96>}, {pipeline_mode = #tpu.pipeline_mode<synchronous>, transform_indices = @transform_10, window_bounds = array<i64: 32, 64>}, {pipeline_mode = #tpu.pipeline_mode<synchronous>, transform_indices = @transform_11, window_bounds = array<i64: 32, 128>}, {pipeline_mode = #tpu.pipeline_mode<synchronous>, transform_indices = @transform_12, window_bounds = array<i64: 1, 64>}, {pipeline_mode = #tpu.pipeline_mode<synchronous>, transform_indices = @transform_13, window_bounds = array<i64: 1, 64>}, {transform_indices = @transform_14, window_bounds = array<i64: 8, 8>}]} {
    %c0_i32 = arith.constant 0 : i32
    %0 = arith.cmpi eq, %arg1, %c0_i32 : i32
    %1 = arith.extui %0 : i1 to i32
    %c0_i32_0 = arith.constant 0 : i32
    %2 = arith.cmpi ne, %1, %c0_i32_0 : i32
    scf.if %2 {
      %cst_202 = arith.constant 0.000000e+00 : f32
      %623 = vector.broadcast %cst_202 : f32 to vector<8x32xf32>
      %c0_203 = arith.constant 0 : index
      %c0_204 = arith.constant 0 : index
      %624 = vector.load %arg17[%c0_203, %c0_204] : memref<8x32xf32, #tpu.memory_space<vmem>>, vector<8x32xf32>
      tpu.vector_store %arg17[%c0_203, %c0_204], %623 {strides = array<i32>} : memref<8x32xf32, #tpu.memory_space<vmem>>, vector<8x32xf32>,
      %cst_205 = arith.constant 0.000000e+00 : f32
      %625 = vector.broadcast %cst_205 : f32 to vector<8x32xf32>
      %c0_206 = arith.constant 0 : index
      %c0_207 = arith.constant 0 : index
      %626 = vector.load %arg18[%c0_206, %c0_207] : memref<8x32xf32, #tpu.memory_space<vmem>>, vector<8x32xf32>
      tpu.vector_store %arg18[%c0_206, %c0_207], %625 {strides = array<i32>} : memref<8x32xf32, #tpu.memory_space<vmem>>, vector<8x32xf32>,
      %cst_208 = arith.constant 0.000000e+00 : f32
      %627 = vector.broadcast %cst_208 : f32 to vector<8x8xf32>
      %c0_209 = arith.constant 0 : index
      %c0_210 = arith.constant 0 : index
      %628 = vector.load %arg19[%c0_209, %c0_210] : memref<8x8xf32, #tpu.memory_space<vmem>>, vector<8x8xf32>
      tpu.vector_store %arg19[%c0_209, %c0_210], %627 {strides = array<i32>} : memref<8x8xf32, #tpu.memory_space<vmem>>, vector<8x8xf32>,
    } else {
    }
    %c0 = arith.constant 0 : index
    %c0_1 = arith.constant 0 : index
    %c0_2 = arith.constant 0 : index
    %3 = vector.load %arg2[%c0, %c0_1, %c0_2] : memref<1x64x64xf32, #tpu.memory_space<vmem>>, vector<1x64x64xf32>
    %4 = vector.shape_cast %3 : vector<1x64x64xf32> to vector<64x64xf32>
    %c0_3 = arith.constant 0 : index
    %c0_4 = arith.constant 0 : index
    %5 = vector.load %arg5[%c0_3, %c0_4] : memref<64x32xf32, #tpu.memory_space<vmem>>, vector<64x32xf32>
    %cst = arith.constant dense<0.000000e+00> : vector<64x32xf32>
    %6 = tpu.matmul %4, %5, %cst {dimension_numbers = #tpu.dot_dimension_numbers<[1], [0], [0], [1], [0, 0, 1, 1], [], []>} : vector<64x64xf32>, vector<64x32xf32>, vector<64x32xf32> -> vector<64x32xf32>
    %c0_5 = arith.constant 0 : index
    %c0_6 = arith.constant 0 : index
    %7 = vector.load %arg6[%c0_5, %c0_6] : memref<1x32xf32, #tpu.memory_space<vmem>>, vector<1x32xf32>
    %8 = vector.broadcast %7 : vector<1x32xf32> to vector<64x32xf32>
    %9 = arith.addf %6, %8 : vector<64x32xf32>
    %c0_7 = arith.constant 0 : index
    %c0_8 = arith.constant 0 : index
    %10 = vector.load %arg20[%c0_7, %c0_8] : memref<64x32xf32, #tpu.memory_space<vmem>>, vector<64x32xf32>
    tpu.vector_store %arg20[%c0_7, %c0_8], %9 {strides = array<i32>} : memref<64x32xf32, #tpu.memory_space<vmem>>, vector<64x32xf32>,
    %c0_9 = arith.constant 0 : index
    %c0_10 = arith.constant 0 : index
    %11 = vector.load %arg7[%c0_9, %c0_10] : memref<32x32xf32, #tpu.memory_space<vmem>>, vector<32x32xf32>
    %cst_11 = arith.constant dense<0.000000e+00> : vector<64x32xf32>
    %12 = tpu.matmul %9, %11, %cst_11 {dimension_numbers = #tpu.dot_dimension_numbers<[1], [0], [0], [1], [0, 0, 1, 1], [], []>} : vector<64x32xf32>, vector<32x32xf32>, vector<64x32xf32> -> vector<64x32xf32>
    %c0_12 = arith.constant 0 : index
    %c0_13 = arith.constant 0 : index
    %13 = vector.load %arg8[%c0_12, %c0_13] : memref<1x32xf32, #tpu.memory_space<vmem>>, vector<1x32xf32>
    %14 = vector.broadcast %13 : vector<1x32xf32> to vector<64x32xf32>
    %15 = arith.addf %12, %14 : vector<64x32xf32>
    %c0_14 = arith.constant 0 : index
    %c0_15 = arith.constant 0 : index
    %16 = vector.load %arg21[%c0_14, %c0_15] : memref<64x32xf32, #tpu.memory_space<vmem>>, vector<64x32xf32>
    tpu.vector_store %arg21[%c0_14, %c0_15], %15 {strides = array<i32>} : memref<64x32xf32, #tpu.memory_space<vmem>>, vector<64x32xf32>,
    %c0_16 = arith.constant 0 : index
    %c0_17 = arith.constant 0 : index
    %c0_18 = arith.constant 0 : index
    %17 = vector.load %arg4[%c0_16, %c0_17, %c0_18] : memref<1x64x32xf32, #tpu.memory_space<vmem>>, vector<1x64x32xf32>
    %18 = vector.shape_cast %17 : vector<1x64x32xf32> to vector<64x32xf32>
    %c0_19 = arith.constant 0 : index
    %c0_20 = arith.constant 0 : index
    %19 = vector.load %arg9[%c0_19, %c0_20] : memref<32x32xf32, #tpu.memory_space<vmem>>, vector<32x32xf32>
    %cst_21 = arith.constant dense<0.000000e+00> : vector<64x32xf32>
    %20 = tpu.matmul %18, %19, %cst_21 {dimension_numbers = #tpu.dot_dimension_numbers<[1], [0], [0], [1], [0, 0, 1, 1], [], []>} : vector<64x32xf32>, vector<32x32xf32>, vector<64x32xf32> -> vector<64x32xf32>
    %c0_22 = arith.constant 0 : index
    %c0_23 = arith.constant 0 : index
    %21 = vector.load %arg22[%c0_22, %c0_23] : memref<64x32xf32, #tpu.memory_space<vmem>>, vector<64x32xf32>
    tpu.vector_store %arg22[%c0_22, %c0_23], %20 {strides = array<i32>} : memref<64x32xf32, #tpu.memory_space<vmem>>, vector<64x32xf32>,
    %c0_24 = arith.constant 0 : index
    %c0_25 = arith.constant 0 : index
    %c0_26 = arith.constant 0 : index
    %22 = vector.load %arg3[%c0_24, %c0_25, %c0_26] : memref<1x64x32xf32, #tpu.memory_space<vmem>>, vector<1x64x32xf32>
    %23 = vector.shape_cast %22 : vector<1x64x32xf32> to vector<64x32xf32>
    %c0_27 = arith.constant 0 : index
    %c0_28 = arith.constant 0 : index
    %24 = vector.load %arg10[%c0_27, %c0_28] : memref<32x32xf32, #tpu.memory_space<vmem>>, vector<32x32xf32>
    %cst_29 = arith.constant dense<0.000000e+00> : vector<64x32xf32>
    %25 = tpu.matmul %23, %24, %cst_29 {dimension_numbers = #tpu.dot_dimension_numbers<[1], [0], [0], [1], [0, 0, 1, 1], [], []>} : vector<64x32xf32>, vector<32x32xf32>, vector<64x32xf32> -> vector<64x32xf32>
    %c0_30 = arith.constant 0 : index
    %c0_31 = arith.constant 0 : index
    %26 = vector.load %arg23[%c0_30, %c0_31] : memref<64x32xf32, #tpu.memory_space<vmem>>, vector<64x32xf32>
    tpu.vector_store %arg23[%c0_30, %c0_31], %25 {strides = array<i32>} : memref<64x32xf32, #tpu.memory_space<vmem>>, vector<64x32xf32>,
    %c0_32 = arith.constant 0 : index
    %c0_33 = arith.constant 0 : index
    %27 = vector.load %arg11[%c0_32, %c0_33] : memref<32x96xf32, #tpu.memory_space<vmem>>, vector<32x96xf32>
    %c0_34 = arith.constant 0 : index
    %c0_35 = arith.constant 0 : index
    %28 = vector.load %arg12[%c0_34, %c0_35] : memref<32x64xf32, #tpu.memory_space<vmem>>, vector<32x64xf32>
    %c0_36 = arith.constant 0 : index
    %c0_37 = arith.constant 0 : index
    %29 = vector.load %arg13[%c0_36, %c0_37] : memref<32x128xf32, #tpu.memory_space<vmem>>, vector<32x128xf32>
    %c0_38 = arith.constant 0 : index
    %c0_39 = arith.constant 0 : index
    %30 = vector.load %arg14[%c0_38, %c0_39] : memref<1x64xf32, #tpu.memory_space<vmem>>, vector<1x64xf32>
    %31 = vector.shape_cast %30 : vector<1x64xf32> to vector<1x64xf32>
    %32 = vector.broadcast %31 : vector<1x64xf32> to vector<8x64xf32>
    %c0_40 = arith.constant 0 : index
    %c0_41 = arith.constant 0 : index
    %33 = vector.load %arg15[%c0_40, %c0_41] : memref<1x64xf32, #tpu.memory_space<vmem>>, vector<1x64xf32>
    %34 = vector.shape_cast %33 : vector<1x64xf32> to vector<1x64xf32>
    %35 = vector.broadcast %34 : vector<1x64xf32> to vector<8x64xf32>
    %c0_42 = arith.constant 0 : index
    %c0_43 = arith.constant 0 : index
    %36 = vector.load %arg17[%c0_42, %c0_43] : memref<8x32xf32, #tpu.memory_space<vmem>>, vector<8x32xf32>
    %c0_44 = arith.constant 0 : index
    %c0_45 = arith.constant 0 : index
    %37 = vector.load %arg18[%c0_44, %c0_45] : memref<8x32xf32, #tpu.memory_space<vmem>>, vector<8x32xf32>
    %c0_46 = arith.constant 0 : index
    %c0_47 = arith.constant 0 : index
    %38 = vector.load %arg19[%c0_46, %c0_47] : memref<8x8xf32, #tpu.memory_space<vmem>>, vector<8x8xf32>
    %39 = tpu.iota {dimensions = array<i32: 1>} : vector<8x8xi32>
    %c8_i32 = arith.constant 8 : i32
    %40 = arith.muli %arg1, %c8_i32 : i32
    %c0_48 = arith.constant 0 : index
    %c0_49 = arith.constant 0 : index
    %41 = vector.load %arg20[%c0_48, %c0_49] : memref<64x32xf32, #tpu.memory_space<vmem>>, vector<8x32xf32>
    %42 = arith.mulf %41, %36 : vector<8x32xf32>
    %cst_50 = arith.constant dense<0.000000e+00> : vector<8xf32>
    %43 = vector.multi_reduction <add>, %42, %cst_50 [1] : vector<8x32xf32> to vector<8xf32>
    %44 = vector.shape_cast %43 : vector<8xf32> to vector<8x1xf32>
    %45 = arith.negf %44 : vector<8x1xf32>
    %46 = math.exp %45 : vector<8x1xf32>
    %cst_51 = arith.constant 1.000000e+00 : f32
    %47 = vector.broadcast %cst_51 : f32 to vector<8x1xf32>
    %48 = arith.addf %47, %46 : vector<8x1xf32>
    %49 = arith.divf %47, %48 : vector<8x1xf32>
    %c0_i32_52 = arith.constant 0 : i32
    %50 = arith.addi %40, %c0_i32_52 : i32
    %51 = vector.broadcast %50 : i32 to vector<8x8xi32>
    %52 = arith.cmpi eq, %39, %51 : vector<8x8xi32>
    %53 = vector.shape_cast %49 : vector<8x1xf32> to vector<8x1xf32>
    %54 = vector.broadcast %53 : vector<8x1xf32> to vector<8x8xf32>
    %55 = arith.select %52, %54, %38 : vector<8x8xi1>, vector<8x8xf32>
    %56 = tpu.concatenate %36, %37 in 0 : vector<8x32xf32>, vector<8x32xf32> -> vector<16x32xf32>
    %cst_53 = arith.constant dense<0.000000e+00> : vector<16x96xf32>
    %57 = tpu.matmul %56, %27, %cst_53 {dimension_numbers = #tpu.dot_dimension_numbers<[1], [0], [0], [1], [0, 0, 1, 1], [], []>} : vector<16x32xf32>, vector<32x96xf32>, vector<16x96xf32> -> vector<16x96xf32>
    %58 = vector.extract_strided_slice %57 {offsets = [0, 0], sizes = [8, 64], strides = [1, 1]} : vector<16x96xf32> to vector<8x64xf32>
    %59 = vector.extract_strided_slice %57 {offsets = [8, 64], sizes = [8, 32], strides = [1, 1]} : vector<16x96xf32> to vector<8x32xf32>
    %c0_54 = arith.constant 0 : index
    %c0_55 = arith.constant 0 : index
    %60 = vector.load %arg21[%c0_54, %c0_55] : memref<64x32xf32, #tpu.memory_space<vmem>>, vector<8x32xf32>
    %61 = vector.extract_strided_slice %58 {offsets = [0, 0], sizes = [8, 32], strides = [1, 1]} : vector<8x64xf32> to vector<8x32xf32>
    %62 = arith.addf %60, %61 : vector<8x32xf32>
    %63 = vector.extract_strided_slice %58 {offsets = [0, 32], sizes = [8, 32], strides = [1, 1]} : vector<8x64xf32> to vector<8x32xf32>
    %cst_56 = arith.constant dense<0.000000e+00> : vector<8x64xf32>
    %64 = tpu.matmul %62, %28, %cst_56 {dimension_numbers = #tpu.dot_dimension_numbers<[1], [0], [0], [1], [0, 0, 1, 1], [], []>} : vector<8x32xf32>, vector<32x64xf32>, vector<8x64xf32> -> vector<8x64xf32>
    %c0_57 = arith.constant 0 : index
    %c0_58 = arith.constant 0 : index
    %65 = vector.load %arg22[%c0_57, %c0_58] : memref<64x32xf32, #tpu.memory_space<vmem>>, vector<8x32xf32>
    %66 = vector.extract_strided_slice %64 {offsets = [0, 0], sizes = [8, 32], strides = [1, 1]} : vector<8x64xf32> to vector<8x32xf32>
    %67 = arith.mulf %66, %59 : vector<8x32xf32>
    %cst_59 = arith.constant 0.176776692 : f32
    %68 = vector.broadcast %cst_59 : f32 to vector<8x32xf32>
    %69 = arith.mulf %67, %68 : vector<8x32xf32>
    %70 = arith.negf %69 : vector<8x32xf32>
    %71 = math.exp %70 : vector<8x32xf32>
    %cst_60 = arith.constant 1.000000e+00 : f32
    %72 = vector.broadcast %cst_60 : f32 to vector<8x32xf32>
    %73 = arith.addf %72, %71 : vector<8x32xf32>
    %74 = arith.divf %72, %73 : vector<8x32xf32>
    %75 = arith.mulf %65, %74 : vector<8x32xf32>
    %c0_61 = arith.constant 0 : index
    %c0_62 = arith.constant 0 : index
    %76 = vector.load %arg23[%c0_61, %c0_62] : memref<64x32xf32, #tpu.memory_space<vmem>>, vector<8x32xf32>
    %77 = vector.extract_strided_slice %64 {offsets = [0, 32], sizes = [8, 32], strides = [1, 1]} : vector<8x64xf32> to vector<8x32xf32>
    %78 = arith.mulf %77, %63 : vector<8x32xf32>
    %cst_63 = arith.constant 0.176776692 : f32
    %79 = vector.broadcast %cst_63 : f32 to vector<8x32xf32>
    %80 = arith.mulf %78, %79 : vector<8x32xf32>
    %81 = arith.negf %80 : vector<8x32xf32>
    %82 = math.exp %81 : vector<8x32xf32>
    %cst_64 = arith.constant 1.000000e+00 : f32
    %83 = vector.broadcast %cst_64 : f32 to vector<8x32xf32>
    %84 = arith.addf %83, %82 : vector<8x32xf32>
    %85 = arith.divf %83, %84 : vector<8x32xf32>
    %86 = arith.mulf %76, %85 : vector<8x32xf32>
    %87 = tpu.concatenate %75, %86 in 0 : vector<8x32xf32>, vector<8x32xf32> -> vector<16x32xf32>
    %cst_65 = arith.constant dense<0.000000e+00> : vector<16x128xf32>
    %88 = tpu.matmul %87, %29, %cst_65 {dimension_numbers = #tpu.dot_dimension_numbers<[1], [0], [0], [1], [0, 0, 1, 1], [], []>} : vector<16x32xf32>, vector<32x128xf32>, vector<16x128xf32> -> vector<16x128xf32>
    %89 = vector.extract_strided_slice %88 {offsets = [0, 0], sizes = [8, 64], strides = [1, 1]} : vector<16x128xf32> to vector<8x64xf32>
    %90 = arith.addf %89, %32 : vector<8x64xf32>
    %91 = vector.extract_strided_slice %88 {offsets = [8, 64], sizes = [8, 64], strides = [1, 1]} : vector<16x128xf32> to vector<8x64xf32>
    %92 = arith.addf %91, %35 : vector<8x64xf32>
    %93 = vector.extract_strided_slice %90 {offsets = [0, 0], sizes = [8, 32], strides = [1, 1]} : vector<8x64xf32> to vector<8x32xf32>
    %94 = math.tanh %93 : vector<8x32xf32>
    %95 = vector.extract_strided_slice %90 {offsets = [0, 32], sizes = [8, 32], strides = [1, 1]} : vector<8x64xf32> to vector<8x32xf32>
    %96 = arith.negf %95 : vector<8x32xf32>
    %97 = math.exp %96 : vector<8x32xf32>
    %cst_66 = arith.constant 1.000000e+00 : f32
    %98 = vector.broadcast %cst_66 : f32 to vector<8x32xf32>
    %99 = arith.addf %98, %97 : vector<8x32xf32>
    %100 = arith.divf %98, %99 : vector<8x32xf32>
    %101 = arith.mulf %94, %100 : vector<8x32xf32>
    %102 = arith.addf %101, %37 : vector<8x32xf32>
    %103 = vector.extract_strided_slice %92 {offsets = [0, 0], sizes = [8, 32], strides = [1, 1]} : vector<8x64xf32> to vector<8x32xf32>
    %104 = math.tanh %103 : vector<8x32xf32>
    %105 = vector.extract_strided_slice %92 {offsets = [0, 32], sizes = [8, 32], strides = [1, 1]} : vector<8x64xf32> to vector<8x32xf32>
    %106 = arith.negf %105 : vector<8x32xf32>
    %107 = math.exp %106 : vector<8x32xf32>
    %cst_67 = arith.constant 1.000000e+00 : f32
    %108 = vector.broadcast %cst_67 : f32 to vector<8x32xf32>
    %109 = arith.addf %108, %107 : vector<8x32xf32>
    %110 = arith.divf %108, %109 : vector<8x32xf32>
    %111 = arith.mulf %104, %110 : vector<8x32xf32>
    %112 = arith.addf %111, %102 : vector<8x32xf32>
    %c8 = arith.constant 8 : index
    %c0_68 = arith.constant 0 : index
    %113 = vector.load %arg20[%c8, %c0_68] : memref<64x32xf32, #tpu.memory_space<vmem>>, vector<8x32xf32>
    %114 = arith.mulf %113, %112 : vector<8x32xf32>
    %cst_69 = arith.constant dense<0.000000e+00> : vector<8xf32>
    %115 = vector.multi_reduction <add>, %114, %cst_69 [1] : vector<8x32xf32> to vector<8xf32>
    %116 = vector.shape_cast %115 : vector<8xf32> to vector<8x1xf32>
    %117 = arith.negf %116 : vector<8x1xf32>
    %118 = math.exp %117 : vector<8x1xf32>
    %cst_70 = arith.constant 1.000000e+00 : f32
    %119 = vector.broadcast %cst_70 : f32 to vector<8x1xf32>
    %120 = arith.addf %119, %118 : vector<8x1xf32>
    %121 = arith.divf %119, %120 : vector<8x1xf32>
    %c1_i32 = arith.constant 1 : i32
    %122 = arith.addi %40, %c1_i32 : i32
    %123 = vector.broadcast %122 : i32 to vector<8x8xi32>
    %124 = arith.cmpi eq, %39, %123 : vector<8x8xi32>
    %125 = vector.shape_cast %121 : vector<8x1xf32> to vector<8x1xf32>
    %126 = vector.broadcast %125 : vector<8x1xf32> to vector<8x8xf32>
    %127 = arith.select %124, %126, %55 : vector<8x8xi1>, vector<8x8xf32>
    %128 = tpu.concatenate %112, %102 in 0 : vector<8x32xf32>, vector<8x32xf32> -> vector<16x32xf32>
    %cst_71 = arith.constant dense<0.000000e+00> : vector<16x96xf32>
    %129 = tpu.matmul %128, %27, %cst_71 {dimension_numbers = #tpu.dot_dimension_numbers<[1], [0], [0], [1], [0, 0, 1, 1], [], []>} : vector<16x32xf32>, vector<32x96xf32>, vector<16x96xf32> -> vector<16x96xf32>
    %130 = vector.extract_strided_slice %129 {offsets = [0, 0], sizes = [8, 64], strides = [1, 1]} : vector<16x96xf32> to vector<8x64xf32>
    %131 = vector.extract_strided_slice %129 {offsets = [8, 64], sizes = [8, 32], strides = [1, 1]} : vector<16x96xf32> to vector<8x32xf32>
    %c8_72 = arith.constant 8 : index
    %c0_73 = arith.constant 0 : index
    %132 = vector.load %arg21[%c8_72, %c0_73] : memref<64x32xf32, #tpu.memory_space<vmem>>, vector<8x32xf32>
    %133 = vector.extract_strided_slice %130 {offsets = [0, 0], sizes = [8, 32], strides = [1, 1]} : vector<8x64xf32> to vector<8x32xf32>
    %134 = arith.addf %132, %133 : vector<8x32xf32>
    %135 = vector.extract_strided_slice %130 {offsets = [0, 32], sizes = [8, 32], strides = [1, 1]} : vector<8x64xf32> to vector<8x32xf32>
    %cst_74 = arith.constant dense<0.000000e+00> : vector<8x64xf32>
    %136 = tpu.matmul %134, %28, %cst_74 {dimension_numbers = #tpu.dot_dimension_numbers<[1], [0], [0], [1], [0, 0, 1, 1], [], []>} : vector<8x32xf32>, vector<32x64xf32>, vector<8x64xf32> -> vector<8x64xf32>
    %c8_75 = arith.constant 8 : index
    %c0_76 = arith.constant 0 : index
    %137 = vector.load %arg22[%c8_75, %c0_76] : memref<64x32xf32, #tpu.memory_space<vmem>>, vector<8x32xf32>
    %138 = vector.extract_strided_slice %136 {offsets = [0, 0], sizes = [8, 32], strides = [1, 1]} : vector<8x64xf32> to vector<8x32xf32>
    %139 = arith.mulf %138, %131 : vector<8x32xf32>
    %cst_77 = arith.constant 0.176776692 : f32
    %140 = vector.broadcast %cst_77 : f32 to vector<8x32xf32>
    %141 = arith.mulf %139, %140 : vector<8x32xf32>
    %142 = arith.negf %141 : vector<8x32xf32>
    %143 = math.exp %142 : vector<8x32xf32>
    %cst_78 = arith.constant 1.000000e+00 : f32
    %144 = vector.broadcast %cst_78 : f32 to vector<8x32xf32>
    %145 = arith.addf %144, %143 : vector<8x32xf32>
    %146 = arith.divf %144, %145 : vector<8x32xf32>
    %147 = arith.mulf %137, %146 : vector<8x32xf32>
    %c8_79 = arith.constant 8 : index
    %c0_80 = arith.constant 0 : index
    %148 = vector.load %arg23[%c8_79, %c0_80] : memref<64x32xf32, #tpu.memory_space<vmem>>, vector<8x32xf32>
    %149 = vector.extract_strided_slice %136 {offsets = [0, 32], sizes = [8, 32], strides = [1, 1]} : vector<8x64xf32> to vector<8x32xf32>
    %150 = arith.mulf %149, %135 : vector<8x32xf32>
    %cst_81 = arith.constant 0.176776692 : f32
    %151 = vector.broadcast %cst_81 : f32 to vector<8x32xf32>
    %152 = arith.mulf %150, %151 : vector<8x32xf32>
    %153 = arith.negf %152 : vector<8x32xf32>
    %154 = math.exp %153 : vector<8x32xf32>
    %cst_82 = arith.constant 1.000000e+00 : f32
    %155 = vector.broadcast %cst_82 : f32 to vector<8x32xf32>
    %156 = arith.addf %155, %154 : vector<8x32xf32>
    %157 = arith.divf %155, %156 : vector<8x32xf32>
    %158 = arith.mulf %148, %157 : vector<8x32xf32>
    %159 = tpu.concatenate %147, %158 in 0 : vector<8x32xf32>, vector<8x32xf32> -> vector<16x32xf32>
    %cst_83 = arith.constant dense<0.000000e+00> : vector<16x128xf32>
    %160 = tpu.matmul %159, %29, %cst_83 {dimension_numbers = #tpu.dot_dimension_numbers<[1], [0], [0], [1], [0, 0, 1, 1], [], []>} : vector<16x32xf32>, vector<32x128xf32>, vector<16x128xf32> -> vector<16x128xf32>
    %161 = vector.extract_strided_slice %160 {offsets = [0, 0], sizes = [8, 64], strides = [1, 1]} : vector<16x128xf32> to vector<8x64xf32>
    %162 = arith.addf %161, %32 : vector<8x64xf32>
    %163 = vector.extract_strided_slice %160 {offsets = [8, 64], sizes = [8, 64], strides = [1, 1]} : vector<16x128xf32> to vector<8x64xf32>
    %164 = arith.addf %163, %35 : vector<8x64xf32>
    %165 = vector.extract_strided_slice %162 {offsets = [0, 0], sizes = [8, 32], strides = [1, 1]} : vector<8x64xf32> to vector<8x32xf32>
    %166 = math.tanh %165 : vector<8x32xf32>
    %167 = vector.extract_strided_slice %162 {offsets = [0, 32], sizes = [8, 32], strides = [1, 1]} : vector<8x64xf32> to vector<8x32xf32>
    %168 = arith.negf %167 : vector<8x32xf32>
    %169 = math.exp %168 : vector<8x32xf32>
    %cst_84 = arith.constant 1.000000e+00 : f32
    %170 = vector.broadcast %cst_84 : f32 to vector<8x32xf32>
    %171 = arith.addf %170, %169 : vector<8x32xf32>
    %172 = arith.divf %170, %171 : vector<8x32xf32>
    %173 = arith.mulf %166, %172 : vector<8x32xf32>
    %174 = arith.addf %173, %102 : vector<8x32xf32>
    %175 = vector.extract_strided_slice %164 {offsets = [0, 0], sizes = [8, 32], strides = [1, 1]} : vector<8x64xf32> to vector<8x32xf32>
    %176 = math.tanh %175 : vector<8x32xf32>
    %177 = vector.extract_strided_slice %164 {offsets = [0, 32], sizes = [8, 32], strides = [1, 1]} : vector<8x64xf32> to vector<8x32xf32>
    %178 = arith.negf %177 : vector<8x32xf32>
    %179 = math.exp %178 : vector<8x32xf32>
    %cst_85 = arith.constant 1.000000e+00 : f32
    %180 = vector.broadcast %cst_85 : f32 to vector<8x32xf32>
    %181 = arith.addf %180, %179 : vector<8x32xf32>
    %182 = arith.divf %180, %181 : vector<8x32xf32>
    %183 = arith.mulf %176, %182 : vector<8x32xf32>
    %184 = arith.addf %183, %174 : vector<8x32xf32>
    %c16 = arith.constant 16 : index
    %c0_86 = arith.constant 0 : index
    %185 = vector.load %arg20[%c16, %c0_86] : memref<64x32xf32, #tpu.memory_space<vmem>>, vector<8x32xf32>
    %186 = arith.mulf %185, %184 : vector<8x32xf32>
    %cst_87 = arith.constant dense<0.000000e+00> : vector<8xf32>
    %187 = vector.multi_reduction <add>, %186, %cst_87 [1] : vector<8x32xf32> to vector<8xf32>
    %188 = vector.shape_cast %187 : vector<8xf32> to vector<8x1xf32>
    %189 = arith.negf %188 : vector<8x1xf32>
    %190 = math.exp %189 : vector<8x1xf32>
    %cst_88 = arith.constant 1.000000e+00 : f32
    %191 = vector.broadcast %cst_88 : f32 to vector<8x1xf32>
    %192 = arith.addf %191, %190 : vector<8x1xf32>
    %193 = arith.divf %191, %192 : vector<8x1xf32>
    %c2_i32 = arith.constant 2 : i32
    %194 = arith.addi %40, %c2_i32 : i32
    %195 = vector.broadcast %194 : i32 to vector<8x8xi32>
    %196 = arith.cmpi eq, %39, %195 : vector<8x8xi32>
    %197 = vector.shape_cast %193 : vector<8x1xf32> to vector<8x1xf32>
    %198 = vector.broadcast %197 : vector<8x1xf32> to vector<8x8xf32>
    %199 = arith.select %196, %198, %127 : vector<8x8xi1>, vector<8x8xf32>
    %200 = tpu.concatenate %184, %174 in 0 : vector<8x32xf32>, vector<8x32xf32> -> vector<16x32xf32>
    %cst_89 = arith.constant dense<0.000000e+00> : vector<16x96xf32>
    %201 = tpu.matmul %200, %27, %cst_89 {dimension_numbers = #tpu.dot_dimension_numbers<[1], [0], [0], [1], [0, 0, 1, 1], [], []>} : vector<16x32xf32>, vector<32x96xf32>, vector<16x96xf32> -> vector<16x96xf32>
    %202 = vector.extract_strided_slice %201 {offsets = [0, 0], sizes = [8, 64], strides = [1, 1]} : vector<16x96xf32> to vector<8x64xf32>
    %203 = vector.extract_strided_slice %201 {offsets = [8, 64], sizes = [8, 32], strides = [1, 1]} : vector<16x96xf32> to vector<8x32xf32>
    %c16_90 = arith.constant 16 : index
    %c0_91 = arith.constant 0 : index
    %204 = vector.load %arg21[%c16_90, %c0_91] : memref<64x32xf32, #tpu.memory_space<vmem>>, vector<8x32xf32>
    %205 = vector.extract_strided_slice %202 {offsets = [0, 0], sizes = [8, 32], strides = [1, 1]} : vector<8x64xf32> to vector<8x32xf32>
    %206 = arith.addf %204, %205 : vector<8x32xf32>
    %207 = vector.extract_strided_slice %202 {offsets = [0, 32], sizes = [8, 32], strides = [1, 1]} : vector<8x64xf32> to vector<8x32xf32>
    %cst_92 = arith.constant dense<0.000000e+00> : vector<8x64xf32>
    %208 = tpu.matmul %206, %28, %cst_92 {dimension_numbers = #tpu.dot_dimension_numbers<[1], [0], [0], [1], [0, 0, 1, 1], [], []>} : vector<8x32xf32>, vector<32x64xf32>, vector<8x64xf32> -> vector<8x64xf32>
    %c16_93 = arith.constant 16 : index
    %c0_94 = arith.constant 0 : index
    %209 = vector.load %arg22[%c16_93, %c0_94] : memref<64x32xf32, #tpu.memory_space<vmem>>, vector<8x32xf32>
    %210 = vector.extract_strided_slice %208 {offsets = [0, 0], sizes = [8, 32], strides = [1, 1]} : vector<8x64xf32> to vector<8x32xf32>
    %211 = arith.mulf %210, %203 : vector<8x32xf32>
    %cst_95 = arith.constant 0.176776692 : f32
    %212 = vector.broadcast %cst_95 : f32 to vector<8x32xf32>
    %213 = arith.mulf %211, %212 : vector<8x32xf32>
    %214 = arith.negf %213 : vector<8x32xf32>
    %215 = math.exp %214 : vector<8x32xf32>
    %cst_96 = arith.constant 1.000000e+00 : f32
    %216 = vector.broadcast %cst_96 : f32 to vector<8x32xf32>
    %217 = arith.addf %216, %215 : vector<8x32xf32>
    %218 = arith.divf %216, %217 : vector<8x32xf32>
    %219 = arith.mulf %209, %218 : vector<8x32xf32>
    %c16_97 = arith.constant 16 : index
    %c0_98 = arith.constant 0 : index
    %220 = vector.load %arg23[%c16_97, %c0_98] : memref<64x32xf32, #tpu.memory_space<vmem>>, vector<8x32xf32>
    %221 = vector.extract_strided_slice %208 {offsets = [0, 32], sizes = [8, 32], strides = [1, 1]} : vector<8x64xf32> to vector<8x32xf32>
    %222 = arith.mulf %221, %207 : vector<8x32xf32>
    %cst_99 = arith.constant 0.176776692 : f32
    %223 = vector.broadcast %cst_99 : f32 to vector<8x32xf32>
    %224 = arith.mulf %222, %223 : vector<8x32xf32>
    %225 = arith.negf %224 : vector<8x32xf32>
    %226 = math.exp %225 : vector<8x32xf32>
    %cst_100 = arith.constant 1.000000e+00 : f32
    %227 = vector.broadcast %cst_100 : f32 to vector<8x32xf32>
    %228 = arith.addf %227, %226 : vector<8x32xf32>
    %229 = arith.divf %227, %228 : vector<8x32xf32>
    %230 = arith.mulf %220, %229 : vector<8x32xf32>
    %231 = tpu.concatenate %219, %230 in 0 : vector<8x32xf32>, vector<8x32xf32> -> vector<16x32xf32>
    %cst_101 = arith.constant dense<0.000000e+00> : vector<16x128xf32>
    %232 = tpu.matmul %231, %29, %cst_101 {dimension_numbers = #tpu.dot_dimension_numbers<[1], [0], [0], [1], [0, 0, 1, 1], [], []>} : vector<16x32xf32>, vector<32x128xf32>, vector<16x128xf32> -> vector<16x128xf32>
    %233 = vector.extract_strided_slice %232 {offsets = [0, 0], sizes = [8, 64], strides = [1, 1]} : vector<16x128xf32> to vector<8x64xf32>
    %234 = arith.addf %233, %32 : vector<8x64xf32>
    %235 = vector.extract_strided_slice %232 {offsets = [8, 64], sizes = [8, 64], strides = [1, 1]} : vector<16x128xf32> to vector<8x64xf32>
    %236 = arith.addf %235, %35 : vector<8x64xf32>
    %237 = vector.extract_strided_slice %234 {offsets = [0, 0], sizes = [8, 32], strides = [1, 1]} : vector<8x64xf32> to vector<8x32xf32>
    %238 = math.tanh %237 : vector<8x32xf32>
    %239 = vector.extract_strided_slice %234 {offsets = [0, 32], sizes = [8, 32], strides = [1, 1]} : vector<8x64xf32> to vector<8x32xf32>
    %240 = arith.negf %239 : vector<8x32xf32>
    %241 = math.exp %240 : vector<8x32xf32>
    %cst_102 = arith.constant 1.000000e+00 : f32
    %242 = vector.broadcast %cst_102 : f32 to vector<8x32xf32>
    %243 = arith.addf %242, %241 : vector<8x32xf32>
    %244 = arith.divf %242, %243 : vector<8x32xf32>
    %245 = arith.mulf %238, %244 : vector<8x32xf32>
    %246 = arith.addf %245, %174 : vector<8x32xf32>
    %247 = vector.extract_strided_slice %236 {offsets = [0, 0], sizes = [8, 32], strides = [1, 1]} : vector<8x64xf32> to vector<8x32xf32>
    %248 = math.tanh %247 : vector<8x32xf32>
    %249 = vector.extract_strided_slice %236 {offsets = [0, 32], sizes = [8, 32], strides = [1, 1]} : vector<8x64xf32> to vector<8x32xf32>
    %250 = arith.negf %249 : vector<8x32xf32>
    %251 = math.exp %250 : vector<8x32xf32>
    %cst_103 = arith.constant 1.000000e+00 : f32
    %252 = vector.broadcast %cst_103 : f32 to vector<8x32xf32>
    %253 = arith.addf %252, %251 : vector<8x32xf32>
    %254 = arith.divf %252, %253 : vector<8x32xf32>
    %255 = arith.mulf %248, %254 : vector<8x32xf32>
    %256 = arith.addf %255, %246 : vector<8x32xf32>
    %c24 = arith.constant 24 : index
    %c0_104 = arith.constant 0 : index
    %257 = vector.load %arg20[%c24, %c0_104] : memref<64x32xf32, #tpu.memory_space<vmem>>, vector<8x32xf32>
    %258 = arith.mulf %257, %256 : vector<8x32xf32>
    %cst_105 = arith.constant dense<0.000000e+00> : vector<8xf32>
    %259 = vector.multi_reduction <add>, %258, %cst_105 [1] : vector<8x32xf32> to vector<8xf32>
    %260 = vector.shape_cast %259 : vector<8xf32> to vector<8x1xf32>
    %261 = arith.negf %260 : vector<8x1xf32>
    %262 = math.exp %261 : vector<8x1xf32>
    %cst_106 = arith.constant 1.000000e+00 : f32
    %263 = vector.broadcast %cst_106 : f32 to vector<8x1xf32>
    %264 = arith.addf %263, %262 : vector<8x1xf32>
    %265 = arith.divf %263, %264 : vector<8x1xf32>
    %c3_i32 = arith.constant 3 : i32
    %266 = arith.addi %40, %c3_i32 : i32
    %267 = vector.broadcast %266 : i32 to vector<8x8xi32>
    %268 = arith.cmpi eq, %39, %267 : vector<8x8xi32>
    %269 = vector.shape_cast %265 : vector<8x1xf32> to vector<8x1xf32>
    %270 = vector.broadcast %269 : vector<8x1xf32> to vector<8x8xf32>
    %271 = arith.select %268, %270, %199 : vector<8x8xi1>, vector<8x8xf32>
    %272 = tpu.concatenate %256, %246 in 0 : vector<8x32xf32>, vector<8x32xf32> -> vector<16x32xf32>
    %cst_107 = arith.constant dense<0.000000e+00> : vector<16x96xf32>
    %273 = tpu.matmul %272, %27, %cst_107 {dimension_numbers = #tpu.dot_dimension_numbers<[1], [0], [0], [1], [0, 0, 1, 1], [], []>} : vector<16x32xf32>, vector<32x96xf32>, vector<16x96xf32> -> vector<16x96xf32>
    %274 = vector.extract_strided_slice %273 {offsets = [0, 0], sizes = [8, 64], strides = [1, 1]} : vector<16x96xf32> to vector<8x64xf32>
    %275 = vector.extract_strided_slice %273 {offsets = [8, 64], sizes = [8, 32], strides = [1, 1]} : vector<16x96xf32> to vector<8x32xf32>
    %c24_108 = arith.constant 24 : index
    %c0_109 = arith.constant 0 : index
    %276 = vector.load %arg21[%c24_108, %c0_109] : memref<64x32xf32, #tpu.memory_space<vmem>>, vector<8x32xf32>
    %277 = vector.extract_strided_slice %274 {offsets = [0, 0], sizes = [8, 32], strides = [1, 1]} : vector<8x64xf32> to vector<8x32xf32>
    %278 = arith.addf %276, %277 : vector<8x32xf32>
    %279 = vector.extract_strided_slice %274 {offsets = [0, 32], sizes = [8, 32], strides = [1, 1]} : vector<8x64xf32> to vector<8x32xf32>
    %cst_110 = arith.constant dense<0.000000e+00> : vector<8x64xf32>
    %280 = tpu.matmul %278, %28, %cst_110 {dimension_numbers = #tpu.dot_dimension_numbers<[1], [0], [0], [1], [0, 0, 1, 1], [], []>} : vector<8x32xf32>, vector<32x64xf32>, vector<8x64xf32> -> vector<8x64xf32>
    %c24_111 = arith.constant 24 : index
    %c0_112 = arith.constant 0 : index
    %281 = vector.load %arg22[%c24_111, %c0_112] : memref<64x32xf32, #tpu.memory_space<vmem>>, vector<8x32xf32>
    %282 = vector.extract_strided_slice %280 {offsets = [0, 0], sizes = [8, 32], strides = [1, 1]} : vector<8x64xf32> to vector<8x32xf32>
    %283 = arith.mulf %282, %275 : vector<8x32xf32>
    %cst_113 = arith.constant 0.176776692 : f32
    %284 = vector.broadcast %cst_113 : f32 to vector<8x32xf32>
    %285 = arith.mulf %283, %284 : vector<8x32xf32>
    %286 = arith.negf %285 : vector<8x32xf32>
    %287 = math.exp %286 : vector<8x32xf32>
    %cst_114 = arith.constant 1.000000e+00 : f32
    %288 = vector.broadcast %cst_114 : f32 to vector<8x32xf32>
    %289 = arith.addf %288, %287 : vector<8x32xf32>
    %290 = arith.divf %288, %289 : vector<8x32xf32>
    %291 = arith.mulf %281, %290 : vector<8x32xf32>
    %c24_115 = arith.constant 24 : index
    %c0_116 = arith.constant 0 : index
    %292 = vector.load %arg23[%c24_115, %c0_116] : memref<64x32xf32, #tpu.memory_space<vmem>>, vector<8x32xf32>
    %293 = vector.extract_strided_slice %280 {offsets = [0, 32], sizes = [8, 32], strides = [1, 1]} : vector<8x64xf32> to vector<8x32xf32>
    %294 = arith.mulf %293, %279 : vector<8x32xf32>
    %cst_117 = arith.constant 0.176776692 : f32
    %295 = vector.broadcast %cst_117 : f32 to vector<8x32xf32>
    %296 = arith.mulf %294, %295 : vector<8x32xf32>
    %297 = arith.negf %296 : vector<8x32xf32>
    %298 = math.exp %297 : vector<8x32xf32>
    %cst_118 = arith.constant 1.000000e+00 : f32
    %299 = vector.broadcast %cst_118 : f32 to vector<8x32xf32>
    %300 = arith.addf %299, %298 : vector<8x32xf32>
    %301 = arith.divf %299, %300 : vector<8x32xf32>
    %302 = arith.mulf %292, %301 : vector<8x32xf32>
    %303 = tpu.concatenate %291, %302 in 0 : vector<8x32xf32>, vector<8x32xf32> -> vector<16x32xf32>
    %cst_119 = arith.constant dense<0.000000e+00> : vector<16x128xf32>
    %304 = tpu.matmul %303, %29, %cst_119 {dimension_numbers = #tpu.dot_dimension_numbers<[1], [0], [0], [1], [0, 0, 1, 1], [], []>} : vector<16x32xf32>, vector<32x128xf32>, vector<16x128xf32> -> vector<16x128xf32>
    %305 = vector.extract_strided_slice %304 {offsets = [0, 0], sizes = [8, 64], strides = [1, 1]} : vector<16x128xf32> to vector<8x64xf32>
    %306 = arith.addf %305, %32 : vector<8x64xf32>
    %307 = vector.extract_strided_slice %304 {offsets = [8, 64], sizes = [8, 64], strides = [1, 1]} : vector<16x128xf32> to vector<8x64xf32>
    %308 = arith.addf %307, %35 : vector<8x64xf32>
    %309 = vector.extract_strided_slice %306 {offsets = [0, 0], sizes = [8, 32], strides = [1, 1]} : vector<8x64xf32> to vector<8x32xf32>
    %310 = math.tanh %309 : vector<8x32xf32>
    %311 = vector.extract_strided_slice %306 {offsets = [0, 32], sizes = [8, 32], strides = [1, 1]} : vector<8x64xf32> to vector<8x32xf32>
    %312 = arith.negf %311 : vector<8x32xf32>
    %313 = math.exp %312 : vector<8x32xf32>
    %cst_120 = arith.constant 1.000000e+00 : f32
    %314 = vector.broadcast %cst_120 : f32 to vector<8x32xf32>
    %315 = arith.addf %314, %313 : vector<8x32xf32>
    %316 = arith.divf %314, %315 : vector<8x32xf32>
    %317 = arith.mulf %310, %316 : vector<8x32xf32>
    %318 = arith.addf %317, %246 : vector<8x32xf32>
    %319 = vector.extract_strided_slice %308 {offsets = [0, 0], sizes = [8, 32], strides = [1, 1]} : vector<8x64xf32> to vector<8x32xf32>
    %320 = math.tanh %319 : vector<8x32xf32>
    %321 = vector.extract_strided_slice %308 {offsets = [0, 32], sizes = [8, 32], strides = [1, 1]} : vector<8x64xf32> to vector<8x32xf32>
    %322 = arith.negf %321 : vector<8x32xf32>
    %323 = math.exp %322 : vector<8x32xf32>
    %cst_121 = arith.constant 1.000000e+00 : f32
    %324 = vector.broadcast %cst_121 : f32 to vector<8x32xf32>
    %325 = arith.addf %324, %323 : vector<8x32xf32>
    %326 = arith.divf %324, %325 : vector<8x32xf32>
    %327 = arith.mulf %320, %326 : vector<8x32xf32>
    %328 = arith.addf %327, %318 : vector<8x32xf32>
    %c32 = arith.constant 32 : index
    %c0_122 = arith.constant 0 : index
    %329 = vector.load %arg20[%c32, %c0_122] : memref<64x32xf32, #tpu.memory_space<vmem>>, vector<8x32xf32>
    %330 = arith.mulf %329, %328 : vector<8x32xf32>
    %cst_123 = arith.constant dense<0.000000e+00> : vector<8xf32>
    %331 = vector.multi_reduction <add>, %330, %cst_123 [1] : vector<8x32xf32> to vector<8xf32>
    %332 = vector.shape_cast %331 : vector<8xf32> to vector<8x1xf32>
    %333 = arith.negf %332 : vector<8x1xf32>
    %334 = math.exp %333 : vector<8x1xf32>
    %cst_124 = arith.constant 1.000000e+00 : f32
    %335 = vector.broadcast %cst_124 : f32 to vector<8x1xf32>
    %336 = arith.addf %335, %334 : vector<8x1xf32>
    %337 = arith.divf %335, %336 : vector<8x1xf32>
    %c4_i32 = arith.constant 4 : i32
    %338 = arith.addi %40, %c4_i32 : i32
    %339 = vector.broadcast %338 : i32 to vector<8x8xi32>
    %340 = arith.cmpi eq, %39, %339 : vector<8x8xi32>
    %341 = vector.shape_cast %337 : vector<8x1xf32> to vector<8x1xf32>
    %342 = vector.broadcast %341 : vector<8x1xf32> to vector<8x8xf32>
    %343 = arith.select %340, %342, %271 : vector<8x8xi1>, vector<8x8xf32>
    %344 = tpu.concatenate %328, %318 in 0 : vector<8x32xf32>, vector<8x32xf32> -> vector<16x32xf32>
    %cst_125 = arith.constant dense<0.000000e+00> : vector<16x96xf32>
    %345 = tpu.matmul %344, %27, %cst_125 {dimension_numbers = #tpu.dot_dimension_numbers<[1], [0], [0], [1], [0, 0, 1, 1], [], []>} : vector<16x32xf32>, vector<32x96xf32>, vector<16x96xf32> -> vector<16x96xf32>
    %346 = vector.extract_strided_slice %345 {offsets = [0, 0], sizes = [8, 64], strides = [1, 1]} : vector<16x96xf32> to vector<8x64xf32>
    %347 = vector.extract_strided_slice %345 {offsets = [8, 64], sizes = [8, 32], strides = [1, 1]} : vector<16x96xf32> to vector<8x32xf32>
    %c32_126 = arith.constant 32 : index
    %c0_127 = arith.constant 0 : index
    %348 = vector.load %arg21[%c32_126, %c0_127] : memref<64x32xf32, #tpu.memory_space<vmem>>, vector<8x32xf32>
    %349 = vector.extract_strided_slice %346 {offsets = [0, 0], sizes = [8, 32], strides = [1, 1]} : vector<8x64xf32> to vector<8x32xf32>
    %350 = arith.addf %348, %349 : vector<8x32xf32>
    %351 = vector.extract_strided_slice %346 {offsets = [0, 32], sizes = [8, 32], strides = [1, 1]} : vector<8x64xf32> to vector<8x32xf32>
    %cst_128 = arith.constant dense<0.000000e+00> : vector<8x64xf32>
    %352 = tpu.matmul %350, %28, %cst_128 {dimension_numbers = #tpu.dot_dimension_numbers<[1], [0], [0], [1], [0, 0, 1, 1], [], []>} : vector<8x32xf32>, vector<32x64xf32>, vector<8x64xf32> -> vector<8x64xf32>
    %c32_129 = arith.constant 32 : index
    %c0_130 = arith.constant 0 : index
    %353 = vector.load %arg22[%c32_129, %c0_130] : memref<64x32xf32, #tpu.memory_space<vmem>>, vector<8x32xf32>
    %354 = vector.extract_strided_slice %352 {offsets = [0, 0], sizes = [8, 32], strides = [1, 1]} : vector<8x64xf32> to vector<8x32xf32>
    %355 = arith.mulf %354, %347 : vector<8x32xf32>
    %cst_131 = arith.constant 0.176776692 : f32
    %356 = vector.broadcast %cst_131 : f32 to vector<8x32xf32>
    %357 = arith.mulf %355, %356 : vector<8x32xf32>
    %358 = arith.negf %357 : vector<8x32xf32>
    %359 = math.exp %358 : vector<8x32xf32>
    %cst_132 = arith.constant 1.000000e+00 : f32
    %360 = vector.broadcast %cst_132 : f32 to vector<8x32xf32>
    %361 = arith.addf %360, %359 : vector<8x32xf32>
    %362 = arith.divf %360, %361 : vector<8x32xf32>
    %363 = arith.mulf %353, %362 : vector<8x32xf32>
    %c32_133 = arith.constant 32 : index
    %c0_134 = arith.constant 0 : index
    %364 = vector.load %arg23[%c32_133, %c0_134] : memref<64x32xf32, #tpu.memory_space<vmem>>, vector<8x32xf32>
    %365 = vector.extract_strided_slice %352 {offsets = [0, 32], sizes = [8, 32], strides = [1, 1]} : vector<8x64xf32> to vector<8x32xf32>
    %366 = arith.mulf %365, %351 : vector<8x32xf32>
    %cst_135 = arith.constant 0.176776692 : f32
    %367 = vector.broadcast %cst_135 : f32 to vector<8x32xf32>
    %368 = arith.mulf %366, %367 : vector<8x32xf32>
    %369 = arith.negf %368 : vector<8x32xf32>
    %370 = math.exp %369 : vector<8x32xf32>
    %cst_136 = arith.constant 1.000000e+00 : f32
    %371 = vector.broadcast %cst_136 : f32 to vector<8x32xf32>
    %372 = arith.addf %371, %370 : vector<8x32xf32>
    %373 = arith.divf %371, %372 : vector<8x32xf32>
    %374 = arith.mulf %364, %373 : vector<8x32xf32>
    %375 = tpu.concatenate %363, %374 in 0 : vector<8x32xf32>, vector<8x32xf32> -> vector<16x32xf32>
    %cst_137 = arith.constant dense<0.000000e+00> : vector<16x128xf32>
    %376 = tpu.matmul %375, %29, %cst_137 {dimension_numbers = #tpu.dot_dimension_numbers<[1], [0], [0], [1], [0, 0, 1, 1], [], []>} : vector<16x32xf32>, vector<32x128xf32>, vector<16x128xf32> -> vector<16x128xf32>
    %377 = vector.extract_strided_slice %376 {offsets = [0, 0], sizes = [8, 64], strides = [1, 1]} : vector<16x128xf32> to vector<8x64xf32>
    %378 = arith.addf %377, %32 : vector<8x64xf32>
    %379 = vector.extract_strided_slice %376 {offsets = [8, 64], sizes = [8, 64], strides = [1, 1]} : vector<16x128xf32> to vector<8x64xf32>
    %380 = arith.addf %379, %35 : vector<8x64xf32>
    %381 = vector.extract_strided_slice %378 {offsets = [0, 0], sizes = [8, 32], strides = [1, 1]} : vector<8x64xf32> to vector<8x32xf32>
    %382 = math.tanh %381 : vector<8x32xf32>
    %383 = vector.extract_strided_slice %378 {offsets = [0, 32], sizes = [8, 32], strides = [1, 1]} : vector<8x64xf32> to vector<8x32xf32>
    %384 = arith.negf %383 : vector<8x32xf32>
    %385 = math.exp %384 : vector<8x32xf32>
    %cst_138 = arith.constant 1.000000e+00 : f32
    %386 = vector.broadcast %cst_138 : f32 to vector<8x32xf32>
    %387 = arith.addf %386, %385 : vector<8x32xf32>
    %388 = arith.divf %386, %387 : vector<8x32xf32>
    %389 = arith.mulf %382, %388 : vector<8x32xf32>
    %390 = arith.addf %389, %318 : vector<8x32xf32>
    %391 = vector.extract_strided_slice %380 {offsets = [0, 0], sizes = [8, 32], strides = [1, 1]} : vector<8x64xf32> to vector<8x32xf32>
    %392 = math.tanh %391 : vector<8x32xf32>
    %393 = vector.extract_strided_slice %380 {offsets = [0, 32], sizes = [8, 32], strides = [1, 1]} : vector<8x64xf32> to vector<8x32xf32>
    %394 = arith.negf %393 : vector<8x32xf32>
    %395 = math.exp %394 : vector<8x32xf32>
    %cst_139 = arith.constant 1.000000e+00 : f32
    %396 = vector.broadcast %cst_139 : f32 to vector<8x32xf32>
    %397 = arith.addf %396, %395 : vector<8x32xf32>
    %398 = arith.divf %396, %397 : vector<8x32xf32>
    %399 = arith.mulf %392, %398 : vector<8x32xf32>
    %400 = arith.addf %399, %390 : vector<8x32xf32>
    %c40 = arith.constant 40 : index
    %c0_140 = arith.constant 0 : index
    %401 = vector.load %arg20[%c40, %c0_140] : memref<64x32xf32, #tpu.memory_space<vmem>>, vector<8x32xf32>
    %402 = arith.mulf %401, %400 : vector<8x32xf32>
    %cst_141 = arith.constant dense<0.000000e+00> : vector<8xf32>
    %403 = vector.multi_reduction <add>, %402, %cst_141 [1] : vector<8x32xf32> to vector<8xf32>
    %404 = vector.shape_cast %403 : vector<8xf32> to vector<8x1xf32>
    %405 = arith.negf %404 : vector<8x1xf32>
    %406 = math.exp %405 : vector<8x1xf32>
    %cst_142 = arith.constant 1.000000e+00 : f32
    %407 = vector.broadcast %cst_142 : f32 to vector<8x1xf32>
    %408 = arith.addf %407, %406 : vector<8x1xf32>
    %409 = arith.divf %407, %408 : vector<8x1xf32>
    %c5_i32 = arith.constant 5 : i32
    %410 = arith.addi %40, %c5_i32 : i32
    %411 = vector.broadcast %410 : i32 to vector<8x8xi32>
    %412 = arith.cmpi eq, %39, %411 : vector<8x8xi32>
    %413 = vector.shape_cast %409 : vector<8x1xf32> to vector<8x1xf32>
    %414 = vector.broadcast %413 : vector<8x1xf32> to vector<8x8xf32>
    %415 = arith.select %412, %414, %343 : vector<8x8xi1>, vector<8x8xf32>
    %416 = tpu.concatenate %400, %390 in 0 : vector<8x32xf32>, vector<8x32xf32> -> vector<16x32xf32>
    %cst_143 = arith.constant dense<0.000000e+00> : vector<16x96xf32>
    %417 = tpu.matmul %416, %27, %cst_143 {dimension_numbers = #tpu.dot_dimension_numbers<[1], [0], [0], [1], [0, 0, 1, 1], [], []>} : vector<16x32xf32>, vector<32x96xf32>, vector<16x96xf32> -> vector<16x96xf32>
    %418 = vector.extract_strided_slice %417 {offsets = [0, 0], sizes = [8, 64], strides = [1, 1]} : vector<16x96xf32> to vector<8x64xf32>
    %419 = vector.extract_strided_slice %417 {offsets = [8, 64], sizes = [8, 32], strides = [1, 1]} : vector<16x96xf32> to vector<8x32xf32>
    %c40_144 = arith.constant 40 : index
    %c0_145 = arith.constant 0 : index
    %420 = vector.load %arg21[%c40_144, %c0_145] : memref<64x32xf32, #tpu.memory_space<vmem>>, vector<8x32xf32>
    %421 = vector.extract_strided_slice %418 {offsets = [0, 0], sizes = [8, 32], strides = [1, 1]} : vector<8x64xf32> to vector<8x32xf32>
    %422 = arith.addf %420, %421 : vector<8x32xf32>
    %423 = vector.extract_strided_slice %418 {offsets = [0, 32], sizes = [8, 32], strides = [1, 1]} : vector<8x64xf32> to vector<8x32xf32>
    %cst_146 = arith.constant dense<0.000000e+00> : vector<8x64xf32>
    %424 = tpu.matmul %422, %28, %cst_146 {dimension_numbers = #tpu.dot_dimension_numbers<[1], [0], [0], [1], [0, 0, 1, 1], [], []>} : vector<8x32xf32>, vector<32x64xf32>, vector<8x64xf32> -> vector<8x64xf32>
    %c40_147 = arith.constant 40 : index
    %c0_148 = arith.constant 0 : index
    %425 = vector.load %arg22[%c40_147, %c0_148] : memref<64x32xf32, #tpu.memory_space<vmem>>, vector<8x32xf32>
    %426 = vector.extract_strided_slice %424 {offsets = [0, 0], sizes = [8, 32], strides = [1, 1]} : vector<8x64xf32> to vector<8x32xf32>
    %427 = arith.mulf %426, %419 : vector<8x32xf32>
    %cst_149 = arith.constant 0.176776692 : f32
    %428 = vector.broadcast %cst_149 : f32 to vector<8x32xf32>
    %429 = arith.mulf %427, %428 : vector<8x32xf32>
    %430 = arith.negf %429 : vector<8x32xf32>
    %431 = math.exp %430 : vector<8x32xf32>
    %cst_150 = arith.constant 1.000000e+00 : f32
    %432 = vector.broadcast %cst_150 : f32 to vector<8x32xf32>
    %433 = arith.addf %432, %431 : vector<8x32xf32>
    %434 = arith.divf %432, %433 : vector<8x32xf32>
    %435 = arith.mulf %425, %434 : vector<8x32xf32>
    %c40_151 = arith.constant 40 : index
    %c0_152 = arith.constant 0 : index
    %436 = vector.load %arg23[%c40_151, %c0_152] : memref<64x32xf32, #tpu.memory_space<vmem>>, vector<8x32xf32>
    %437 = vector.extract_strided_slice %424 {offsets = [0, 32], sizes = [8, 32], strides = [1, 1]} : vector<8x64xf32> to vector<8x32xf32>
    %438 = arith.mulf %437, %423 : vector<8x32xf32>
    %cst_153 = arith.constant 0.176776692 : f32
    %439 = vector.broadcast %cst_153 : f32 to vector<8x32xf32>
    %440 = arith.mulf %438, %439 : vector<8x32xf32>
    %441 = arith.negf %440 : vector<8x32xf32>
    %442 = math.exp %441 : vector<8x32xf32>
    %cst_154 = arith.constant 1.000000e+00 : f32
    %443 = vector.broadcast %cst_154 : f32 to vector<8x32xf32>
    %444 = arith.addf %443, %442 : vector<8x32xf32>
    %445 = arith.divf %443, %444 : vector<8x32xf32>
    %446 = arith.mulf %436, %445 : vector<8x32xf32>
    %447 = tpu.concatenate %435, %446 in 0 : vector<8x32xf32>, vector<8x32xf32> -> vector<16x32xf32>
    %cst_155 = arith.constant dense<0.000000e+00> : vector<16x128xf32>
    %448 = tpu.matmul %447, %29, %cst_155 {dimension_numbers = #tpu.dot_dimension_numbers<[1], [0], [0], [1], [0, 0, 1, 1], [], []>} : vector<16x32xf32>, vector<32x128xf32>, vector<16x128xf32> -> vector<16x128xf32>
    %449 = vector.extract_strided_slice %448 {offsets = [0, 0], sizes = [8, 64], strides = [1, 1]} : vector<16x128xf32> to vector<8x64xf32>
    %450 = arith.addf %449, %32 : vector<8x64xf32>
    %451 = vector.extract_strided_slice %448 {offsets = [8, 64], sizes = [8, 64], strides = [1, 1]} : vector<16x128xf32> to vector<8x64xf32>
    %452 = arith.addf %451, %35 : vector<8x64xf32>
    %453 = vector.extract_strided_slice %450 {offsets = [0, 0], sizes = [8, 32], strides = [1, 1]} : vector<8x64xf32> to vector<8x32xf32>
    %454 = math.tanh %453 : vector<8x32xf32>
    %455 = vector.extract_strided_slice %450 {offsets = [0, 32], sizes = [8, 32], strides = [1, 1]} : vector<8x64xf32> to vector<8x32xf32>
    %456 = arith.negf %455 : vector<8x32xf32>
    %457 = math.exp %456 : vector<8x32xf32>
    %cst_156 = arith.constant 1.000000e+00 : f32
    %458 = vector.broadcast %cst_156 : f32 to vector<8x32xf32>
    %459 = arith.addf %458, %457 : vector<8x32xf32>
    %460 = arith.divf %458, %459 : vector<8x32xf32>
    %461 = arith.mulf %454, %460 : vector<8x32xf32>
    %462 = arith.addf %461, %390 : vector<8x32xf32>
    %463 = vector.extract_strided_slice %452 {offsets = [0, 0], sizes = [8, 32], strides = [1, 1]} : vector<8x64xf32> to vector<8x32xf32>
    %464 = math.tanh %463 : vector<8x32xf32>
    %465 = vector.extract_strided_slice %452 {offsets = [0, 32], sizes = [8, 32], strides = [1, 1]} : vector<8x64xf32> to vector<8x32xf32>
    %466 = arith.negf %465 : vector<8x32xf32>
    %467 = math.exp %466 : vector<8x32xf32>
    %cst_157 = arith.constant 1.000000e+00 : f32
    %468 = vector.broadcast %cst_157 : f32 to vector<8x32xf32>
    %469 = arith.addf %468, %467 : vector<8x32xf32>
    %470 = arith.divf %468, %469 : vector<8x32xf32>
    %471 = arith.mulf %464, %470 : vector<8x32xf32>
    %472 = arith.addf %471, %462 : vector<8x32xf32>
    %c48 = arith.constant 48 : index
    %c0_158 = arith.constant 0 : index
    %473 = vector.load %arg20[%c48, %c0_158] : memref<64x32xf32, #tpu.memory_space<vmem>>, vector<8x32xf32>
    %474 = arith.mulf %473, %472 : vector<8x32xf32>
    %cst_159 = arith.constant dense<0.000000e+00> : vector<8xf32>
    %475 = vector.multi_reduction <add>, %474, %cst_159 [1] : vector<8x32xf32> to vector<8xf32>
    %476 = vector.shape_cast %475 : vector<8xf32> to vector<8x1xf32>
    %477 = arith.negf %476 : vector<8x1xf32>
    %478 = math.exp %477 : vector<8x1xf32>
    %cst_160 = arith.constant 1.000000e+00 : f32
    %479 = vector.broadcast %cst_160 : f32 to vector<8x1xf32>
    %480 = arith.addf %479, %478 : vector<8x1xf32>
    %481 = arith.divf %479, %480 : vector<8x1xf32>
    %c6_i32 = arith.constant 6 : i32
    %482 = arith.addi %40, %c6_i32 : i32
    %483 = vector.broadcast %482 : i32 to vector<8x8xi32>
    %484 = arith.cmpi eq, %39, %483 : vector<8x8xi32>
    %485 = vector.shape_cast %481 : vector<8x1xf32> to vector<8x1xf32>
    %486 = vector.broadcast %485 : vector<8x1xf32> to vector<8x8xf32>
    %487 = arith.select %484, %486, %415 : vector<8x8xi1>, vector<8x8xf32>
    %488 = tpu.concatenate %472, %462 in 0 : vector<8x32xf32>, vector<8x32xf32> -> vector<16x32xf32>
    %cst_161 = arith.constant dense<0.000000e+00> : vector<16x96xf32>
    %489 = tpu.matmul %488, %27, %cst_161 {dimension_numbers = #tpu.dot_dimension_numbers<[1], [0], [0], [1], [0, 0, 1, 1], [], []>} : vector<16x32xf32>, vector<32x96xf32>, vector<16x96xf32> -> vector<16x96xf32>
    %490 = vector.extract_strided_slice %489 {offsets = [0, 0], sizes = [8, 64], strides = [1, 1]} : vector<16x96xf32> to vector<8x64xf32>
    %491 = vector.extract_strided_slice %489 {offsets = [8, 64], sizes = [8, 32], strides = [1, 1]} : vector<16x96xf32> to vector<8x32xf32>
    %c48_162 = arith.constant 48 : index
    %c0_163 = arith.constant 0 : index
    %492 = vector.load %arg21[%c48_162, %c0_163] : memref<64x32xf32, #tpu.memory_space<vmem>>, vector<8x32xf32>
    %493 = vector.extract_strided_slice %490 {offsets = [0, 0], sizes = [8, 32], strides = [1, 1]} : vector<8x64xf32> to vector<8x32xf32>
    %494 = arith.addf %492, %493 : vector<8x32xf32>
    %495 = vector.extract_strided_slice %490 {offsets = [0, 32], sizes = [8, 32], strides = [1, 1]} : vector<8x64xf32> to vector<8x32xf32>
    %cst_164 = arith.constant dense<0.000000e+00> : vector<8x64xf32>
    %496 = tpu.matmul %494, %28, %cst_164 {dimension_numbers = #tpu.dot_dimension_numbers<[1], [0], [0], [1], [0, 0, 1, 1], [], []>} : vector<8x32xf32>, vector<32x64xf32>, vector<8x64xf32> -> vector<8x64xf32>
    %c48_165 = arith.constant 48 : index
    %c0_166 = arith.constant 0 : index
    %497 = vector.load %arg22[%c48_165, %c0_166] : memref<64x32xf32, #tpu.memory_space<vmem>>, vector<8x32xf32>
    %498 = vector.extract_strided_slice %496 {offsets = [0, 0], sizes = [8, 32], strides = [1, 1]} : vector<8x64xf32> to vector<8x32xf32>
    %499 = arith.mulf %498, %491 : vector<8x32xf32>
    %cst_167 = arith.constant 0.176776692 : f32
    %500 = vector.broadcast %cst_167 : f32 to vector<8x32xf32>
    %501 = arith.mulf %499, %500 : vector<8x32xf32>
    %502 = arith.negf %501 : vector<8x32xf32>
    %503 = math.exp %502 : vector<8x32xf32>
    %cst_168 = arith.constant 1.000000e+00 : f32
    %504 = vector.broadcast %cst_168 : f32 to vector<8x32xf32>
    %505 = arith.addf %504, %503 : vector<8x32xf32>
    %506 = arith.divf %504, %505 : vector<8x32xf32>
    %507 = arith.mulf %497, %506 : vector<8x32xf32>
    %c48_169 = arith.constant 48 : index
    %c0_170 = arith.constant 0 : index
    %508 = vector.load %arg23[%c48_169, %c0_170] : memref<64x32xf32, #tpu.memory_space<vmem>>, vector<8x32xf32>
    %509 = vector.extract_strided_slice %496 {offsets = [0, 32], sizes = [8, 32], strides = [1, 1]} : vector<8x64xf32> to vector<8x32xf32>
    %510 = arith.mulf %509, %495 : vector<8x32xf32>
    %cst_171 = arith.constant 0.176776692 : f32
    %511 = vector.broadcast %cst_171 : f32 to vector<8x32xf32>
    %512 = arith.mulf %510, %511 : vector<8x32xf32>
    %513 = arith.negf %512 : vector<8x32xf32>
    %514 = math.exp %513 : vector<8x32xf32>
    %cst_172 = arith.constant 1.000000e+00 : f32
    %515 = vector.broadcast %cst_172 : f32 to vector<8x32xf32>
    %516 = arith.addf %515, %514 : vector<8x32xf32>
    %517 = arith.divf %515, %516 : vector<8x32xf32>
    %518 = arith.mulf %508, %517 : vector<8x32xf32>
    %519 = tpu.concatenate %507, %518 in 0 : vector<8x32xf32>, vector<8x32xf32> -> vector<16x32xf32>
    %cst_173 = arith.constant dense<0.000000e+00> : vector<16x128xf32>
    %520 = tpu.matmul %519, %29, %cst_173 {dimension_numbers = #tpu.dot_dimension_numbers<[1], [0], [0], [1], [0, 0, 1, 1], [], []>} : vector<16x32xf32>, vector<32x128xf32>, vector<16x128xf32> -> vector<16x128xf32>
    %521 = vector.extract_strided_slice %520 {offsets = [0, 0], sizes = [8, 64], strides = [1, 1]} : vector<16x128xf32> to vector<8x64xf32>
    %522 = arith.addf %521, %32 : vector<8x64xf32>
    %523 = vector.extract_strided_slice %520 {offsets = [8, 64], sizes = [8, 64], strides = [1, 1]} : vector<16x128xf32> to vector<8x64xf32>
    %524 = arith.addf %523, %35 : vector<8x64xf32>
    %525 = vector.extract_strided_slice %522 {offsets = [0, 0], sizes = [8, 32], strides = [1, 1]} : vector<8x64xf32> to vector<8x32xf32>
    %526 = math.tanh %525 : vector<8x32xf32>
    %527 = vector.extract_strided_slice %522 {offsets = [0, 32], sizes = [8, 32], strides = [1, 1]} : vector<8x64xf32> to vector<8x32xf32>
    %528 = arith.negf %527 : vector<8x32xf32>
    %529 = math.exp %528 : vector<8x32xf32>
    %cst_174 = arith.constant 1.000000e+00 : f32
    %530 = vector.broadcast %cst_174 : f32 to vector<8x32xf32>
    %531 = arith.addf %530, %529 : vector<8x32xf32>
    %532 = arith.divf %530, %531 : vector<8x32xf32>
    %533 = arith.mulf %526, %532 : vector<8x32xf32>
    %534 = arith.addf %533, %462 : vector<8x32xf32>
    %535 = vector.extract_strided_slice %524 {offsets = [0, 0], sizes = [8, 32], strides = [1, 1]} : vector<8x64xf32> to vector<8x32xf32>
    %536 = math.tanh %535 : vector<8x32xf32>
    %537 = vector.extract_strided_slice %524 {offsets = [0, 32], sizes = [8, 32], strides = [1, 1]} : vector<8x64xf32> to vector<8x32xf32>
    %538 = arith.negf %537 : vector<8x32xf32>
    %539 = math.exp %538 : vector<8x32xf32>
    %cst_175 = arith.constant 1.000000e+00 : f32
    %540 = vector.broadcast %cst_175 : f32 to vector<8x32xf32>
    %541 = arith.addf %540, %539 : vector<8x32xf32>
    %542 = arith.divf %540, %541 : vector<8x32xf32>
    %543 = arith.mulf %536, %542 : vector<8x32xf32>
    %544 = arith.addf %543, %534 : vector<8x32xf32>
    %c56 = arith.constant 56 : index
    %c0_176 = arith.constant 0 : index
    %545 = vector.load %arg20[%c56, %c0_176] : memref<64x32xf32, #tpu.memory_space<vmem>>, vector<8x32xf32>
    %546 = arith.mulf %545, %544 : vector<8x32xf32>
    %cst_177 = arith.constant dense<0.000000e+00> : vector<8xf32>
    %547 = vector.multi_reduction <add>, %546, %cst_177 [1] : vector<8x32xf32> to vector<8xf32>
    %548 = vector.shape_cast %547 : vector<8xf32> to vector<8x1xf32>
    %549 = arith.negf %548 : vector<8x1xf32>
    %550 = math.exp %549 : vector<8x1xf32>
    %cst_178 = arith.constant 1.000000e+00 : f32
    %551 = vector.broadcast %cst_178 : f32 to vector<8x1xf32>
    %552 = arith.addf %551, %550 : vector<8x1xf32>
    %553 = arith.divf %551, %552 : vector<8x1xf32>
    %c7_i32 = arith.constant 7 : i32
    %554 = arith.addi %40, %c7_i32 : i32
    %555 = vector.broadcast %554 : i32 to vector<8x8xi32>
    %556 = arith.cmpi eq, %39, %555 : vector<8x8xi32>
    %557 = vector.shape_cast %553 : vector<8x1xf32> to vector<8x1xf32>
    %558 = vector.broadcast %557 : vector<8x1xf32> to vector<8x8xf32>
    %559 = arith.select %556, %558, %487 : vector<8x8xi1>, vector<8x8xf32>
    %560 = tpu.concatenate %544, %534 in 0 : vector<8x32xf32>, vector<8x32xf32> -> vector<16x32xf32>
    %cst_179 = arith.constant dense<0.000000e+00> : vector<16x96xf32>
    %561 = tpu.matmul %560, %27, %cst_179 {dimension_numbers = #tpu.dot_dimension_numbers<[1], [0], [0], [1], [0, 0, 1, 1], [], []>} : vector<16x32xf32>, vector<32x96xf32>, vector<16x96xf32> -> vector<16x96xf32>
    %562 = vector.extract_strided_slice %561 {offsets = [0, 0], sizes = [8, 64], strides = [1, 1]} : vector<16x96xf32> to vector<8x64xf32>
    %563 = vector.extract_strided_slice %561 {offsets = [8, 64], sizes = [8, 32], strides = [1, 1]} : vector<16x96xf32> to vector<8x32xf32>
    %c56_180 = arith.constant 56 : index
    %c0_181 = arith.constant 0 : index
    %564 = vector.load %arg21[%c56_180, %c0_181] : memref<64x32xf32, #tpu.memory_space<vmem>>, vector<8x32xf32>
    %565 = vector.extract_strided_slice %562 {offsets = [0, 0], sizes = [8, 32], strides = [1, 1]} : vector<8x64xf32> to vector<8x32xf32>
    %566 = arith.addf %564, %565 : vector<8x32xf32>
    %567 = vector.extract_strided_slice %562 {offsets = [0, 32], sizes = [8, 32], strides = [1, 1]} : vector<8x64xf32> to vector<8x32xf32>
    %cst_182 = arith.constant dense<0.000000e+00> : vector<8x64xf32>
    %568 = tpu.matmul %566, %28, %cst_182 {dimension_numbers = #tpu.dot_dimension_numbers<[1], [0], [0], [1], [0, 0, 1, 1], [], []>} : vector<8x32xf32>, vector<32x64xf32>, vector<8x64xf32> -> vector<8x64xf32>
    %c56_183 = arith.constant 56 : index
    %c0_184 = arith.constant 0 : index
    %569 = vector.load %arg22[%c56_183, %c0_184] : memref<64x32xf32, #tpu.memory_space<vmem>>, vector<8x32xf32>
    %570 = vector.extract_strided_slice %568 {offsets = [0, 0], sizes = [8, 32], strides = [1, 1]} : vector<8x64xf32> to vector<8x32xf32>
    %571 = arith.mulf %570, %563 : vector<8x32xf32>
    %cst_185 = arith.constant 0.176776692 : f32
    %572 = vector.broadcast %cst_185 : f32 to vector<8x32xf32>
    %573 = arith.mulf %571, %572 : vector<8x32xf32>
    %574 = arith.negf %573 : vector<8x32xf32>
    %575 = math.exp %574 : vector<8x32xf32>
    %cst_186 = arith.constant 1.000000e+00 : f32
    %576 = vector.broadcast %cst_186 : f32 to vector<8x32xf32>
    %577 = arith.addf %576, %575 : vector<8x32xf32>
    %578 = arith.divf %576, %577 : vector<8x32xf32>
    %579 = arith.mulf %569, %578 : vector<8x32xf32>
    %c56_187 = arith.constant 56 : index
    %c0_188 = arith.constant 0 : index
    %580 = vector.load %arg23[%c56_187, %c0_188] : memref<64x32xf32, #tpu.memory_space<vmem>>, vector<8x32xf32>
    %581 = vector.extract_strided_slice %568 {offsets = [0, 32], sizes = [8, 32], strides = [1, 1]} : vector<8x64xf32> to vector<8x32xf32>
    %582 = arith.mulf %581, %567 : vector<8x32xf32>
    %cst_189 = arith.constant 0.176776692 : f32
    %583 = vector.broadcast %cst_189 : f32 to vector<8x32xf32>
    %584 = arith.mulf %582, %583 : vector<8x32xf32>
    %585 = arith.negf %584 : vector<8x32xf32>
    %586 = math.exp %585 : vector<8x32xf32>
    %cst_190 = arith.constant 1.000000e+00 : f32
    %587 = vector.broadcast %cst_190 : f32 to vector<8x32xf32>
    %588 = arith.addf %587, %586 : vector<8x32xf32>
    %589 = arith.divf %587, %588 : vector<8x32xf32>
    %590 = arith.mulf %580, %589 : vector<8x32xf32>
    %591 = tpu.concatenate %579, %590 in 0 : vector<8x32xf32>, vector<8x32xf32> -> vector<16x32xf32>
    %cst_191 = arith.constant dense<0.000000e+00> : vector<16x128xf32>
    %592 = tpu.matmul %591, %29, %cst_191 {dimension_numbers = #tpu.dot_dimension_numbers<[1], [0], [0], [1], [0, 0, 1, 1], [], []>} : vector<16x32xf32>, vector<32x128xf32>, vector<16x128xf32> -> vector<16x128xf32>
    %593 = vector.extract_strided_slice %592 {offsets = [0, 0], sizes = [8, 64], strides = [1, 1]} : vector<16x128xf32> to vector<8x64xf32>
    %594 = arith.addf %593, %32 : vector<8x64xf32>
    %595 = vector.extract_strided_slice %592 {offsets = [8, 64], sizes = [8, 64], strides = [1, 1]} : vector<16x128xf32> to vector<8x64xf32>
    %596 = arith.addf %595, %35 : vector<8x64xf32>
    %597 = vector.extract_strided_slice %594 {offsets = [0, 0], sizes = [8, 32], strides = [1, 1]} : vector<8x64xf32> to vector<8x32xf32>
    %598 = math.tanh %597 : vector<8x32xf32>
    %599 = vector.extract_strided_slice %594 {offsets = [0, 32], sizes = [8, 32], strides = [1, 1]} : vector<8x64xf32> to vector<8x32xf32>
    %600 = arith.negf %599 : vector<8x32xf32>
    %601 = math.exp %600 : vector<8x32xf32>
    %cst_192 = arith.constant 1.000000e+00 : f32
    %602 = vector.broadcast %cst_192 : f32 to vector<8x32xf32>
    %603 = arith.addf %602, %601 : vector<8x32xf32>
    %604 = arith.divf %602, %603 : vector<8x32xf32>
    %605 = arith.mulf %598, %604 : vector<8x32xf32>
    %606 = arith.addf %605, %534 : vector<8x32xf32>
    %607 = vector.extract_strided_slice %596 {offsets = [0, 0], sizes = [8, 32], strides = [1, 1]} : vector<8x64xf32> to vector<8x32xf32>
    %608 = math.tanh %607 : vector<8x32xf32>
    %609 = vector.extract_strided_slice %596 {offsets = [0, 32], sizes = [8, 32], strides = [1, 1]} : vector<8x64xf32> to vector<8x32xf32>
    %610 = arith.negf %609 : vector<8x32xf32>
    %611 = math.exp %610 : vector<8x32xf32>
    %cst_193 = arith.constant 1.000000e+00 : f32
    %612 = vector.broadcast %cst_193 : f32 to vector<8x32xf32>
    %613 = arith.addf %612, %611 : vector<8x32xf32>
    %614 = arith.divf %612, %613 : vector<8x32xf32>
    %615 = arith.mulf %608, %614 : vector<8x32xf32>
    %616 = arith.addf %615, %606 : vector<8x32xf32>
    %c0_194 = arith.constant 0 : index
    %c0_195 = arith.constant 0 : index
    %617 = vector.load %arg17[%c0_194, %c0_195] : memref<8x32xf32, #tpu.memory_space<vmem>>, vector<8x32xf32>
    tpu.vector_store %arg17[%c0_194, %c0_195], %616 {strides = array<i32>} : memref<8x32xf32, #tpu.memory_space<vmem>>, vector<8x32xf32>,
    %c0_196 = arith.constant 0 : index
    %c0_197 = arith.constant 0 : index
    %618 = vector.load %arg18[%c0_196, %c0_197] : memref<8x32xf32, #tpu.memory_space<vmem>>, vector<8x32xf32>
    tpu.vector_store %arg18[%c0_196, %c0_197], %606 {strides = array<i32>} : memref<8x32xf32, #tpu.memory_space<vmem>>, vector<8x32xf32>,
    %c0_198 = arith.constant 0 : index
    %c0_199 = arith.constant 0 : index
    %619 = vector.load %arg19[%c0_198, %c0_199] : memref<8x8xf32, #tpu.memory_space<vmem>>, vector<8x8xf32>
    tpu.vector_store %arg19[%c0_198, %c0_199], %559 {strides = array<i32>} : memref<8x8xf32, #tpu.memory_space<vmem>>, vector<8x8xf32>,
    %c0_i32_200 = arith.constant 0 : i32
    %620 = arith.cmpi eq, %arg1, %c0_i32_200 : i32
    %621 = arith.extui %620 : i1 to i32
    %c0_i32_201 = arith.constant 0 : i32
    %622 = arith.cmpi ne, %621, %c0_i32_201 : i32
    scf.if %622 {
      %c0_202 = arith.constant 0 : index
      %c0_203 = arith.constant 0 : index
      %623 = vector.load %arg16[%c0_202, %c0_203] : memref<8x8xf32, #tpu.memory_space<vmem>>, vector<8x8xf32>
      tpu.vector_store %arg16[%c0_202, %c0_203], %559 {strides = array<i32>} : memref<8x8xf32, #tpu.memory_space<vmem>>, vector<8x8xf32>,
    } else {
    }
    return
  }
  func.func @transform_0(%arg0: i32, %arg1: i32) -> (i32, i32, i32) {
    %c0_i32 = arith.constant 0 : i32
    %c0_i32_0 = arith.constant 0 : i32
    return %arg0, %arg1, %c0_i32 : i32, i32, i32
  }
  func.func @transform_1(%arg0: i32, %arg1: i32) -> (i32, i32, i32) {
    %c0_i32 = arith.constant 0 : i32
    %c0_i32_0 = arith.constant 0 : i32
    return %arg0, %arg1, %c0_i32 : i32, i32, i32
  }
  func.func @transform_2(%arg0: i32, %arg1: i32) -> (i32, i32, i32) {
    %c0_i32 = arith.constant 0 : i32
    %c0_i32_0 = arith.constant 0 : i32
    return %arg0, %arg1, %c0_i32 : i32, i32, i32
  }
  func.func @transform_3(%arg0: i32, %arg1: i32) -> (i32, i32) {
    %c0_i32 = arith.constant 0 : i32
    %c0_i32_0 = arith.constant 0 : i32
    %c0_i32_1 = arith.constant 0 : i32
    return %c0_i32, %c0_i32_0 : i32, i32
  }
  func.func @transform_4(%arg0: i32, %arg1: i32) -> (i32, i32) {
    %c0_i32 = arith.constant 0 : i32
    %c0_i32_0 = arith.constant 0 : i32
    %c0_i32_1 = arith.constant 0 : i32
    return %c0_i32, %c0_i32_0 : i32, i32
  }
  func.func @transform_5(%arg0: i32, %arg1: i32) -> (i32, i32) {
    %c0_i32 = arith.constant 0 : i32
    %c0_i32_0 = arith.constant 0 : i32
    %c0_i32_1 = arith.constant 0 : i32
    return %c0_i32, %c0_i32_0 : i32, i32
  }
  func.func @transform_6(%arg0: i32, %arg1: i32) -> (i32, i32) {
    %c0_i32 = arith.constant 0 : i32
    %c0_i32_0 = arith.constant 0 : i32
    %c0_i32_1 = arith.constant 0 : i32
    return %c0_i32, %c0_i32_0 : i32, i32
  }
  func.func @transform_7(%arg0: i32, %arg1: i32) -> (i32, i32) {
    %c0_i32 = arith.constant 0 : i32
    %c0_i32_0 = arith.constant 0 : i32
    %c0_i32_1 = arith.constant 0 : i32
    return %c0_i32, %c0_i32_0 : i32, i32
  }
  func.func @transform_8(%arg0: i32, %arg1: i32) -> (i32, i32) {
    %c0_i32 = arith.constant 0 : i32
    %c0_i32_0 = arith.constant 0 : i32
    %c0_i32_1 = arith.constant 0 : i32
    return %c0_i32, %c0_i32_0 : i32, i32
  }
  func.func @transform_9(%arg0: i32, %arg1: i32) -> (i32, i32) {
    %c0_i32 = arith.constant 0 : i32
    %c0_i32_0 = arith.constant 0 : i32
    %c0_i32_1 = arith.constant 0 : i32
    return %c0_i32, %c0_i32_0 : i32, i32
  }
  func.func @transform_10(%arg0: i32, %arg1: i32) -> (i32, i32) {
    %c0_i32 = arith.constant 0 : i32
    %c0_i32_0 = arith.constant 0 : i32
    %c0_i32_1 = arith.constant 0 : i32
    return %c0_i32, %c0_i32_0 : i32, i32
  }
  func.func @transform_11(%arg0: i32, %arg1: i32) -> (i32, i32) {
    %c0_i32 = arith.constant 0 : i32
    %c0_i32_0 = arith.constant 0 : i32
    %c0_i32_1 = arith.constant 0 : i32
    return %c0_i32, %c0_i32_0 : i32, i32
  }
  func.func @transform_12(%arg0: i32, %arg1: i32) -> (i32, i32) {
    %c0_i32 = arith.constant 0 : i32
    %c0_i32_0 = arith.constant 0 : i32
    %c0_i32_1 = arith.constant 0 : i32
    return %c0_i32, %c0_i32_0 : i32, i32
  }
  func.func @transform_13(%arg0: i32, %arg1: i32) -> (i32, i32) {
    %c0_i32 = arith.constant 0 : i32
    %c0_i32_0 = arith.constant 0 : i32
    %c0_i32_1 = arith.constant 0 : i32
    return %c0_i32, %c0_i32_0 : i32, i32
  }
  func.func @transform_14(%arg0: i32, %arg1: i32) -> (i32, i32) {
    %c0_i32 = arith.constant 0 : i32
    %c0_i32_0 = arith.constant 0 : i32
    return %arg0, %c0_i32 : i32, i32
  }
}

</mosaic_0001>

<bundles_post_ra>
// kernel: tpu_custom_call.1
= control target key start
LH: loop header
LB: loop body
LE: loop exit
PB: predicated region body
PF: predicated region fallthrough
CT: control target
= control target key end

     0   :  { %19 = vsyncpa [#allocation10], 0  ;;  %s4981_s0 = inlined_call_operand.vmem [shape: f32[1,64,64], index: 0, kind: input, shape index: {}]   ;;  %s4982_s1 = inlined_call_operand.vmem [shape: f32[1,64,32], index: 1, kind: input, shape index: {}]   ;;  %s4983_s2 = inlined_call_operand.vmem [shape: f32[1,64,32], index: 2, kind: input, shape index: {}]   ;;  %s4984_s3 = inlined_call_operand.vmem [shape: f32[64,32], index: 3, kind: input, shape index: {}]   ;;  %s4985_s4 = inlined_call_operand.vmem [shape: f32[1,32], index: 4, kind: input, shape index: {}]   ;;  %s4986_s5 = inlined_call_operand.vmem [shape: f32[32,32], index: 5, kind: input, shape index: {}]   ;;  %s4987_s6 = inlined_call_operand.vmem [shape: f32[1,32], index: 6, kind: input, shape index: {}]   ;;  %s4988_s7 = inlined_call_operand.vmem [shape: f32[32,32], index: 7, kind: input, shape index: {}]   ;;  %s4989_s8 = inlined_call_operand.vmem [shape: f32[32,32], index: 8, kind: input, shape index: {}]   ;;  %s4990_s9 = inlined_call_operand.vmem [shape: f32[32,96], index: 9, kind: input, shape index: {}]   ;;  %s4991_s10 = inlined_call_operand.vmem [shape: f32[32,64], index: 10, kind: input, shape index: {}]   ;;  %s4992_s11 = inlined_call_operand.hbm [shape: f32[32,128], index: 11, kind: input, shape index: {}]   ;;  %s4993_s12 = inlined_call_operand.vmem [shape: f32[1,64], index: 12, kind: input, shape index: {}]   ;;  %s4994_s13 = inlined_call_operand.vmem [shape: f32[1,64], index: 13, kind: input, shape index: {}]   ;;  %s4995_s14 = inlined_call_operand.hbm [shape: f32[8,8], index: 14, kind: output, shape index: {}]  }
   0x1   :  { %20 = vsyncpa [#allocation11], 0  ;;  %s4177_s29 = smov [#allocation9]  }
   0x2   :  { %s48_s30 = sshll.u32 %s4177_s29, 4  ;;  %s49_s30 = int_to_ptr.vmem [resolvable:$true] %s48_s30 }
   0x3   :  { %s4141_s15 = scalar_lea.vmem %s49_s30, 512  ;;  %p4146_p1 = scmp.lt.s32.totalorder %s49_s30, %s49_s30 }
   0x4   :  { %p4142_p0 = scmp.ne.s32.totalorder %s49_s30, %s4141_s15  ;;  %p4147_p2 = scmp.lt.s32.totalorder %s4141_s15, %s4141_s15 }
   0x6   :  { %p4148_p3 = por %p4147_p2, %p4146_p1 }
   0x8   :  { %p4149_p4 = pnand %p4148_p3, %p4142_p0 }
   0xa   :  { %4152 = shalt.err (!%p4149_p4)
}
   0xb   :  { %s4178_s16 = smov 128   ;;  %s4179_s17 = smov 8  }
   0xc   :  { %54 = dma.hbm_to_vmem [thread:$0]  %s4992_s11, 512, %s49_s30, [#allocation10], %s4178_s16, %s4178_s16, %s4179_s17  }
   0xd   :  { %4173 = dma.done.wait [#allocation10], 512  }
   0xe   :  { %4174 = vsyncadd [#allocation10], 4294966784  ;;  %v86_v0 = vld [vmem:[%s4984_s3 + $0x38] sm:$0xff]  ;;  %v85_v1 = vld [vmem:[%s4984_s3 + $0x30] sm:$0xff]  ;;  %vm94_vm0 = vcmask 523264   ;;  %vm66_vm1 = vcmask 261120  }
   0xf   :  { %3567 = vmatprep.subr.mxu0 %v86_v0  ;;  %v84_v2 = vld [vmem:[%s4984_s3 + $0x28] sm:$0xff]  ;;  %v71_v3 = vld [vmem:[%s4981_s0] sm:$0xff]  ;;  %v236_v5 = vld [vmem:[%s4986_s5 + $0x18] sm:$0xff]  ;;  %v4180_v20 = vmov 0.0   ;;  %vm4181_vm2 = vmmov 0   ;;  %vm69_vm3 = vcmask 64512  }
  0x10   :  { %3568 = vmatpush3.msra.mxu0 %v86_v0  ;;  %3583 = vmatprep.mubr.msk.f32.mxu0 %vm94_vm0, %v71_v3  ;;  %v83_v4 = vld [vmem:[%s4984_s3 + $0x20] sm:$0xff]  ;;  %v235_v6 = vld [vmem:[%s4986_s5 + $0x10] sm:$0xff]  ;;  %v82_v7 = vld [vmem:[%s4984_s3 + $0x18] sm:$0xff]  ;;  %67 = vst.msk [vmem:[#allocation2] sm:$0xff] %vm66_vm1, %v4180_v20 }
  0x11   :  { %3569 = vmatprep.subr.mxu0 %v85_v1  ;;  %3595 = vmatprep.subr.mxu1 %v236_v5  ;;  %v81_v8 = vld [vmem:[%s4984_s3 + $0x10] sm:$0xff]  ;;  %v80_v9 = vld [vmem:[%s4984_s3 + $0x8] sm:$0xff]  ;;  %v79_v10 = vld [vmem:[%s4984_s3] sm:$0xff]  ;;  %68 = vst.msk [vmem:[#allocation3] sm:$0xff] %vm66_vm1, %v4180_v20 }
  0x12   :  { %3570 = vmatpush3.msra.mxu0 %v85_v1  ;;  %3596 = vmatpush3.msra.mxu1 %v236_v5  ;;  %v72_v11 = vld [vmem:[%s4981_s0 + $0x8] sm:$0xff]  ;;  %v73_v12 = vld [vmem:[%s4981_s0 + $0x10] sm:$0xff]  ;;  %v74_v13 = vld [vmem:[%s4981_s0 + $0x18] sm:$0xff]  ;;  %70 = vst.msk [vmem:[#allocation4] sm:$0xff] %vm69_vm3, %v4180_v20 }
  0x13   :  { %3571 = vmatprep.subr.mxu0 %v84_v2  ;;  %3597 = vmatprep.subr.mxu1 %v235_v6  ;;  %v75_v14 = vld [vmem:[%s4981_s0 + $0x20] sm:$0xff]  ;;  %v76_v15 = vld [vmem:[%s4981_s0 + $0x28] sm:$0xff]  ;;  %v77_v16 = vld [vmem:[%s4981_s0 + $0x30] sm:$0xff] }
  0x14   :  { %3572 = vmatpush3.msra.mxu0 %v84_v2  ;;  %3598 = vmatpush3.msra.mxu1 %v235_v6  ;;  %v78_v17 = vld [vmem:[%s4981_s0 + $0x38] sm:$0xff]  ;;  %v234_v18 = vld [vmem:[%s4986_s5 + $0x8] sm:$0xff]  ;;  %v233_v19 = vld [vmem:[%s4986_s5] sm:$0xff]  ;;  %s4183_s0 = smov 96  }
  0x15   :  { %3573 = vmatprep.subr.mxu0 %v83_v4  ;;  %3599 = vmatprep.subr.mxu1 %v234_v18  ;;  %v392_v21 = vld [vmem:[%s4988_s7 + $0x18] sm:$0xff]  ;;  %v3263_v22 = vld [vmem:[%s4985_s4] ss:$0 sm:$0xff]  ;;  %v391_v29 = vld [vmem:[%s4988_s7 + $0x10] sm:$0xff] }
  0x16   :  { %3574 = vmatpush3.msra.mxu0 %v83_v4  ;;  %3600 = vmatpush3.msra.mxu1 %v234_v18  ;;  %v390_v32 = vld [vmem:[%s4988_s7 + $0x8] sm:$0xff]  ;;  %v389_v35 = vld [vmem:[%s4988_s7] sm:$0xff]  ;;  %v4362_v38 = vld [vmem:[%s4990_s9 + $0x18] sm:$0xff] }
  0x17   :  { %3575 = vmatprep.subr.mxu0 %v82_v7  ;;  %3601 = vmatprep.subr.mxu1 %v233_v19  ;;  %v381_v43 = vld [vmem:[%s4983_s2] sm:$0xff]  ;;  %v382_v44 = vld [vmem:[%s4983_s2 + $0x8] sm:$0xff]  ;;  %v383_v45 = vld [vmem:[%s4983_s2 + $0x10] sm:$0xff] }
  0x18   :  { %3576 = vmatpush3.msra.mxu0 %v82_v7  ;;  %3602 = vmatpush3.msra.mxu1 %v233_v19  ;;  %v4385_v46 = vld [vmem:[%s4990_s9 + $0x10] sm:$0xff]  ;;  %v384_v47 = vld [vmem:[%s4983_s2 + $0x18] sm:$0xff]  ;;  %v4396_v48 = vld [vmem:[%s4990_s9 + $0x8] sm:$0xff] }
  0x19   :  { %3577 = vmatprep.subr.mxu0 %v81_v8  ;;  %3615 = vmatprep.subr.mxu1 %v392_v21  ;;  %v385_v49 = vld [vmem:[%s4983_s2 + $0x20] sm:$0xff]  ;;  %v386_v51 = vld [vmem:[%s4983_s2 + $0x28] sm:$0xff]  ;;  %v387_v52 = vld [vmem:[%s4983_s2 + $0x30] sm:$0xff] }
  0x1a   :  { %3578 = vmatpush3.msra.mxu0 %v81_v8  ;;  %v4406_v50 = vld [vmem:[%s4990_s9] sm:$0xff]  ;;  %v388_v53 = vld [vmem:[%s4983_s2 + $0x38] sm:$0xff]  ;;  %v4427_v55 = vld [vmem:[#allocation3] sm:$0xff] }
  0x1b   :  { %3579 = vmatprep.subr.mxu0 %v80_v9  ;;  %v704_v54 = vld [vmem:[#allocation2] sm:$0xff]  ;;  %v541_v56 = vld [vmem:[%s4989_s8 + $0x18] sm:$0xff]  ;;  %v540_v57 = vld [vmem:[%s4989_s8 + $0x10] sm:$0xff] }
  0x1c   :  { %3580 = vmatpush3.msra.mxu0 %v80_v9  ;;  %v539_v58 = vld [vmem:[%s4989_s8 + $0x8] sm:$0xff]  ;;  %v538_v59 = vld [vmem:[%s4989_s8] sm:$0xff]  ;;  %v4455_v62 = vld [vmem:[%s4991_s10 + $0x18] sm:$0xff] }
  0x1d   :  { %3581 = vmatprep.subr.mxu0 %v79_v10  ;;  %v530_v60 = vld [vmem:[%s4982_s1] sm:$0xff]  ;;  %v531_v61 = vld [vmem:[%s4982_s1 + $0x8] sm:$0xff]  ;;  %v532_v63 = vld [vmem:[%s4982_s1 + $0x10] sm:$0xff] }
  0x1e   :  { %3582 = vmatpush3.msra.mxu0 %v79_v10  ;;  %v533_v0 = vld [vmem:[%s4982_s1 + $0x18] sm:$0xff]  ;;  %v4470_v1 = vld [vmem:[%s4991_s10 + $0x10] sm:$0xff]  ;;  %v534_v2 = vld [vmem:[%s4982_s1 + $0x20] sm:$0xff] }
  0x1f   :  { %3584 = vmatmul.mubr.msk.f32.vlgmr.msra.gmra.mxu0 %vm94_vm0, %v72_v11  ;;  %3635 = vmatprep.subr.mxu0 %v541_v56  ;;  %v535_v3 = vld [vmem:[%s4982_s1 + $0x28] sm:$0xff]  ;;  %v536_v5 = vld [vmem:[%s4982_s1 + $0x30] sm:$0xff]  ;;  %v537_v6 = vld [vmem:[%s4982_s1 + $0x38] sm:$0xff]  ;;  %s4182_s1 = smov 64  }
  0x20   :  { %3586 = vmatprep.mubr.msk.f32.mxu0 %vm94_vm0, %v73_v12  ;;  %3636 = vmatpush3.msra.mxu0 %v541_v56  ;;  %v4485_v4 = vld [vmem:[%s4991_s10 + $0x8] sm:$0xff]  ;;  %v4500_v7 = vld [vmem:[%s4991_s10] sm:$0xff] }
  0x21   :  { %3637 = vmatprep.subr.mxu0 %v540_v57  ;;  %v3272_v8 = vld [vmem:[%s4987_s6] ss:$0 sm:$0xff] }
  0x22   :  { %3638 = vmatpush3.msra.mxu0 %v540_v57 }
  0x23   :  { %3587 = vmatmul.mubr.msk.f32.gmra.mxu0 %vm94_vm0, %v74_v13  ;;  %3639 = vmatprep.subr.mxu0 %v539_v58 }
  0x24   :  { %3589 = vmatprep.mubr.msk.f32.mxu0 %vm94_vm0, %v75_v14  ;;  %3640 = vmatpush3.msra.mxu0 %v539_v58 }
  0x25   :  { %3641 = vmatprep.subr.mxu0 %v538_v59 }
  0x26   :  { %3642 = vmatpush3.msra.mxu0 %v538_v59 }
  0x27   :  { %3590 = vmatmul.mubr.msk.f32.gmra.mxu0 %vm94_vm0, %v76_v15  ;;  %3666 = vmatprep.subr.mxu0 %v4180_v20 }
  0x28   :  { %3592 = vmatprep.mubr.msk.f32.mxu0 %vm94_vm0, %v77_v16 }
  0x2b   :  { %3593 = vmatmul.mubr.msk.f32.gmra.mxu0 %vm94_vm0, %v78_v17 }
  0x2c   :  { %3643 = vmatprep.mubr.msk.f32.mxu0 %vm66_vm1, %v530_v60 }
  0x2f   :  { %3644 = vmatmul.mubr.msk.f32.vlgmr.msra.gmra.mxu0 %vm66_vm1, %v531_v61 }
  0x30   :  { %3667 = vmatpush3.msra.mxu0 %v4455_v62  ;;  %3646 = vmatprep.mubr.msk.f32.mxu0 %vm66_vm1, %v532_v63 }
  0x31   :  { %3668 = vmatprep.subr.mxu0 %v4180_v20 }
  0x32   :  { %3669 = vmatpush3.msra.mxu0 %v4470_v1 }
  0x33   :  { %3647 = vmatmul.mubr.msk.f32.gmra.mxu0 %vm66_vm1, %v533_v0  ;;  %3670 = vmatprep.subr.mxu0 %v4180_v20 }
  0x34   :  { %3649 = vmatprep.mubr.msk.f32.mxu0 %vm66_vm1, %v534_v2  ;;  %3671 = vmatpush3.msra.mxu0 %v4485_v4 }
  0x35   :  { %3672 = vmatprep.subr.mxu0 %v4180_v20 }
  0x36   :  { %3673 = vmatpush3.msra.mxu0 %v4500_v7 }
  0x37   :  { %3650 = vmatmul.mubr.msk.f32.gmra.mxu0 %vm66_vm1, %v535_v3  ;;  %3688 = vmatprep.subr.mxu0 %v4362_v38 }
  0x38   :  { %3652 = vmatprep.mubr.msk.f32.mxu0 %vm66_vm1, %v536_v5 }
  0x3b   :  { %3653 = vmatmul.mubr.msk.f32.gmra.mxu0 %vm66_vm1, %v537_v6  ;;  %v4555_v6 = vld [vmem:[#allocation9] sm:$0xff] }
  0x3c   :  { %3674 = vmatprep.mubr.msk.f32.mxu0 %vm4181_vm2, %v4180_v20 }
  0xdf   :  { %v3585_v23 = vpop.f32.mrf.mxu0 }
  0xe0   :  { %v191_v24 = vadd.f32 %v3585_v23, %v3263_v22 }
  0xe1   :  { %v185_v25 = vpop.f32.mrf.mxu0 }
  0xe2   :  { %226 = vst.msk [vmem:[#allocation5 + $0x8] sm:$0xff] %vm66_vm1, %v191_v24  ;;  %v186_v26 = vadd.f32 %v3263_v22, %v185_v25 }
  0xe3   :  { %v3588_v27 = vpop.f32.mrf.mxu0 }
  0xe4   :  { %225 = vst.msk [vmem:[#allocation5] sm:$0xff] %vm66_vm1, %v186_v26  ;;  %v201_v28 = vadd.f32 %v3588_v27, %v3263_v22  ;;  %3603 = vmatprep.mubr.msk.f32.mxu1 %vm66_vm1, %v186_v26 }
  0xe5   :  { %v195_v30 = vpop.f32.mrf.mxu0  ;;  %3604 = vmatmul.mubr.msk.f32.vlgmr.msra.gmra.mxu1 %vm66_vm1, %v191_v24 }
  0xe6   :  { %228 = vst.msk [vmem:[#allocation5 + $0x18] sm:$0xff] %vm66_vm1, %v201_v28  ;;  %v196_v31 = vadd.f32 %v3263_v22, %v195_v30  ;;  %3616 = vmatpush3.msra.mxu1 %v392_v21 }
  0xe7   :  { %v3591_v33 = vpop.f32.mrf.mxu0  ;;  %3617 = vmatprep.subr.mxu1 %v391_v29 }
  0xe8   :  { %227 = vst.msk [vmem:[#allocation5 + $0x10] sm:$0xff] %vm66_vm1, %v196_v31  ;;  %v211_v34 = vadd.f32 %v3591_v33, %v3263_v22  ;;  %3606 = vmatprep.mubr.msk.f32.mxu1 %vm66_vm1, %v196_v31  ;;  %3618 = vmatpush3.msra.mxu1 %v391_v29 }
  0xe9   :  { %v205_v36 = vpop.f32.mrf.mxu0  ;;  %3607 = vmatmul.mubr.msk.f32.gmra.mxu1 %vm66_vm1, %v201_v28  ;;  %3619 = vmatprep.subr.mxu1 %v390_v32 }
  0xea   :  { %230 = vst.msk [vmem:[#allocation5 + $0x28] sm:$0xff] %vm66_vm1, %v211_v34  ;;  %v206_v37 = vadd.f32 %v3263_v22, %v205_v36  ;;  %3620 = vmatpush3.msra.mxu1 %v390_v32 }
  0xeb   :  { %v3594_v39 = vpop.f32.mrf.mxu0  ;;  %3621 = vmatprep.subr.mxu1 %v389_v35 }
  0xec   :  { %229 = vst.msk [vmem:[#allocation5 + $0x20] sm:$0xff] %vm66_vm1, %v206_v37  ;;  %v221_v40 = vadd.f32 %v3594_v39, %v3263_v22  ;;  %3609 = vmatprep.mubr.msk.f32.mxu1 %vm66_vm1, %v206_v37  ;;  %3622 = vmatpush3.msra.mxu1 %v389_v35 }
  0xed   :  { %v215_v41 = vpop.f32.mrf.mxu0  ;;  %3610 = vmatmul.mubr.msk.f32.gmra.mxu1 %vm66_vm1, %v211_v34  ;;  %3655 = vmatprep.subr.mxu1 %v4362_v38 }
  0xee   :  { %232 = vst.msk [vmem:[#allocation5 + $0x38] sm:$0xff] %vm66_vm1, %v221_v40  ;;  %v216_v42 = vadd.f32 %v3263_v22, %v215_v41 }
  0xef   :  { %v3645_v39 = vpop.f32.mrf.mxu0 }
  0xf0   :  { %231 = vst.msk [vmem:[#allocation5 + $0x30] sm:$0xff] %vm66_vm1, %v216_v42  ;;  %3612 = vmatprep.mubr.msk.f32.mxu1 %vm66_vm1, %v216_v42  ;;  %672 = vst.msk [vmem:[#allocation8 + $0x8] sm:$0xff] %vm66_vm1, %v3645_v39 }
  0xf1   :  { %3613 = vmatmul.mubr.msk.f32.gmra.mxu1 %vm66_vm1, %v221_v40  ;;  %v632_v40 = vpop.f32.mrf.mxu0 }
  0xf2   :  { %3623 = vmatprep.mubr.msk.f32.mxu1 %vm66_vm1, %v381_v43  ;;  %671 = vst.msk [vmem:[#allocation8] sm:$0xff] %vm66_vm1, %v632_v40 }
  0xf3   :  { %v3648_v41 = vpop.f32.mrf.mxu0 }
  0xf4   :  { %674 = vst.msk [vmem:[#allocation8 + $0x18] sm:$0xff] %vm66_vm1, %v3648_v41 }
  0xf5   :  { %3624 = vmatmul.mubr.msk.f32.vlgmr.msra.gmra.mxu1 %vm66_vm1, %v382_v44  ;;  %v642_v42 = vpop.f32.mrf.mxu0 }
  0xf6   :  { %3656 = vmatpush3.msra.mxu1 %v4362_v38  ;;  %3626 = vmatprep.mubr.msk.f32.mxu1 %vm66_vm1, %v383_v45  ;;  %673 = vst.msk [vmem:[#allocation8 + $0x10] sm:$0xff] %vm66_vm1, %v642_v42 }
  0xf7   :  { %3657 = vmatprep.subr.mxu1 %v4385_v46  ;;  %v3651_v43 = vpop.f32.mrf.mxu0 }
  0xf8   :  { %3658 = vmatpush3.msra.mxu1 %v4385_v46  ;;  %676 = vst.msk [vmem:[#allocation8 + $0x28] sm:$0xff] %vm66_vm1, %v3651_v43 }
  0xf9   :  { %3627 = vmatmul.mubr.msk.f32.gmra.mxu1 %vm66_vm1, %v384_v47  ;;  %3659 = vmatprep.subr.mxu1 %v4396_v48  ;;  %v652_v44 = vpop.f32.mrf.mxu0 }
  0xfa   :  { %3629 = vmatprep.mubr.msk.f32.mxu1 %vm66_vm1, %v385_v49  ;;  %3660 = vmatpush3.msra.mxu1 %v4396_v48  ;;  %675 = vst.msk [vmem:[#allocation8 + $0x20] sm:$0xff] %vm66_vm1, %v652_v44  ;;  %v4542_v49 = vld [vmem:[#allocation9 + $0x18] sm:$0xff] }
  0xfb   :  { %3661 = vmatprep.subr.mxu1 %v4406_v50  ;;  %v3654_v45 = vpop.f32.mrf.mxu0 }
  0xfc   :  { %3662 = vmatpush3.msra.mxu1 %v4406_v50  ;;  %678 = vst.msk [vmem:[#allocation8 + $0x38] sm:$0xff] %vm66_vm1, %v3654_v45 }
  0xfd   :  { %3630 = vmatmul.mubr.msk.f32.gmra.mxu1 %vm66_vm1, %v386_v51  ;;  %v662_v47 = vpop.f32.mrf.mxu0  ;;  %v4544_v51 = vld [vmem:[#allocation9 + $0x10] sm:$0xff]  ;;  %3677 = vmatprep.subr.mxu1 %v4542_v49 }
  0xfe   :  { %3632 = vmatprep.mubr.msk.f32.mxu1 %vm66_vm1, %v387_v52  ;;  %677 = vst.msk [vmem:[#allocation8 + $0x30] sm:$0xff] %vm66_vm1, %v662_v47  ;;  %v4549_v52 = vld [vmem:[#allocation9 + $0x8] sm:$0xff] }
 0x101   :  { %3633 = vmatmul.mubr.msk.f32.gmra.mxu1 %vm66_vm1, %v388_v53 }
 0x102   :  { %3663 = vmatprep.mubr.msk.f32.mxu1 %vm66_vm1, %v704_v54 }
 0x105   :  { %3664 = vmatmul.mubr.msk.f32.vlgmr.msra.gmra.mxu1 %vm66_vm1, %v4427_v55 }
 0x106   :  { %3678 = vmatpush3.msra.mxu1 %v4542_v49 }
 0x107   :  { %3679 = vmatprep.subr.mxu1 %v4544_v51 }
 0x108   :  { %3680 = vmatpush3.msra.mxu1 %v4544_v51 }
 0x109   :  { %3681 = vmatprep.subr.mxu1 %v4549_v52 }
 0x10a   :  { %3682 = vmatpush3.msra.mxu1 %v4549_v52 }
 0x10b   :  { %3683 = vmatprep.subr.mxu1 %v4555_v6 }
 0x10c   :  { %3684 = vmatpush3.msra.mxu1 %v4555_v6 }
 0x10d   :  { %3699 = vmatprep.subr.mxu1 %v4180_v20 }
 0x1a5   :  { %v3605_v9 = vpop.f32.mrf.mxu1 }
 0x1a6   :  { %v340_v10 = vadd.f32 %v3605_v9, %v3272_v8 }
 0x1a7   :  { %v334_v11 = vpop.f32.mrf.mxu1 }
 0x1a8   :  { %374 = vst.msk [vmem:[#allocation6 + $0x8] sm:$0xff] %vm66_vm1, %v340_v10  ;;  %v335_v12 = vadd.f32 %v3272_v8, %v334_v11 }
 0x1a9   :  { %v3608_v13 = vpop.f32.mrf.mxu1 }
 0x1aa   :  { %373 = vst.msk [vmem:[#allocation6] sm:$0xff] %vm66_vm1, %v335_v12  ;;  %v350_v14 = vadd.f32 %v3608_v13, %v3272_v8  ;;  %v894_v13 = vld [vmem:[#allocation8] sm:$0xff] }
 0x1ab   :  { %v344_v15 = vpop.f32.mrf.mxu1 }
 0x1ac   :  { %376 = vst.msk [vmem:[#allocation6 + $0x18] sm:$0xff] %vm66_vm1, %v350_v14  ;;  %v345_v16 = vadd.f32 %v3272_v8, %v344_v15 }
 0x1ad   :  { %v3611_v17 = vpop.f32.mrf.mxu1 }
 0x1ae   :  { %375 = vst.msk [vmem:[#allocation6 + $0x10] sm:$0xff] %vm66_vm1, %v345_v16  ;;  %v360_v18 = vadd.f32 %v3611_v17, %v3272_v8 }
 0x1af   :  { %v354_v19 = vpop.f32.mrf.mxu1  ;;  %v1124_v44 = vld [vmem:[#allocation6 + $0x8] sm:$0xff] }
 0x1b0   :  { %378 = vst.msk [vmem:[#allocation6 + $0x28] sm:$0xff] %vm66_vm1, %v360_v18  ;;  %v355_v21 = vadd.f32 %v3272_v8, %v354_v19  ;;  %v4582_v18 = vld [vmem:[%s4993_s12] ss:$0 sm:$0xff] }
 0x1b1   :  { %v3614_v22 = vpop.f32.mrf.mxu1  ;;  %v805_v36 = vld [vmem:[#allocation6] sm:$0xff] }
 0x1b2   :  { %377 = vst.msk [vmem:[#allocation6 + $0x20] sm:$0xff] %vm66_vm1, %v355_v21  ;;  %v370_v23 = vadd.f32 %v3614_v22, %v3272_v8 }
 0x1b3   :  { %v364_v24 = vpop.f32.mrf.mxu1 }
 0x1b4   :  { %380 = vst.msk [vmem:[#allocation6 + $0x38] sm:$0xff] %vm66_vm1, %v370_v23  ;;  %v365_v25 = vadd.f32 %v3272_v8, %v364_v24  ;;  %v3298_v8 = vld [vmem:[%s4994_s13] ss:$0 sm:$0xff] }
 0x1b5   :  { %v3625_v26 = vpop.f32.mrf.mxu1  ;;  %990 = vrot.lane.b32.xlu1 %v3298_v8, %s4182_s1 }
 0x1b6   :  { %379 = vst.msk [vmem:[#allocation6 + $0x30] sm:$0xff] %vm66_vm1, %v365_v25  ;;  %523 = vst.msk [vmem:[#allocation7 + $0x8] sm:$0xff] %vm66_vm1, %v3625_v26 }
 0x1b7   :  { %v483_v27 = vpop.f32.mrf.mxu1 }
 0x1b8   :  { %522 = vst.msk [vmem:[#allocation7] sm:$0xff] %vm66_vm1, %v483_v27 }
 0x1b9   :  { %v3628_v28 = vpop.f32.mrf.mxu1 }
 0x1ba   :  { %525 = vst.msk [vmem:[#allocation7 + $0x18] sm:$0xff] %vm66_vm1, %v3628_v28 }
 0x1bb   :  { %v493_v29 = vpop.f32.mrf.mxu1 }
 0x1bc   :  { %524 = vst.msk [vmem:[#allocation7 + $0x10] sm:$0xff] %vm66_vm1, %v493_v29 }
 0x1bd   :  { %v3631_v30 = vpop.f32.mrf.mxu1  ;;  %v1199_v8 = vld [vmem:[#allocation7 + $0x8] sm:$0xff] }
 0x1be   :  { %527 = vst.msk [vmem:[#allocation7 + $0x28] sm:$0xff] %vm66_vm1, %v3631_v30 }
 0x1bf   :  { %v503_v31 = vpop.f32.mrf.mxu1  ;;  %v880_v10 = vld [vmem:[#allocation7] sm:$0xff] }
 0x1c0   :  { %526 = vst.msk [vmem:[#allocation7 + $0x20] sm:$0xff] %vm66_vm1, %v503_v31 }
 0x1c1   :  { %v3634_v32 = vpop.f32.mrf.mxu1 }
 0x1c2   :  { %529 = vst.msk [vmem:[#allocation7 + $0x38] sm:$0xff] %vm66_vm1, %v3634_v32 }
 0x1c3   :  { %v513_v33 = vpop.f32.mrf.mxu1 }
 0x1c4   :  { %528 = vst.msk [vmem:[#allocation7 + $0x30] sm:$0xff] %vm66_vm1, %v513_v33 }
 0x1c5   :  { %v3665_v34 = vpop.f32.mrf.mxu1 }
 0x1c6   :  { %882 = vrot.lane.b32.xlu0 %v3665_v34, %s4182_s1 }
 0x1c7   :  { %v796_v35 = vpop.f32.mrf.mxu1 }
 0x1c8   :  { %v806_v37 = vadd.f32 %v805_v36, %v796_v35 }
 0x1ca   :  { %3675 = vmatmul.mubr.msk.f32.vlgmr.msra.gmra.mxu0 %vm66_vm1, %v806_v37 }
 0x1cb   :  { %3689 = vmatpush3.msra.mxu0 %v4362_v38 }
 0x1cc   :  { %3690 = vmatprep.subr.mxu0 %v4385_v46 }
 0x1cd   :  { %3691 = vmatpush3.msra.mxu0 %v4385_v46 }
 0x1ce   :  { %3692 = vmatprep.subr.mxu0 %v4396_v48 }
 0x1cf   :  { %3693 = vmatpush3.msra.mxu0 %v4396_v48 }
 0x1d0   :  { %3694 = vmatprep.subr.mxu0 %v4406_v50 }
 0x1d1   :  { %3695 = vmatpush3.msra.mxu0 %v4406_v50 }
 0x1d2   :  { %3710 = vmatprep.subr.mxu0 %v4542_v49 }
 0x227   :  { %v4577_v16 = vpop.permute.xlu1 %990 }
 0x238   :  { %v883_v53 = vpop.permute.xlu0 %882 }
 0x28a   :  { %v876_v54 = vpop.f32.mrf.mxu0 }
 0x28b   :  { %v885_v56 = vmul.f32 %v883_v53, %v876_v54  ;;  %v895_v57 = vmul.f32 %v876_v54, %v796_v35 }
 0x28c   :  { %v3676_v58 = vpop.f32.mrf.mxu0 }
 0x28d   :  { %v3303_v59 = vmul.f32 -0.17677669, %v885_v56  ;;  %v3304_v60 = vmul.f32 -0.17677669, %v895_v57 }
 0x28f   :  { %v888_v61 = vmul.f32 1.442695, %v3303_v59  ;;  %v898_v63 = vmul.f32 1.442695, %v3304_v60 }
 0x291   :  { %3927 = vpow2.f32 %v888_v61 }
 0x292   :  { %3929 = vpow2.f32 %v898_v63 }
 0x29e   :  { %v3928_v0 = vpop.eup %3927 }
 0x29f   :  { %v3930_v2 = vpop.eup %3929  ;;  %v890_v3 = vadd.f32 1.0, %v3928_v0 }
 0x2a0   :  { %v900_v5 = vadd.f32 1.0, %v3930_v2 }
 0x2a1   :  { %3931 = vrcp.f32 %v890_v3 }
 0x2a2   :  { %3933 = vrcp.f32 %v900_v5 }
 0x2ae   :  { %v3932_v9 = vpop.eup %3931 }
 0x2af   :  { %v3934_v11 = vpop.eup %3933  ;;  %v893_v12 = vmul.f32 %v3932_v9, %v880_v10 }
 0x2b0   :  { %904 = vrot.lane.b32.xlu0 %v3934_v11, %s4183_s0  ;;  %v1213_v11 = vld [vmem:[#allocation8 + $0x8] sm:$0xff] }
 0x2b1   :  { %3685 = vmatprep.mubr.msk.f32.mxu1 %vm66_vm1, %v893_v12 }
 0x322   :  { %v905_v14 = vpop.permute.xlu0 %904 }
 0x323   :  { %v907_v15 = vmul.f32 %v905_v14, %v894_v13 }
 0x325   :  { %3686 = vmatmul.mubr.msk.f32.vlgmr.msra.gmra.mxu1 %vm66_vm1, %v907_v15 }
 0x326   :  { %3700 = vmatpush3.msra.mxu1 %v4455_v62  ;;  %3707 = vmatprep.mubr.msk.f32.mxu1 %vm4181_vm2, %v4180_v20 }
 0x327   :  { %3701 = vmatprep.subr.mxu1 %v4180_v20 }
 0x328   :  { %3702 = vmatpush3.msra.mxu1 %v4470_v1 }
 0x329   :  { %3703 = vmatprep.subr.mxu1 %v4180_v20 }
 0x32a   :  { %3704 = vmatpush3.msra.mxu1 %v4485_v4 }
 0x32b   :  { %3705 = vmatprep.subr.mxu1 %v4180_v20 }
 0x32c   :  { %3706 = vmatpush3.msra.mxu1 %v4500_v7 }
 0x32d   :  { %3721 = vmatprep.subr.mxu1 %v4362_v38 }
 0x3e5   :  { %v3687_v17 = vpop.f32.mrf.mxu1 }
 0x3e6   :  { %v993_v19 = vadd.f32 %v3687_v17, %v4577_v16 }
 0x3e7   :  { %v980_v21 = vpop.f32.mrf.mxu1 }
 0x3e8   :  { %v3308_v22 = vmul.f32 -1.442695, %v993_v19  ;;  %v989_v23 = vadd.f32 %v4582_v18, %v980_v21 }
 0x3ea   :  { %3935 = vpow2.f32 %v3308_v22  ;;  %v3307_v24 = vmul.f32 -1.442695, %v989_v23 }
 0x3ec   :  { %3937 = vpow2.f32 %v3307_v24 }
 0x3f7   :  { %v3936_v25 = vpop.eup %3935 }
 0x3f8   :  { %v1011_v26 = vadd.f32 1.0, %v3936_v25 }
 0x3f9   :  { %v3938_v27 = vpop.eup %3937 }
 0x3fa   :  { %3939 = vrcp.f32 %v1011_v26  ;;  %v998_v28 = vadd.f32 1.0, %v3938_v27 }
 0x3fc   :  { %3941 = vrcp.f32 %v998_v28 }
 0x3fd   :  { %3943 = vtanh.f32 %v989_v23 }
 0x3fe   :  { %3945 = vtanh.f32 %v993_v19 }
 0x407   :  { %v3940_v29 = vpop.eup %3939 }
 0x408   :  { %1015 = vrot.lane.b32.xlu0 %v3940_v29, %s4183_s0 }
 0x409   :  { %v3942_v30 = vpop.eup %3941 }
 0x40a   :  { %1002 = vrot.lane.b32.xlu1 %v3942_v30, %s4183_s0  ;;  %v3944_v31 = vpop.eup %3943 }
 0x40b   :  { %v3946_v36 = vpop.eup %3945 }
 0x47a   :  { %v1016_v35 = vpop.permute.xlu0 %1015 }
 0x47b   :  { %v1018_v37 = vmul.f32 %v3946_v36, %v1016_v35 }
 0x47c   :  { %v1003_v32 = vpop.permute.xlu1 %1002 }
 0x47d   :  { %v1005_v33 = vmul.f32 %v3944_v31, %v1003_v32 }
 0x47f   :  { %v4589_v34 = vadd.f32 %v1005_v33, %v4427_v55 }
 0x481   :  { %1020 = vrot.lane.b32.xlu1 %v4589_v34, %s4182_s1 }
 0x4f3   :  { %v1021_v39 = vpop.permute.xlu1 %1020 }
 0x4f4   :  { %v1023_v40 = vadd.f32 %v1021_v39, %v1018_v37  ;;  %1043 = vrot.lane.b32.xlu1 %v1021_v39, %s4182_s1 }
 0x4f6   :  { %1026 = vrot.lane.b32.xlu0 %v1023_v40, %s4182_s1 }
 0x566   :  { %v1044_v42 = vpop.permute.xlu1 %1043 }
 0x568   :  { %v4595_v41 = vpop.permute.xlu0 %1026 }
 0x569   :  { %3696 = vmatprep.mubr.msk.f32.mxu0 %vm66_vm1, %v4595_v41 }
 0x56a   :  { %3697 = vmatmul.mubr.msk.f32.vlgmr.msra.gmra.mxu0 %vm66_vm1, %v1044_v42 }
 0x56b   :  { %3711 = vmatpush3.msra.mxu0 %v4542_v49 }
 0x56c   :  { %3712 = vmatprep.subr.mxu0 %v4544_v51 }
 0x56d   :  { %3713 = vmatpush3.msra.mxu0 %v4544_v51 }
 0x56e   :  { %3714 = vmatprep.subr.mxu0 %v4549_v52 }
 0x56f   :  { %3715 = vmatpush3.msra.mxu0 %v4549_v52 }
 0x570   :  { %3716 = vmatprep.subr.mxu0 %v4555_v6 }
 0x571   :  { %3717 = vmatpush3.msra.mxu0 %v4555_v6 }
 0x572   :  { %3732 = vmatprep.subr.mxu0 %v4180_v20 }
 0x62a   :  { %v3698_v55 = vpop.f32.mrf.mxu0 }
 0x62b   :  { %1201 = vrot.lane.b32.xlu0 %v3698_v55, %s4182_s1 }
 0x62c   :  { %v1115_v43 = vpop.f32.mrf.mxu0 }
 0x62d   :  { %v1125_v45 = vadd.f32 %v1124_v44, %v1115_v43 }
 0x62f   :  { %3708 = vmatmul.mubr.msk.f32.vlgmr.msra.gmra.mxu1 %vm66_vm1, %v1125_v45 }
 0x630   :  { %3722 = vmatpush3.msra.mxu1 %v4362_v38 }
 0x631   :  { %3723 = vmatprep.subr.mxu1 %v4385_v46 }
 0x632   :  { %3724 = vmatpush3.msra.mxu1 %v4385_v46 }
 0x633   :  { %3725 = vmatprep.subr.mxu1 %v4396_v48 }
 0x634   :  { %3726 = vmatpush3.msra.mxu1 %v4396_v48 }
 0x635   :  { %3727 = vmatprep.subr.mxu1 %v4406_v50 }
 0x636   :  { %3728 = vmatpush3.msra.mxu1 %v4406_v50 }
 0x637   :  { %3743 = vmatprep.subr.mxu1 %v4542_v49 }
 0x69d   :  { %v1202_v47 = vpop.permute.xlu0 %1201 }
 0x6ef   :  { %v1195_v53 = vpop.f32.mrf.mxu1 }
 0x6f0   :  { %v1204_v54 = vmul.f32 %v1202_v47, %v1195_v53  ;;  %v1214_v56 = vmul.f32 %v1195_v53, %v1115_v43  ;;  %v1440_v43 = vld [vmem:[#allocation6 + $0x10] sm:$0xff] }
 0x6f1   :  { %v3709_v57 = vpop.f32.mrf.mxu1 }
 0x6f2   :  { %v3313_v58 = vmul.f32 -0.17677669, %v1204_v54  ;;  %v3314_v59 = vmul.f32 -0.17677669, %v1214_v56 }
 0x6f4   :  { %v1207_v60 = vmul.f32 1.442695, %v3313_v58  ;;  %v1217_v61 = vmul.f32 1.442695, %v3314_v59 }
 0x6f6   :  { %3947 = vpow2.f32 %v1207_v60 }
 0x6f7   :  { %3949 = vpow2.f32 %v1217_v61 }
 0x703   :  { %v3948_v63 = vpop.eup %3947 }
 0x704   :  { %v3950_v0 = vpop.eup %3949  ;;  %v1209_v2 = vadd.f32 1.0, %v3948_v63 }
 0x705   :  { %v1219_v3 = vadd.f32 1.0, %v3950_v0 }
 0x706   :  { %3951 = vrcp.f32 %v1209_v2 }
 0x707   :  { %3953 = vrcp.f32 %v1219_v3 }
 0x713   :  { %v3952_v5 = vpop.eup %3951 }
 0x714   :  { %v3954_v9 = vpop.eup %3953  ;;  %v1212_v10 = vmul.f32 %v3952_v5, %v1199_v8  ;;  %v1515_v5 = vld [vmem:[#allocation7 + $0x10] sm:$0xff] }
 0x715   :  { %1223 = vrot.lane.b32.xlu1 %v3954_v9, %s4183_s0 }
 0x716   :  { %3718 = vmatprep.mubr.msk.f32.mxu0 %vm66_vm1, %v1212_v10  ;;  %v1529_v10 = vld [vmem:[#allocation8 + $0x10] sm:$0xff] }
 0x787   :  { %v1224_v12 = vpop.permute.xlu1 %1223 }
 0x788   :  { %v1226_v13 = vmul.f32 %v1224_v12, %v1213_v11 }
 0x78a   :  { %3719 = vmatmul.mubr.msk.f32.vlgmr.msra.gmra.mxu0 %vm66_vm1, %v1226_v13 }
 0x78b   :  { %3733 = vmatpush3.msra.mxu0 %v4455_v62  ;;  %3740 = vmatprep.mubr.msk.f32.mxu0 %vm4181_vm2, %v4180_v20 }
 0x78c   :  { %3734 = vmatprep.subr.mxu0 %v4180_v20 }
 0x78d   :  { %3735 = vmatpush3.msra.mxu0 %v4470_v1 }
 0x78e   :  { %3736 = vmatprep.subr.mxu0 %v4180_v20 }
 0x78f   :  { %3737 = vmatpush3.msra.mxu0 %v4485_v4 }
 0x790   :  { %3738 = vmatprep.subr.mxu0 %v4180_v20 }
 0x791   :  { %3739 = vmatpush3.msra.mxu0 %v4500_v7 }
 0x792   :  { %3754 = vmatprep.subr.mxu0 %v4362_v38 }
 0x84a   :  { %v3720_v14 = vpop.f32.mrf.mxu0 }
 0x84b   :  { %v1309_v15 = vadd.f32 %v3720_v14, %v4577_v16 }
 0x84c   :  { %v1299_v17 = vpop.f32.mrf.mxu0 }
 0x84d   :  { %v3318_v19 = vmul.f32 -1.442695, %v1309_v15  ;;  %v1308_v21 = vadd.f32 %v4582_v18, %v1299_v17 }
 0x84f   :  { %3955 = vpow2.f32 %v3318_v19  ;;  %v3317_v22 = vmul.f32 -1.442695, %v1308_v21 }
 0x851   :  { %3957 = vpow2.f32 %v3317_v22 }
 0x85c   :  { %v3956_v23 = vpop.eup %3955 }
 0x85d   :  { %v1327_v24 = vadd.f32 1.0, %v3956_v23 }
 0x85e   :  { %v3958_v25 = vpop.eup %3957 }
 0x85f   :  { %3959 = vrcp.f32 %v1327_v24  ;;  %v1314_v26 = vadd.f32 1.0, %v3958_v25 }
 0x861   :  { %3961 = vrcp.f32 %v1314_v26 }
 0x862   :  { %3963 = vtanh.f32 %v1308_v21 }
 0x863   :  { %3965 = vtanh.f32 %v1309_v15 }
 0x86c   :  { %v3960_v27 = vpop.eup %3959 }
 0x86d   :  { %1331 = vrot.lane.b32.xlu1 %v3960_v27, %s4183_s0 }
 0x86e   :  { %v3962_v28 = vpop.eup %3961 }
 0x86f   :  { %1318 = vrot.lane.b32.xlu0 %v3962_v28, %s4183_s0  ;;  %v3964_v29 = vpop.eup %3963 }
 0x870   :  { %v3966_v35 = vpop.eup %3965 }
 0x8df   :  { %v1332_v33 = vpop.permute.xlu1 %1331 }
 0x8e0   :  { %v1334_v36 = vmul.f32 %v3966_v35, %v1332_v33 }
 0x8e1   :  { %v1319_v30 = vpop.permute.xlu0 %1318 }
 0x8e2   :  { %v1321_v31 = vmul.f32 %v3964_v29, %v1319_v30 }
 0x8e4   :  { %v4636_v32 = vadd.f32 %v1321_v31, %v4589_v34 }
 0x8e6   :  { %1336 = vrot.lane.b32.xlu0 %v4636_v32, %s4182_s1 }
 0x958   :  { %v1337_v37 = vpop.permute.xlu0 %1336 }
 0x959   :  { %v1339_v39 = vadd.f32 %v1337_v37, %v1334_v36  ;;  %1359 = vrot.lane.b32.xlu0 %v1337_v37, %s4182_s1 }
 0x95b   :  { %1342 = vrot.lane.b32.xlu1 %v1339_v39, %s4182_s1 }
 0x9cb   :  { %v1360_v42 = vpop.permute.xlu0 %1359 }
 0x9cd   :  { %v4642_v40 = vpop.permute.xlu1 %1342 }
 0x9ce   :  { %3729 = vmatprep.mubr.msk.f32.mxu1 %vm66_vm1, %v4642_v40 }
 0x9cf   :  { %3730 = vmatmul.mubr.msk.f32.vlgmr.msra.gmra.mxu1 %vm66_vm1, %v1360_v42 }
 0x9d0   :  { %3744 = vmatpush3.msra.mxu1 %v4542_v49 }
 0x9d1   :  { %3745 = vmatprep.subr.mxu1 %v4544_v51 }
 0x9d2   :  { %3746 = vmatpush3.msra.mxu1 %v4544_v51 }
 0x9d3   :  { %3747 = vmatprep.subr.mxu1 %v4549_v52 }
 0x9d4   :  { %3748 = vmatpush3.msra.mxu1 %v4549_v52 }
 0x9d5   :  { %3749 = vmatprep.subr.mxu1 %v4555_v6 }
 0x9d6   :  { %3750 = vmatpush3.msra.mxu1 %v4555_v6 }
 0x9d7   :  { %3765 = vmatprep.subr.mxu1 %v4180_v20 }
 0xa8f   :  { %v3731_v34 = vpop.f32.mrf.mxu1 }
 0xa90   :  { %1517 = vrot.lane.b32.xlu1 %v3731_v34, %s4182_s1 }
 0xa91   :  { %v1431_v55 = vpop.f32.mrf.mxu1 }
 0xa92   :  { %v1441_v44 = vadd.f32 %v1440_v43, %v1431_v55  ;;  %v1756_v43 = vld [vmem:[#allocation6 + $0x18] sm:$0xff] }
 0xa94   :  { %3741 = vmatmul.mubr.msk.f32.vlgmr.msra.gmra.mxu0 %vm66_vm1, %v1441_v44 }
 0xa95   :  { %3755 = vmatpush3.msra.mxu0 %v4362_v38 }
 0xa96   :  { %3756 = vmatprep.subr.mxu0 %v4385_v46 }
 0xa97   :  { %3757 = vmatpush3.msra.mxu0 %v4385_v46 }
 0xa98   :  { %3758 = vmatprep.subr.mxu0 %v4396_v48 }
 0xa99   :  { %3759 = vmatpush3.msra.mxu0 %v4396_v48 }
 0xa9a   :  { %3760 = vmatprep.subr.mxu0 %v4406_v50 }
 0xa9b   :  { %3761 = vmatpush3.msra.mxu0 %v4406_v50 }
 0xa9c   :  { %3776 = vmatprep.subr.mxu0 %v4542_v49 }
 0xb02   :  { %v1518_v45 = vpop.permute.xlu1 %1517 }
 0xb54   :  { %v1511_v47 = vpop.f32.mrf.mxu0 }
 0xb55   :  { %v1520_v53 = vmul.f32 %v1518_v45, %v1511_v47  ;;  %v1530_v54 = vmul.f32 %v1511_v47, %v1431_v55 }
 0xb56   :  { %v3742_v56 = vpop.f32.mrf.mxu0 }
 0xb57   :  { %v3323_v57 = vmul.f32 -0.17677669, %v1520_v53  ;;  %v3324_v58 = vmul.f32 -0.17677669, %v1530_v54 }
 0xb59   :  { %v1523_v59 = vmul.f32 1.442695, %v3323_v57  ;;  %v1533_v60 = vmul.f32 1.442695, %v3324_v58 }
 0xb5b   :  { %3967 = vpow2.f32 %v1523_v59 }
 0xb5c   :  { %3969 = vpow2.f32 %v1533_v60 }
 0xb68   :  { %v3968_v61 = vpop.eup %3967 }
 0xb69   :  { %v3970_v63 = vpop.eup %3969  ;;  %v1525_v0 = vadd.f32 1.0, %v3968_v61 }
 0xb6a   :  { %v1535_v2 = vadd.f32 1.0, %v3970_v63 }
 0xb6b   :  { %3971 = vrcp.f32 %v1525_v0  ;;  %v1831_v0 = vld [vmem:[#allocation7 + $0x18] sm:$0xff] }
 0xb6c   :  { %3973 = vrcp.f32 %v1535_v2 }
 0xb78   :  { %v3972_v3 = vpop.eup %3971 }
 0xb79   :  { %v3974_v8 = vpop.eup %3973  ;;  %v1528_v9 = vmul.f32 %v3972_v3, %v1515_v5  ;;  %v1845_v5 = vld [vmem:[#allocation8 + $0x18] sm:$0xff] }
 0xb7a   :  { %1539 = vrot.lane.b32.xlu0 %v3974_v8, %s4183_s0 }
 0xb7b   :  { %3751 = vmatprep.mubr.msk.f32.mxu1 %vm66_vm1, %v1528_v9 }
 0xbec   :  { %v1540_v11 = vpop.permute.xlu0 %1539 }
 0xbed   :  { %v1542_v12 = vmul.f32 %v1540_v11, %v1529_v10 }
 0xbef   :  { %3752 = vmatmul.mubr.msk.f32.vlgmr.msra.gmra.mxu1 %vm66_vm1, %v1542_v12 }
 0xbf0   :  { %3766 = vmatpush3.msra.mxu1 %v4455_v62  ;;  %3773 = vmatprep.mubr.msk.f32.mxu1 %vm4181_vm2, %v4180_v20 }
 0xbf1   :  { %3767 = vmatprep.subr.mxu1 %v4180_v20 }
 0xbf2   :  { %3768 = vmatpush3.msra.mxu1 %v4470_v1 }
 0xbf3   :  { %3769 = vmatprep.subr.mxu1 %v4180_v20 }
 0xbf4   :  { %3770 = vmatpush3.msra.mxu1 %v4485_v4 }
 0xbf5   :  { %3771 = vmatprep.subr.mxu1 %v4180_v20 }
 0xbf6   :  { %3772 = vmatpush3.msra.mxu1 %v4500_v7 }
 0xbf7   :  { %3787 = vmatprep.subr.mxu1 %v4362_v38 }
 0xcaf   :  { %v3753_v13 = vpop.f32.mrf.mxu1 }
 0xcb0   :  { %v1625_v14 = vadd.f32 %v3753_v13, %v4577_v16 }
 0xcb1   :  { %v1615_v15 = vpop.f32.mrf.mxu1 }
 0xcb2   :  { %v3328_v17 = vmul.f32 -1.442695, %v1625_v14  ;;  %v1624_v19 = vadd.f32 %v4582_v18, %v1615_v15 }
 0xcb4   :  { %3975 = vpow2.f32 %v3328_v17  ;;  %v3327_v21 = vmul.f32 -1.442695, %v1624_v19 }
 0xcb6   :  { %3977 = vpow2.f32 %v3327_v21 }
 0xcc1   :  { %v3976_v22 = vpop.eup %3975 }
 0xcc2   :  { %v1643_v23 = vadd.f32 1.0, %v3976_v22 }
 0xcc3   :  { %v3978_v24 = vpop.eup %3977 }
 0xcc4   :  { %3979 = vrcp.f32 %v1643_v23  ;;  %v1630_v25 = vadd.f32 1.0, %v3978_v24 }
 0xcc6   :  { %3981 = vrcp.f32 %v1630_v25 }
 0xcc7   :  { %3983 = vtanh.f32 %v1624_v19 }
 0xcc8   :  { %3985 = vtanh.f32 %v1625_v14 }
 0xcd1   :  { %v3980_v26 = vpop.eup %3979 }
 0xcd2   :  { %1647 = vrot.lane.b32.xlu0 %v3980_v26, %s4183_s0 }
 0xcd3   :  { %v3982_v27 = vpop.eup %3981 }
 0xcd4   :  { %1634 = vrot.lane.b32.xlu1 %v3982_v27, %s4183_s0  ;;  %v3984_v28 = vpop.eup %3983 }
 0xcd5   :  { %v3986_v35 = vpop.eup %3985 }
 0xd44   :  { %v1648_v33 = vpop.permute.xlu0 %1647 }
 0xd45   :  { %v1650_v36 = vmul.f32 %v3986_v35, %v1648_v33 }
 0xd46   :  { %v1635_v29 = vpop.permute.xlu1 %1634 }
 0xd47   :  { %v1637_v30 = vmul.f32 %v3984_v28, %v1635_v29 }
 0xd49   :  { %v4683_v31 = vadd.f32 %v1637_v30, %v4636_v32 }
 0xd4b   :  { %1652 = vrot.lane.b32.xlu1 %v4683_v31, %s4182_s1 }
 0xdbd   :  { %v1653_v37 = vpop.permute.xlu1 %1652 }
 0xdbe   :  { %v1655_v39 = vadd.f32 %v1653_v37, %v1650_v36  ;;  %1675 = vrot.lane.b32.xlu1 %v1653_v37, %s4182_s1  ;;  %v2072_v37 = vld [vmem:[#allocation6 + $0x20] sm:$0xff] }
 0xdc0   :  { %1658 = vrot.lane.b32.xlu0 %v1655_v39, %s4182_s1 }
 0xe30   :  { %v1676_v34 = vpop.permute.xlu1 %1675 }
 0xe32   :  { %v4689_v42 = vpop.permute.xlu0 %1658 }
 0xe33   :  { %3762 = vmatprep.mubr.msk.f32.mxu0 %vm66_vm1, %v4689_v42 }
 0xe34   :  { %3763 = vmatmul.mubr.msk.f32.vlgmr.msra.gmra.mxu0 %vm66_vm1, %v1676_v34  ;;  %v4754_v34 = vld [vmem:[%s4990_s9 + $0x18] sm:$0xff] }
 0xe35   :  { %3777 = vmatpush3.msra.mxu0 %v4542_v49 }
 0xe36   :  { %3778 = vmatprep.subr.mxu0 %v4544_v51 }
 0xe37   :  { %3779 = vmatpush3.msra.mxu0 %v4544_v51 }
 0xe38   :  { %3780 = vmatprep.subr.mxu0 %v4549_v52 }
 0xe39   :  { %3781 = vmatpush3.msra.mxu0 %v4549_v52 }
 0xe3a   :  { %3782 = vmatprep.subr.mxu0 %v4555_v6 }
 0xe3b   :  { %3783 = vmatpush3.msra.mxu0 %v4555_v6 }
 0xe3c   :  { %3798 = vmatprep.subr.mxu0 %v4180_v20 }
 0xef4   :  { %v3764_v32 = vpop.f32.mrf.mxu0 }
 0xef5   :  { %1833 = vrot.lane.b32.xlu0 %v3764_v32, %s4182_s1  ;;  %v4760_v32 = vld [vmem:[%s4990_s9 + $0x10] sm:$0xff] }
 0xef6   :  { %v1747_v55 = vpop.f32.mrf.mxu0 }
 0xef7   :  { %v1757_v44 = vadd.f32 %v1756_v43, %v1747_v55  ;;  %v4774_v43 = vld [vmem:[%s4990_s9] sm:$0xff] }
 0xef9   :  { %3774 = vmatmul.mubr.msk.f32.vlgmr.msra.gmra.mxu1 %vm66_vm1, %v1757_v44 }
 0xefa   :  { %3788 = vmatpush3.msra.mxu1 %v4362_v38 }
 0xefb   :  { %3789 = vmatprep.subr.mxu1 %v4385_v46 }
 0xefc   :  { %3790 = vmatpush3.msra.mxu1 %v4385_v46 }
 0xefd   :  { %3791 = vmatprep.subr.mxu1 %v4396_v48 }
 0xefe   :  { %3792 = vmatpush3.msra.mxu1 %v4396_v48 }
 0xeff   :  { %3793 = vmatprep.subr.mxu1 %v4406_v50 }
 0xf00   :  { %3794 = vmatpush3.msra.mxu1 %v4406_v50 }
 0xf01   :  { %3809 = vmatprep.subr.mxu1 %v4542_v49 }
 0xf67   :  { %v1834_v45 = vpop.permute.xlu0 %1833 }
 0xfb9   :  { %v1827_v47 = vpop.f32.mrf.mxu1 }
 0xfba   :  { %v1836_v53 = vmul.f32 %v1834_v45, %v1827_v47  ;;  %v1846_v54 = vmul.f32 %v1827_v47, %v1747_v55  ;;  %v4767_v55 = vld [vmem:[%s4990_s9 + $0x8] sm:$0xff] }
 0xfbb   :  { %v3775_v56 = vpop.f32.mrf.mxu1 }
 0xfbc   :  { %v3333_v57 = vmul.f32 -0.17677669, %v1836_v53  ;;  %v3334_v58 = vmul.f32 -0.17677669, %v1846_v54 }
 0xfbe   :  { %v1839_v59 = vmul.f32 1.442695, %v3333_v57  ;;  %v1849_v60 = vmul.f32 1.442695, %v3334_v58 }
 0xfc0   :  { %3987 = vpow2.f32 %v1839_v59 }
 0xfc1   :  { %3989 = vpow2.f32 %v1849_v60 }
 0xfcd   :  { %v3988_v46 = vpop.eup %3987 }
 0xfce   :  { %v3990_v61 = vpop.eup %3989  ;;  %v1841_v48 = vadd.f32 1.0, %v3988_v46 }
 0xfcf   :  { %v1851_v63 = vadd.f32 1.0, %v3990_v61 }
 0xfd0   :  { %3991 = vrcp.f32 %v1841_v48 }
 0xfd1   :  { %3993 = vrcp.f32 %v1851_v63 }
 0xfdd   :  { %v3992_v50 = vpop.eup %3991 }
 0xfde   :  { %v3994_v2 = vpop.eup %3993  ;;  %v1844_v3 = vmul.f32 %v3992_v50, %v1831_v0  ;;  %v2147_v50 = vld [vmem:[#allocation7 + $0x20] sm:$0xff] }
 0xfdf   :  { %1855 = vrot.lane.b32.xlu1 %v3994_v2, %s4183_s0 }
 0xfe0   :  { %3784 = vmatprep.mubr.msk.f32.mxu0 %vm66_vm1, %v1844_v3  ;;  %v2161_v3 = vld [vmem:[#allocation8 + $0x20] sm:$0xff] }
0x1051   :  { %v1856_v8 = vpop.permute.xlu1 %1855 }
0x1052   :  { %v1858_v9 = vmul.f32 %v1856_v8, %v1845_v5 }
0x1054   :  { %3785 = vmatmul.mubr.msk.f32.vlgmr.msra.gmra.mxu0 %vm66_vm1, %v1858_v9  ;;  %v4785_v9 = vld [vmem:[%s4991_s10 + $0x18] sm:$0xff] }
0x1055   :  { %3799 = vmatpush3.msra.mxu0 %v4455_v62  ;;  %3806 = vmatprep.mubr.msk.f32.mxu0 %vm4181_vm2, %v4180_v20 }
0x1056   :  { %3800 = vmatprep.subr.mxu0 %v4180_v20 }
0x1057   :  { %3801 = vmatpush3.msra.mxu0 %v4470_v1 }
0x1058   :  { %3802 = vmatprep.subr.mxu0 %v4180_v20 }
0x1059   :  { %3803 = vmatpush3.msra.mxu0 %v4485_v4 }
0x105a   :  { %3804 = vmatprep.subr.mxu0 %v4180_v20 }
0x105b   :  { %3805 = vmatpush3.msra.mxu0 %v4500_v7 }
0x105c   :  { %3820 = vmatprep.subr.mxu0 %v4362_v38 }
0x1114   :  { %v3786_v10 = vpop.f32.mrf.mxu0 }
0x1115   :  { %v1941_v62 = vadd.f32 %v3786_v10, %v4577_v16  ;;  %v4794_v10 = vld [vmem:[%s4991_s10 + $0x10] sm:$0xff] }
0x1116   :  { %v1931_v11 = vpop.f32.mrf.mxu0 }
0x1117   :  { %v3338_v12 = vmul.f32 -1.442695, %v1941_v62  ;;  %v1940_v13 = vadd.f32 %v4582_v18, %v1931_v11 }
0x1119   :  { %3995 = vpow2.f32 %v3338_v12  ;;  %v3337_v14 = vmul.f32 -1.442695, %v1940_v13 }
0x111b   :  { %3997 = vpow2.f32 %v3337_v14 }
0x1126   :  { %v3996_v1 = vpop.eup %3995 }
0x1127   :  { %v1959_v15 = vadd.f32 1.0, %v3996_v1 }
0x1128   :  { %v3998_v17 = vpop.eup %3997 }
0x1129   :  { %3999 = vrcp.f32 %v1959_v15  ;;  %v1946_v19 = vadd.f32 1.0, %v3998_v17 }
0x112b   :  { %4001 = vrcp.f32 %v1946_v19 }
0x112c   :  { %4003 = vtanh.f32 %v1940_v13 }
0x112d   :  { %4005 = vtanh.f32 %v1941_v62 }
0x1136   :  { %v4000_v21 = vpop.eup %3999 }
0x1137   :  { %1963 = vrot.lane.b32.xlu1 %v4000_v21, %s4183_s0 }
0x1138   :  { %v4002_v38 = vpop.eup %4001 }
0x1139   :  { %1950 = vrot.lane.b32.xlu0 %v4002_v38, %s4183_s0  ;;  %v4004_v22 = vpop.eup %4003 }
0x113a   :  { %v4006_v27 = vpop.eup %4005 }
0x11a9   :  { %v1964_v26 = vpop.permute.xlu1 %1963 }
0x11aa   :  { %v1966_v28 = vmul.f32 %v4006_v27, %v1964_v26 }
0x11ab   :  { %v1951_v23 = vpop.permute.xlu0 %1950 }
0x11ac   :  { %v1953_v24 = vmul.f32 %v4004_v22, %v1951_v23 }
0x11ae   :  { %v4730_v25 = vadd.f32 %v1953_v24, %v4683_v31 }
0x11b0   :  { %1968 = vrot.lane.b32.xlu0 %v4730_v25, %s4182_s1 }
0x1222   :  { %v1969_v29 = vpop.permute.xlu0 %1968 }
0x1223   :  { %v1971_v30 = vadd.f32 %v1969_v29, %v1966_v28  ;;  %1991 = vrot.lane.b32.xlu0 %v1969_v29, %s4182_s1 }
0x1225   :  { %1974 = vrot.lane.b32.xlu1 %v1971_v30, %s4182_s1 }
0x1295   :  { %v1992_v35 = vpop.permute.xlu0 %1991 }
0x1297   :  { %v4736_v33 = vpop.permute.xlu1 %1974 }
0x1298   :  { %3795 = vmatprep.mubr.msk.f32.mxu1 %vm66_vm1, %v4736_v33 }
0x1299   :  { %3796 = vmatmul.mubr.msk.f32.vlgmr.msra.gmra.mxu1 %vm66_vm1, %v1992_v35 }
0x129a   :  { %3810 = vmatpush3.msra.mxu1 %v4542_v49 }
0x129b   :  { %3811 = vmatprep.subr.mxu1 %v4544_v51 }
0x129c   :  { %3812 = vmatpush3.msra.mxu1 %v4544_v51 }
0x129d   :  { %3813 = vmatprep.subr.mxu1 %v4549_v52 }
0x129e   :  { %3814 = vmatpush3.msra.mxu1 %v4549_v52 }
0x129f   :  { %3815 = vmatprep.subr.mxu1 %v4555_v6 }
0x12a0   :  { %3816 = vmatpush3.msra.mxu1 %v4555_v6 }
0x12a1   :  { %3831 = vmatprep.subr.mxu1 %v4180_v20 }
0x1359   :  { %v3797_v31 = vpop.f32.mrf.mxu1 }
0x135a   :  { %2149 = vrot.lane.b32.xlu1 %v3797_v31, %s4182_s1 }
0x135b   :  { %v2063_v36 = vpop.f32.mrf.mxu1 }
0x135c   :  { %v2073_v39 = vadd.f32 %v2072_v37, %v2063_v36  ;;  %v2388_v37 = vld [vmem:[#allocation6 + $0x28] sm:$0xff] }
0x135e   :  { %3807 = vmatmul.mubr.msk.f32.vlgmr.msra.gmra.mxu0 %vm66_vm1, %v2073_v39 }
0x135f   :  { %3821 = vmatpush3.msra.mxu0 %v4754_v34 }
0x1360   :  { %3822 = vmatprep.subr.mxu0 %v4760_v32 }
0x1361   :  { %3823 = vmatpush3.msra.mxu0 %v4760_v32 }
0x1362   :  { %3824 = vmatprep.subr.mxu0 %v4767_v55 }
0x1363   :  { %3825 = vmatpush3.msra.mxu0 %v4767_v55 }
0x1364   :  { %3826 = vmatprep.subr.mxu0 %v4774_v43 }
0x1365   :  { %3827 = vmatpush3.msra.mxu0 %v4774_v43 }
0x1366   :  { %3842 = vmatprep.subr.mxu0 %v4542_v49 }
0x13cc   :  { %v2150_v44 = vpop.permute.xlu1 %2149 }
0x141e   :  { %v2143_v45 = vpop.f32.mrf.mxu0 }
0x141f   :  { %v2152_v47 = vmul.f32 %v2150_v44, %v2143_v45  ;;  %v2162_v53 = vmul.f32 %v2143_v45, %v2063_v36 }
0x1420   :  { %v3808_v54 = vpop.f32.mrf.mxu0 }
0x1421   :  { %v3343_v56 = vmul.f32 -0.17677669, %v2152_v47  ;;  %v3344_v57 = vmul.f32 -0.17677669, %v2162_v53 }
0x1423   :  { %v2155_v58 = vmul.f32 1.442695, %v3343_v56  ;;  %v2165_v59 = vmul.f32 1.442695, %v3344_v57 }
0x1425   :  { %4007 = vpow2.f32 %v2155_v58 }
0x1426   :  { %4009 = vpow2.f32 %v2165_v59 }
0x1432   :  { %v4008_v60 = vpop.eup %4007 }
0x1433   :  { %v4010_v46 = vpop.eup %4009  ;;  %v2157_v61 = vadd.f32 1.0, %v4008_v60 }
0x1434   :  { %v2167_v48 = vadd.f32 1.0, %v4010_v46 }
0x1435   :  { %4011 = vrcp.f32 %v2157_v61  ;;  %v2463_v61 = vld [vmem:[#allocation7 + $0x28] sm:$0xff] }
0x1436   :  { %4013 = vrcp.f32 %v2167_v48 }
0x1442   :  { %v4012_v63 = vpop.eup %4011 }
0x1443   :  { %v4014_v0 = vpop.eup %4013  ;;  %v2160_v2 = vmul.f32 %v4012_v63, %v2147_v50  ;;  %v2477_v63 = vld [vmem:[#allocation8 + $0x28] sm:$0xff] }
0x1444   :  { %2171 = vrot.lane.b32.xlu0 %v4014_v0, %s4183_s0 }
0x1445   :  { %3817 = vmatprep.mubr.msk.f32.mxu1 %vm66_vm1, %v2160_v2  ;;  %v4848_v2 = vld [vmem:[%s4991_s10 + $0x8] sm:$0xff] }
0x14b6   :  { %v2172_v5 = vpop.permute.xlu0 %2171 }
0x14b7   :  { %v2174_v8 = vmul.f32 %v2172_v5, %v2161_v3  ;;  %v4855_v3 = vld [vmem:[%s4991_s10] sm:$0xff] }
0x14b9   :  { %3818 = vmatmul.mubr.msk.f32.vlgmr.msra.gmra.mxu1 %vm66_vm1, %v2174_v8 }
0x14ba   :  { %3832 = vmatpush3.msra.mxu1 %v4785_v9  ;;  %3839 = vmatprep.mubr.msk.f32.mxu1 %vm4181_vm2, %v4180_v20 }
0x14bb   :  { %3833 = vmatprep.subr.mxu1 %v4180_v20 }
0x14bc   :  { %3834 = vmatpush3.msra.mxu1 %v4794_v10 }
0x14bd   :  { %3835 = vmatprep.subr.mxu1 %v4180_v20 }
0x14be   :  { %3836 = vmatpush3.msra.mxu1 %v4485_v4 }
0x14bf   :  { %3837 = vmatprep.subr.mxu1 %v4180_v20 }
0x14c0   :  { %3838 = vmatpush3.msra.mxu1 %v4500_v7 }
0x14c1   :  { %3853 = vmatprep.subr.mxu1 %v4754_v34 }
0x1579   :  { %v3819_v62 = vpop.f32.mrf.mxu1 }
0x157a   :  { %v2257_v11 = vadd.f32 %v3819_v62, %v4577_v16 }
0x157b   :  { %v2247_v12 = vpop.f32.mrf.mxu1 }
0x157c   :  { %v3348_v13 = vmul.f32 -1.442695, %v2257_v11  ;;  %v2256_v14 = vadd.f32 %v4582_v18, %v2247_v12 }
0x157e   :  { %4015 = vpow2.f32 %v3348_v13  ;;  %v3347_v1 = vmul.f32 -1.442695, %v2256_v14 }
0x1580   :  { %4017 = vpow2.f32 %v3347_v1 }
0x158b   :  { %v4016_v15 = vpop.eup %4015 }
0x158c   :  { %v2275_v17 = vadd.f32 1.0, %v4016_v15 }
0x158d   :  { %v4018_v19 = vpop.eup %4017 }
0x158e   :  { %4019 = vrcp.f32 %v2275_v17  ;;  %v2262_v4 = vadd.f32 1.0, %v4018_v19 }
0x1590   :  { %4021 = vrcp.f32 %v2262_v4 }
0x1591   :  { %4023 = vtanh.f32 %v2256_v14 }
0x1592   :  { %4025 = vtanh.f32 %v2257_v11 }
0x159b   :  { %v4020_v21 = vpop.eup %4019 }
0x159c   :  { %2279 = vrot.lane.b32.xlu0 %v4020_v21, %s4183_s0 }
0x159d   :  { %v4022_v7 = vpop.eup %4021 }
0x159e   :  { %2266 = vrot.lane.b32.xlu1 %v4022_v7, %s4183_s0  ;;  %v4024_v38 = vpop.eup %4023 }
0x159f   :  { %v4026_v27 = vpop.eup %4025 }
0x160e   :  { %v2280_v26 = vpop.permute.xlu0 %2279 }
0x160f   :  { %v2282_v28 = vmul.f32 %v4026_v27, %v2280_v26 }
0x1610   :  { %v2267_v22 = vpop.permute.xlu1 %2266 }
0x1611   :  { %v2269_v23 = vmul.f32 %v4024_v38, %v2267_v22 }
0x1613   :  { %v4807_v24 = vadd.f32 %v2269_v23, %v4730_v25 }
0x1615   :  { %2284 = vrot.lane.b32.xlu1 %v4807_v24, %s4182_s1 }
0x1687   :  { %v2285_v29 = vpop.permute.xlu1 %2284 }
0x1688   :  { %v2287_v30 = vadd.f32 %v2285_v29, %v2282_v28  ;;  %2307 = vrot.lane.b32.xlu1 %v2285_v29, %s4182_s1 }
0x168a   :  { %2290 = vrot.lane.b32.xlu0 %v2287_v30, %s4182_s1 }
0x16fa   :  { %v2308_v31 = vpop.permute.xlu1 %2307 }
0x16fc   :  { %v4813_v35 = vpop.permute.xlu0 %2290 }
0x16fd   :  { %3828 = vmatprep.mubr.msk.f32.mxu0 %vm66_vm1, %v4813_v35 }
0x16fe   :  { %3829 = vmatmul.mubr.msk.f32.vlgmr.msra.gmra.mxu0 %vm66_vm1, %v2308_v31  ;;  %v4878_v31 = vld [vmem:[#allocation9 + $0x10] sm:$0xff] }
0x16ff   :  { %3843 = vmatpush3.msra.mxu0 %v4542_v49 }
0x1700   :  { %3844 = vmatprep.subr.mxu0 %v4544_v51 }
0x1701   :  { %3845 = vmatpush3.msra.mxu0 %v4544_v51 }
0x1702   :  { %3846 = vmatprep.subr.mxu0 %v4549_v52 }
0x1703   :  { %3847 = vmatpush3.msra.mxu0 %v4549_v52 }
0x1704   :  { %3848 = vmatprep.subr.mxu0 %v4555_v6 }
0x1705   :  { %3849 = vmatpush3.msra.mxu0 %v4555_v6 }
0x1706   :  { %3864 = vmatprep.subr.mxu0 %v4180_v20 }
0x17be   :  { %v3830_v25 = vpop.f32.mrf.mxu0 }
0x17bf   :  { %2465 = vrot.lane.b32.xlu0 %v3830_v25, %s4182_s1  ;;  %v4882_v25 = vld [vmem:[#allocation9 + $0x8] sm:$0xff] }
0x17c0   :  { %v2379_v36 = vpop.f32.mrf.mxu0 }
0x17c1   :  { %v2389_v39 = vadd.f32 %v2388_v37, %v2379_v36 }
0x17c3   :  { %3840 = vmatmul.mubr.msk.f32.vlgmr.msra.gmra.mxu1 %vm66_vm1, %v2389_v39 }
0x17c4   :  { %3854 = vmatpush3.msra.mxu1 %v4754_v34 }
0x17c5   :  { %3855 = vmatprep.subr.mxu1 %v4760_v32 }
0x17c6   :  { %3856 = vmatpush3.msra.mxu1 %v4760_v32 }
0x17c7   :  { %3857 = vmatprep.subr.mxu1 %v4767_v55 }
0x17c8   :  { %3858 = vmatpush3.msra.mxu1 %v4767_v55 }
0x17c9   :  { %3859 = vmatprep.subr.mxu1 %v4774_v43 }
0x17ca   :  { %3860 = vmatpush3.msra.mxu1 %v4774_v43 }
0x17cb   :  { %3875 = vmatprep.subr.mxu1 %v4542_v49 }
0x1831   :  { %v2466_v51 = vpop.permute.xlu0 %2465 }
0x1883   :  { %v2459_v52 = vpop.f32.mrf.mxu1 }
0x1884   :  { %v2468_v6 = vmul.f32 %v2466_v51, %v2459_v52  ;;  %v2478_v44 = vmul.f32 %v2459_v52, %v2379_v36  ;;  %v4886_v36 = vld [vmem:[#allocation9] sm:$0xff]  ;;  %v2704_v51 = vld [vmem:[#allocation6 + $0x30] sm:$0xff] }
0x1885   :  { %v3841_v45 = vpop.f32.mrf.mxu1 }
0x1886   :  { %v3353_v47 = vmul.f32 -0.17677669, %v2468_v6  ;;  %v3354_v53 = vmul.f32 -0.17677669, %v2478_v44 }
0x1888   :  { %v2471_v54 = vmul.f32 1.442695, %v3353_v47  ;;  %v2481_v56 = vmul.f32 1.442695, %v3354_v53 }
0x188a   :  { %4027 = vpow2.f32 %v2471_v54 }
0x188b   :  { %4029 = vpow2.f32 %v2481_v56 }
0x1897   :  { %v4028_v57 = vpop.eup %4027 }
0x1898   :  { %v4030_v58 = vpop.eup %4029  ;;  %v2473_v59 = vadd.f32 1.0, %v4028_v57 }
0x1899   :  { %v2483_v60 = vadd.f32 1.0, %v4030_v58 }
0x189a   :  { %4031 = vrcp.f32 %v2473_v59 }
0x189b   :  { %4033 = vrcp.f32 %v2483_v60  ;;  %v2779_v60 = vld [vmem:[#allocation7 + $0x30] sm:$0xff] }
0x18a7   :  { %v4032_v46 = vpop.eup %4031 }
0x18a8   :  { %v4034_v49 = vpop.eup %4033  ;;  %v2476_v48 = vmul.f32 %v4032_v46, %v2463_v61 }
0x18a9   :  { %2487 = vrot.lane.b32.xlu1 %v4034_v49, %s4183_s0  ;;  %v2793_v49 = vld [vmem:[#allocation8 + $0x30] sm:$0xff] }
0x18aa   :  { %3850 = vmatprep.mubr.msk.f32.mxu0 %vm66_vm1, %v2476_v48 }
0x191b   :  { %v2488_v50 = vpop.permute.xlu1 %2487 }
0x191c   :  { %v2490_v0 = vmul.f32 %v2488_v50, %v2477_v63 }
0x191e   :  { %3851 = vmatmul.mubr.msk.f32.vlgmr.msra.gmra.mxu0 %vm66_vm1, %v2490_v0 }
0x191f   :  { %3865 = vmatpush3.msra.mxu0 %v4785_v9  ;;  %3872 = vmatprep.mubr.msk.f32.mxu0 %vm4181_vm2, %v4180_v20 }
0x1920   :  { %3866 = vmatprep.subr.mxu0 %v4180_v20 }
0x1921   :  { %3867 = vmatpush3.msra.mxu0 %v4794_v10 }
0x1922   :  { %3868 = vmatprep.subr.mxu0 %v4180_v20 }
0x1923   :  { %3869 = vmatpush3.msra.mxu0 %v4848_v2 }
0x1924   :  { %3870 = vmatprep.subr.mxu0 %v4180_v20 }
0x1925   :  { %3871 = vmatpush3.msra.mxu0 %v4855_v3 }
0x1926   :  { %3886 = vmatprep.subr.mxu0 %v4754_v34 }
0x19de   :  { %v3852_v5 = vpop.f32.mrf.mxu0 }
0x19df   :  { %v2573_v8 = vadd.f32 %v3852_v5, %v4577_v16 }
0x19e0   :  { %v2563_v62 = vpop.f32.mrf.mxu0 }
0x19e1   :  { %v3358_v11 = vmul.f32 -1.442695, %v2573_v8  ;;  %v2572_v12 = vadd.f32 %v4582_v18, %v2563_v62 }
0x19e3   :  { %4035 = vpow2.f32 %v3358_v11  ;;  %v3357_v13 = vmul.f32 -1.442695, %v2572_v12 }
0x19e5   :  { %4037 = vpow2.f32 %v3357_v13 }
0x19f0   :  { %v4036_v14 = vpop.eup %4035 }
0x19f1   :  { %v2591_v1 = vadd.f32 1.0, %v4036_v14 }
0x19f2   :  { %v4038_v15 = vpop.eup %4037 }
0x19f3   :  { %4039 = vrcp.f32 %v2591_v1  ;;  %v2578_v17 = vadd.f32 1.0, %v4038_v15 }
0x19f5   :  { %4041 = vrcp.f32 %v2578_v17 }
0x19f6   :  { %4043 = vtanh.f32 %v2572_v12 }
0x19f7   :  { %4045 = vtanh.f32 %v2573_v8  ;;  %v4917_v8 = vld [vmem:[%s4993_s12] ss:$0 sm:$0xff]  ;;  %s4184_s12 = smov [#allocation12]  }
0x19f8   :  { %s3254_s19 = sshll.u32 %s4184_s12, 4  ;;  %s3255_s19 = int_to_ptr.vmem [resolvable:$true] %s3254_s19 }
0x19f9   :  { %s4153_s20 = scalar_lea.vmem %s3255_s19, 128  ;;  %p4158_p6 = scmp.lt.s32.totalorder %s3255_s19, %s3255_s19 }
0x19fa   :  { %p4154_p5 = scmp.ne.s32.totalorder %s3255_s19, %s4153_s20  ;;  %p4159_p7 = scmp.lt.s32.totalorder %s4153_s20, %s4153_s20 }
0x19fc   :  { %p4160_p8 = por %p4159_p7, %p4158_p6 }
0x19fe   :  { %p4161_p9 = pnand %p4160_p8, %p4154_p5 }
0x1a00   :  { %v4040_v19 = vpop.eup %4039 }
0x1a01   :  { %2595 = vrot.lane.b32.xlu1 %v4040_v19, %s4183_s0 }
0x1a02   :  { %v4042_v4 = vpop.eup %4041 }
0x1a03   :  { %2582 = vrot.lane.b32.xlu0 %v4042_v4, %s4183_s0  ;;  %v4044_v21 = vpop.eup %4043 }
0x1a04   :  { %v4046_v23 = vpop.eup %4045 }
0x1a73   :  { %v2596_v22 = vpop.permute.xlu1 %2595 }
0x1a74   :  { %v2598_v26 = vmul.f32 %v4046_v23, %v2596_v22 }
0x1a75   :  { %v2583_v7 = vpop.permute.xlu0 %2582 }
0x1a76   :  { %v2585_v38 = vmul.f32 %v4044_v21, %v2583_v7 }
0x1a78   :  { %v4864_v18 = vadd.f32 %v2585_v38, %v4807_v24  ;;  %v4875_v24 = vld [vmem:[#allocation9 + $0x18] sm:$0xff] }
0x1a7a   :  { %2600 = vrot.lane.b32.xlu0 %v4864_v18, %s4182_s1 }
0x1aec   :  { %v2601_v27 = vpop.permute.xlu0 %2600 }
0x1aed   :  { %v2603_v28 = vadd.f32 %v2601_v27, %v2598_v26  ;;  %2623 = vrot.lane.b32.xlu0 %v2601_v27, %s4182_s1 }
0x1aef   :  { %2606 = vrot.lane.b32.xlu1 %v2603_v28, %s4182_s1  ;;  %v3020_v28 = vld [vmem:[#allocation6 + $0x38] sm:$0xff] }
0x1b5f   :  { %v2624_v30 = vpop.permute.xlu0 %2623 }
0x1b61   :  { %v4870_v29 = vpop.permute.xlu1 %2606 }
0x1b62   :  { %3861 = vmatprep.mubr.msk.f32.mxu1 %vm66_vm1, %v4870_v29 }
0x1b63   :  { %3862 = vmatmul.mubr.msk.f32.vlgmr.msra.gmra.mxu1 %vm66_vm1, %v2624_v30 }
0x1b64   :  { %3876 = vmatpush3.msra.mxu1 %v4875_v24 }
0x1b65   :  { %3877 = vmatprep.subr.mxu1 %v4878_v31 }
0x1b66   :  { %3878 = vmatpush3.msra.mxu1 %v4878_v31 }
0x1b67   :  { %3879 = vmatprep.subr.mxu1 %v4882_v25 }
0x1b68   :  { %3880 = vmatpush3.msra.mxu1 %v4882_v25 }
0x1b69   :  { %3881 = vmatprep.subr.mxu1 %v4886_v36 }
0x1b6a   :  { %3882 = vmatpush3.msra.mxu1 %v4886_v36 }
0x1b6b   :  { %3897 = vmatprep.subr.mxu1 %v4180_v20 }
0x1c23   :  { %v3863_v37 = vpop.f32.mrf.mxu1 }
0x1c24   :  { %2781 = vrot.lane.b32.xlu1 %v3863_v37, %s4182_s1  ;;  %v4132_v37 = vld [vmem:[#allocation2] sm:$0xff] }
0x1c25   :  { %v2695_v39 = vpop.f32.mrf.mxu1 }
0x1c26   :  { %v2705_v52 = vadd.f32 %v2704_v51, %v2695_v39 }
0x1c28   :  { %3873 = vmatmul.mubr.msk.f32.vlgmr.msra.gmra.mxu0 %vm66_vm1, %v2705_v52  ;;  %v1656_v52 = vld [vmem:[#allocation5 + $0x18] sm:$0xff] }
0x1c29   :  { %3887 = vmatpush3.msra.mxu0 %v4754_v34 }
0x1c2a   :  { %3888 = vmatprep.subr.mxu0 %v4760_v32 }
0x1c2b   :  { %3889 = vmatpush3.msra.mxu0 %v4760_v32 }
0x1c2c   :  { %3890 = vmatprep.subr.mxu0 %v4767_v55 }
0x1c2d   :  { %3891 = vmatpush3.msra.mxu0 %v4767_v55 }
0x1c2e   :  { %3892 = vmatprep.subr.mxu0 %v4774_v43 }
0x1c2f   :  { %3893 = vmatpush3.msra.mxu0 %v4774_v43 }
0x1c30   :  { %3908 = vmatprep.subr.mxu0 %v4875_v24 }
0x1c96   :  { %v2782_v6 = vpop.permute.xlu1 %2781 }
0x1ce8   :  { %v2775_v44 = vpop.f32.mrf.mxu0 }
0x1ce9   :  { %v2784_v45 = vmul.f32 %v2782_v6, %v2775_v44  ;;  %v2794_v47 = vmul.f32 %v2775_v44, %v2695_v39  ;;  %v1972_v44 = vld [vmem:[#allocation5 + $0x20] sm:$0xff] }
0x1cea   :  { %v3874_v53 = vpop.f32.mrf.mxu0 }
0x1ceb   :  { %v3363_v34 = vmul.f32 -0.17677669, %v2784_v45  ;;  %v3364_v54 = vmul.f32 -0.17677669, %v2794_v47  ;;  %v1977_v45 = vmul.f32 %v4736_v33, %v1972_v44  ;;  %v2604_v53 = vld [vmem:[#allocation5 + $0x30] sm:$0xff] }
0x1ced   :  { %v2787_v56 = vmul.f32 1.442695, %v3363_v34  ;;  %v2797_v57 = vmul.f32 1.442695, %v3364_v54  ;;  %v2609_v34 = vmul.f32 %v4870_v29, %v2604_v53 }
0x1cef   :  { %4047 = vpow2.f32 %v2787_v56  ;;  %v2610_v54 = vsel %vm66_vm1, %v2609_v34, 0.0 }
0x1cf0   :  { %4049 = vpow2.f32 %v2797_v57 }
0x1cfc   :  { %v4048_v32 = vpop.eup %4047 }
0x1cfd   :  { %v4050_v58 = vpop.eup %4049  ;;  %v2789_v55 = vadd.f32 1.0, %v4048_v32 }
0x1cfe   :  { %v2799_v59 = vadd.f32 1.0, %v4050_v58 }
0x1cff   :  { %4051 = vrcp.f32 %v2789_v55 }
0x1d00   :  { %4053 = vrcp.f32 %v2799_v59 }
0x1d0c   :  { %v4052_v43 = vpop.eup %4051 }
0x1d0d   :  { %v4054_v46 = vpop.eup %4053  ;;  %v2792_v61 = vmul.f32 %v4052_v43, %v2779_v60 }
0x1d0e   :  { %2803 = vrot.lane.b32.xlu0 %v4054_v46, %s4183_s0 }
0x1d0f   :  { %3883 = vmatprep.mubr.msk.f32.mxu1 %vm66_vm1, %v2792_v61 }
0x1d80   :  { %v2804_v48 = vpop.permute.xlu0 %2803 }
0x1d81   :  { %v2806_v63 = vmul.f32 %v2804_v48, %v2793_v49  ;;  %v3095_v48 = vld [vmem:[#allocation7 + $0x38] sm:$0xff] }
0x1d83   :  { %3884 = vmatmul.mubr.msk.f32.vlgmr.msra.gmra.mxu1 %vm66_vm1, %v2806_v63 }
0x1d84   :  { %3898 = vmatpush3.msra.mxu1 %v4785_v9  ;;  %3905 = vmatprep.mubr.msk.f32.mxu1 %vm4181_vm2, %v4180_v20 }
0x1d85   :  { %3899 = vmatprep.subr.mxu1 %v4180_v20 }
0x1d86   :  { %3900 = vmatpush3.msra.mxu1 %v4794_v10 }
0x1d87   :  { %3901 = vmatprep.subr.mxu1 %v4180_v20 }
0x1d88   :  { %3902 = vmatpush3.msra.mxu1 %v4848_v2 }
0x1d89   :  { %3903 = vmatprep.subr.mxu1 %v4180_v20 }
0x1d8a   :  { %3904 = vmatpush3.msra.mxu1 %v4855_v3 }
0x1e43   :  { %v3885_v50 = vpop.f32.mrf.mxu1 }
0x1e44   :  { %v2889_v0 = vadd.f32 %v3885_v50, %v4577_v16  ;;  %v3109_v50 = vld [vmem:[#allocation8 + $0x38] sm:$0xff] }
0x1e45   :  { %v2879_v5 = vpop.f32.mrf.mxu1 }
0x1e46   :  { %v3368_v9 = vmul.f32 -1.442695, %v2889_v0  ;;  %v2888_v10 = vadd.f32 %v4917_v8, %v2879_v5 }
0x1e48   :  { %4055 = vpow2.f32 %v3368_v9  ;;  %v3367_v62 = vmul.f32 -1.442695, %v2888_v10 }
0x1e4a   :  { %4057 = vpow2.f32 %v3367_v62 }
0x1e55   :  { %v4056_v2 = vpop.eup %4055 }
0x1e56   :  { %v2907_v11 = vadd.f32 1.0, %v4056_v2 }
0x1e57   :  { %v4058_v12 = vpop.eup %4057 }
0x1e58   :  { %4059 = vrcp.f32 %v2907_v11  ;;  %v2894_v3 = vadd.f32 1.0, %v4058_v12 }
0x1e5a   :  { %4061 = vrcp.f32 %v2894_v3 }
0x1e5b   :  { %4063 = vtanh.f32 %v2888_v10 }
0x1e5c   :  { %4065 = vtanh.f32 %v2889_v0 }
0x1e65   :  { %v4060_v13 = vpop.eup %4059 }
0x1e66   :  { %2911 = vrot.lane.b32.xlu0 %v4060_v13, %s4183_s0 }
0x1e67   :  { %v4062_v14 = vpop.eup %4061 }
0x1e68   :  { %2898 = vrot.lane.b32.xlu1 %v4062_v14, %s4183_s0  ;;  %v4064_v1 = vpop.eup %4063 }
0x1e69   :  { %v4066_v21 = vpop.eup %4065 }
0x1ed8   :  { %v2912_v4 = vpop.permute.xlu0 %2911 }
0x1ed9   :  { %v2914_v7 = vmul.f32 %v4066_v21, %v2912_v4  ;;  %v2288_v21 = vld [vmem:[#allocation5 + $0x28] sm:$0xff] }
0x1eda   :  { %v2899_v15 = vpop.permute.xlu1 %2898 }
0x1edb   :  { %v2901_v17 = vmul.f32 %v4064_v1, %v2899_v15 }
0x1edd   :  { %v4923_v19 = vadd.f32 %v2901_v17, %v4864_v18 }
0x1edf   :  { %2916 = vrot.lane.b32.xlu1 %v4923_v19, %s4182_s1 }
0x1f51   :  { %v2917_v38 = vpop.permute.xlu1 %2916 }
0x1f52   :  { %v2919_v22 = vadd.f32 %v2917_v38, %v2914_v7  ;;  %2939 = vrot.lane.b32.xlu1 %v2917_v38, %s4182_s1  ;;  %v2920_v38 = vld [vmem:[#allocation5 + $0x38] sm:$0xff] }
0x1f54   :  { %2922 = vrot.lane.b32.xlu0 %v2919_v22, %s4182_s1 }
0x1fc4   :  { %v2940_v26 = vpop.permute.xlu1 %2939 }
0x1fc6   :  { %v4929_v23 = vpop.permute.xlu0 %2922 }
0x1fc7   :  { %3894 = vmatprep.mubr.msk.f32.mxu0 %vm66_vm1, %v4929_v23  ;;  %v2925_v22 = vmul.f32 %v4929_v23, %v2920_v38 }
0x1fc8   :  { %3895 = vmatmul.mubr.msk.f32.vlgmr.msra.gmra.mxu0 %vm66_vm1, %v2940_v26 }
0x1fc9   :  { %3909 = vmatpush3.msra.mxu0 %v4875_v24  ;;  %v710_v24 = vld [vmem:[#allocation5] sm:$0xff] }
0x1fca   :  { %3910 = vmatprep.subr.mxu0 %v4878_v31  ;;  %v711_v39 = vmul.f32 %v4132_v37, %v710_v24 }
0x1fcb   :  { %3911 = vmatpush3.msra.mxu0 %v4878_v31  ;;  %v1340_v31 = vld [vmem:[#allocation5 + $0x10] sm:$0xff] }
0x1fcc   :  { %3912 = vmatprep.subr.mxu0 %v4882_v25  ;;  %v1345_v51 = vmul.f32 %v4642_v40, %v1340_v31  ;;  %v1978_v40 = vsel %vm66_vm1, %v1977_v45, 0.0 }
0x1fcd   :  { %3913 = vmatpush3.msra.mxu0 %v4882_v25  ;;  %v712_v25 = vsel %vm66_vm1, %v711_v39, 0.0 }
0x1fce   :  { %3914 = vmatprep.subr.mxu0 %v4886_v36  ;;  %v1346_v6 = vsel %vm66_vm1, %v1345_v51, 0.0 }
0x1fcf   :  { %3915 = vmatpush3.msra.mxu0 %v4886_v36  ;;  %v1661_v36 = vmul.f32 %v4689_v42, %v1656_v52 }
0x1fd1   :  { %v1662_v47 = vsel %vm66_vm1, %v1661_v36, 0.0 }
0x2088   :  { %v3896_v18 = vpop.f32.mrf.mxu0 }
0x2089   :  { %3097 = vrot.lane.b32.xlu0 %v3896_v18, %s4182_s1  ;;  %v2926_v18 = vsel %vm66_vm1, %v2925_v22, 0.0 }
0x208a   :  { %v3011_v27 = vpop.f32.mrf.mxu0 }
0x208b   :  { %v3021_v30 = vadd.f32 %v3020_v28, %v3011_v27 }
0x208d   :  { %3906 = vmatmul.mubr.msk.f32.vlgmr.msra.gmra.mxu1 %vm66_vm1, %v3021_v30 }
0x20a8   :  { %713 = vadd.xlane.f32.xlu0 %v712_v25 }
0x20ac   :  { %1347 = vadd.xlane.f32.xlu0 %v1346_v6 }
0x20b0   :  { %1663 = vadd.xlane.f32.xlu0 %v1662_v47 }
0x20b4   :  { %1979 = vadd.xlane.f32.xlu0 %v1978_v40 }
0x20b8   :  { %2611 = vadd.xlane.f32.xlu0 %v2610_v54 }
0x20fb   :  { %v3098_v42 = vpop.permute.xlu0 %3097 }
0x214d   :  { %v3091_v56 = vpop.f32.mrf.mxu1 }
0x214e   :  { %v3100_v57 = vmul.f32 %v3098_v42, %v3091_v56  ;;  %v3110_v33 = vmul.f32 %v3091_v56, %v3011_v27 }
0x214f   :  { %v3907_v32 = vpop.f32.mrf.mxu1 }
0x2150   :  { %v3373_v58 = vmul.f32 -0.17677669, %v3100_v57  ;;  %v3374_v55 = vmul.f32 -0.17677669, %v3110_v33 }
0x2152   :  { %v3103_v59 = vmul.f32 1.442695, %v3373_v58  ;;  %v3113_v43 = vmul.f32 1.442695, %v3374_v55 }
0x2154   :  { %4067 = vpow2.f32 %v3103_v59 }
0x2155   :  { %4069 = vpow2.f32 %v3113_v43 }
0x2161   :  { %v4068_v29 = vpop.eup %4067 }
0x2162   :  { %v3105_v60 = vadd.f32 1.0, %v4068_v29  ;;  %v4070_v46 = vpop.eup %4069 }
0x2163   :  { %v3115_v61 = vadd.f32 1.0, %v4070_v46 }
0x2164   :  { %4071 = vrcp.f32 %v3105_v60  ;;  %v707_v60 = vlaneseq }
0x2165   :  { %4073 = vrcp.f32 %v3115_v61 }
0x2171   :  { %v4072_v49 = vpop.eup %4071 }
0x2172   :  { %v3108_v20 = vmul.f32 %v4072_v49, %v3095_v48  ;;  %v4074_v63 = vpop.eup %4073  ;;  %v708_v48 = vand.u32 127, %v707_v60 }
0x2173   :  { %3119 = vrot.lane.b32.xlu1 %v4074_v63, %s4183_s0  ;;  %v706_v63 = vld [vmem:[#allocation4] sm:$0xff] }
0x2174   :  { %3916 = vmatprep.mubr.msk.f32.mxu0 %vm66_vm1, %v3108_v20  ;;  %vm722_vm4 = vcmp.eq.s32.totalorder %v708_v48, 0  ;;  %vm1041_vm5 = vcmp.eq.s32.totalorder %v708_v48, 1  ;;  %vm1357_vm6 = vcmp.eq.s32.totalorder %v708_v48, 2  ;;  %vm1673_vm7 = vcmp.eq.s32.totalorder %v708_v48, 3 }
0x2175   :  { %vm1989_vm8 = vcmp.eq.s32.totalorder %v708_v48, 4  ;;  %vm2305_vm9 = vcmp.eq.s32.totalorder %v708_v48, 5  ;;  %vm2621_vm10 = vcmp.eq.s32.totalorder %v708_v48, 6  ;;  %vm2937_vm11 = vcmp.eq.s32.totalorder %v708_v48, 7 }
0x21e5   :  { %v3120_v0 = vpop.permute.xlu1 %3119 }
0x21e6   :  { %v3122_v5 = vmul.f32 %v3120_v0, %v3109_v50 }
0x21e8   :  { %3917 = vmatmul.mubr.msk.f32.vlgmr.msra.gmra.mxu0 %vm66_vm1, %v3122_v5 }
0x22a8   :  { %v3918_v9 = vpop.f32.mrf.mxu0 }
0x22a9   :  { %v4958_v10 = vadd.f32 %v3918_v9, %v4577_v16  ;;  %v1024_v16 = vld [vmem:[#allocation5 + $0x8] sm:$0xff] }
0x22aa   :  { %v3195_v62 = vpop.f32.mrf.mxu0  ;;  %v1029_v4 = vmul.f32 %v4595_v41, %v1024_v16 }
0x22ab   :  { %v3378_v2 = vmul.f32 -1.442695, %v4958_v10  ;;  %v3204_v11 = vadd.f32 %v4917_v8, %v3195_v62  ;;  %v2293_v8 = vmul.f32 %v4813_v35, %v2288_v21  ;;  %v714_v35 = vpop.xlane.xlu0 %713 }
0x22ac   :  { %v1030_v7 = vsel %vm66_vm1, %v1029_v4, 0.0  ;;  %v3299_v23 = vmul.f32 -1.442695, %v714_v35 }
0x22ad   :  { %4075 = vpow2.f32 %v3378_v2  ;;  %v3377_v12 = vmul.f32 -1.442695, %v3204_v11  ;;  %v2294_v26 = vsel %vm66_vm1, %v2293_v8, 0.0 }
0x22af   :  { %4077 = vpow2.f32 %v3377_v12  ;;  %v1348_v24 = vpop.xlane.xlu0 %1347 }
0x22b0   :  { %v3319_v31 = vmul.f32 -1.442695, %v1348_v24 }
0x22b3   :  { %v1664_v37 = vpop.xlane.xlu0 %1663 }
0x22b4   :  { %v3329_v51 = vmul.f32 -1.442695, %v1664_v37 }
0x22b7   :  { %v1980_v39 = vpop.xlane.xlu0 %1979 }
0x22b8   :  { %v3339_v25 = vmul.f32 -1.442695, %v1980_v39 }
0x22ba   :  { %v4076_v3 = vpop.eup %4075 }
0x22bb   :  { %v3223_v13 = vadd.f32 1.0, %v4076_v3  ;;  %v2612_v52 = vpop.xlane.xlu0 %2611 }
0x22bc   :  { %v4078_v14 = vpop.eup %4077 }
0x22bd   :  { %4079 = vrcp.f32 %v3223_v13  ;;  %v3210_v1 = vadd.f32 1.0, %v4078_v14 }
0x22bf   :  { %4081 = vrcp.f32 %v3210_v1 }
0x22c0   :  { %4083 = vtanh.f32 %v3204_v11 }
0x22c1   :  { %4085 = vpow2.f32 %v3299_v23 }
0x22c2   :  { %4087 = vpow2.f32 %v3319_v31 }
0x22c3   :  { %4089 = vpow2.f32 %v3329_v51 }
0x22c4   :  { %4091 = vpow2.f32 %v3339_v25 }
0x22ca   :  { %v4080_v15 = vpop.eup %4079 }
0x22cb   :  { %3227 = vrot.lane.b32.xlu0 %v4080_v15, %s4183_s0 }
0x22cc   :  { %v4082_v17 = vpop.eup %4081 }
0x22cd   :  { %3214 = vrot.lane.b32.xlu1 %v4082_v17, %s4183_s0  ;;  %v4084_v27 = vpop.eup %4083 }
0x22ce   :  { %v4086_v53 = vpop.eup %4085 }
0x22cf   :  { %v718_v40 = vadd.f32 1.0, %v4086_v53  ;;  %v4088_v54 = vpop.eup %4087 }
0x22d0   :  { %v4090_v42 = vpop.eup %4089  ;;  %v1352_v33 = vadd.f32 1.0, %v4088_v54 }
0x22d1   :  { %v4092_v56 = vpop.eup %4091  ;;  %v1668_v32 = vadd.f32 1.0, %v4090_v42 }
0x22d2   :  { %v1984_v55 = vadd.f32 1.0, %v4092_v56 }
0x22f1   :  { %1031 = vadd.xlane.f32.xlu1 %v1030_v7 }
0x22f5   :  { %2295 = vadd.xlane.f32.xlu1 %v2294_v26 }
0x22f9   :  { %2927 = vadd.xlane.f32.xlu1 %v2926_v18 }
0x233f   :  { %v3215_v28 = vpop.permute.xlu1 %3214 }
0x2340   :  { %v3217_v30 = vmul.f32 %v4084_v27, %v3215_v28 }
0x2342   :  { %v3218_v41 = vadd.f32 %v3217_v30, %v4923_v19  ;;  %v3359_v19 = vmul.f32 -1.442695, %v2612_v52 }
0x2344   :  { %3241 = vst.msk [vmem:[#allocation3] sm:$0xff] %vm66_vm1, %v3218_v41  ;;  %3232 = vrot.lane.b32.xlu1 %v3218_v41, %s4182_s1 }
0x237a   :  { %v1032_v36 = vpop.xlane.xlu1 %1031 }
0x237b   :  { %v3309_v6 = vmul.f32 -1.442695, %v1032_v36 }
0x237d   :  { %4093 = vpow2.f32 %v3309_v6 }
0x237e   :  { %v2296_v44 = vpop.xlane.xlu1 %2295  ;;  %4095 = vpow2.f32 %v3359_v19 }
0x237f   :  { %v3349_v45 = vmul.f32 -1.442695, %v2296_v44 }
0x2381   :  { %4097 = vpow2.f32 %v3349_v45 }
0x2382   :  { %v2928_v47 = vpop.xlane.xlu1 %2927 }
0x2383   :  { %v3369_v34 = vmul.f32 -1.442695, %v2928_v47 }
0x2385   :  { %4099 = vpow2.f32 %v3369_v34 }
0x2386   :  { %4101 = vrcp.f32 %v718_v40 }
0x238a   :  { %v4094_v57 = vpop.eup %4093 }
0x238b   :  { %v1036_v58 = vadd.f32 1.0, %v4094_v57  ;;  %v4096_v59 = vpop.eup %4095 }
0x238c   :  { %v2616_v46 = vadd.f32 1.0, %v4096_v59 }
0x238d   :  { %4103 = vrcp.f32 %v1036_v58 }
0x238e   :  { %v4098_v43 = vpop.eup %4097  ;;  %4105 = vrcp.f32 %v1352_v33 }
0x238f   :  { %4107 = vrcp.f32 %v1668_v32  ;;  %v2300_v29 = vadd.f32 1.0, %v4098_v43 }
0x2390   :  { %4109 = vrcp.f32 %v1984_v55 }
0x2391   :  { %4111 = vrcp.f32 %v2300_v29 }
0x2392   :  { %v4100_v61 = vpop.eup %4099  ;;  %4113 = vrcp.f32 %v2616_v46 }
0x2393   :  { %v2932_v49 = vadd.f32 1.0, %v4100_v61  ;;  %v4102_v20 = vpop.eup %4101 }
0x2394   :  { %v723_v0 = vsel %vm722_vm4, %v4102_v20, %v706_v63 }
0x2395   :  { %4115 = vrcp.f32 %v2932_v49 }
0x2396   :  { %4117 = vtanh.f32 %v4958_v10 }
0x239a   :  { %v4104_v50 = vpop.eup %4103 }
0x239b   :  { %v4106_v5 = vpop.eup %4105  ;;  %v1042_v9 = vsel %vm1041_vm5, %v4104_v50, %v723_v0 }
0x239c   :  { %v4108_v62 = vpop.eup %4107  ;;  %v1358_v2 = vsel %vm1357_vm6, %v4106_v5, %v1042_v9 }
0x239d   :  { %v4110_v11 = vpop.eup %4109  ;;  %v1674_v12 = vsel %vm1673_vm7, %v4108_v62, %v1358_v2 }
0x239e   :  { %v4112_v3 = vpop.eup %4111  ;;  %v1990_v13 = vsel %vm1989_vm8, %v4110_v11, %v1674_v12 }
0x239f   :  { %v2306_v14 = vsel %vm2305_vm9, %v4112_v3, %v1990_v13  ;;  %v4114_v1 = vpop.eup %4113 }
0x23a0   :  { %v2622_v17 = vsel %vm2621_vm10, %v4114_v1, %v2306_v14 }
0x23a2   :  { %v4116_v15 = vpop.eup %4115 }
0x23a3   :  { %v2938_v16 = vsel %vm2937_vm11, %v4116_v15, %v2622_v17 }
0x23a4   :  { %3243 = vst.msk [vmem:[#allocation4] sm:$0xff] %vm69_vm3, %v2938_v16  ;;  %3247 = vst.msk [vmem:[#allocation12] sm:$0xff] %vm69_vm3, %v2938_v16 }
0x23a5   :  { %4164 = shalt.err (!%p4161_p9)
}
0x23a6   :  { %3257 = dma.vmem_to_hbm [thread:$0]  %s3255_s19, 128, %s4995_s14, [#allocation11]   ;;  %v3228_v4 = vpop.permute.xlu0 %3227  ;;  %v4118_v21 = vpop.eup %4117 }
0x23a7   :  { %v3230_v8 = vmul.f32 %v4118_v21, %v3228_v4 }
0x23b6   :  { %v3233_v7 = vpop.permute.xlu1 %3232 }
0x23b7   :  { %v3235_v38 = vadd.f32 %v3233_v7, %v3230_v8 }
0x23b9   :  { %3237 = vrot.lane.b32.xlu1 %v3235_v38, %s4182_s1 }
0x242b   :  { %v3238_v10 = vpop.permute.xlu1 %3237 }
0x242c   :  { %3240 = vst.msk [vmem:[#allocation2] sm:$0xff] %vm66_vm1, %v3238_v10 }
0x242d   :  { %4175 = dma.done.wait [#allocation11], 128  }
0x242e   :  { %4176 = vsyncadd [#allocation11], 4294967168 }
0x242f   :  { %3261 = vsyncpa [#allocation10], 1 }
0x2430   :  { %3262 = vsyncpa [#allocation11], 1 }

</bundles_post_ra>
